<compile_context>
chip_gen: v5e
topology: v5e:2x2
jax: 0.10.0
libtpu: 0.0.40
codegen_flags: <defaults>
</compile_context>

<pallas_src>
import functools

import jax
import jax.numpy as jnp
from jax import lax
from jax.experimental import pallas as pl
from jax.experimental.pallas import tpu as pltpu

LN_EPS = 1e-5  # PyTorch nn.LayerNorm default


def _vmem_spec():
    # whole-array block resident in VMEM (all operands here are tiny)
    return pl.BlockSpec(memory_space=pltpu.MemorySpace.VMEM)


def _layer_norm(y, gamma, beta):
    # one-pass variance: E[y^2] - mean^2 (single reduction sweep)
    mean = jnp.mean(y, axis=-1, keepdims=True)
    var = jnp.mean(y * y, axis=-1, keepdims=True) - mean * mean
    return (y - mean) * lax.rsqrt(var + LN_EPS) * gamma + beta


# --------------------------------------------------------------------------
# Single fused kernel: MHA + LN + position-wise FFN + LN
# --------------------------------------------------------------------------
def encoder_layer_kernel(x_ref, wqh_ref, bqh_ref, wkh_ref, bkh_ref, wvh_ref, bvh_ref,
                         fcwh_ref, fcb_ref, ln1g_ref, ln1b_ref,
                         w1_ref, b1_ref, w2_ref, b2_ref, ln2g_ref, ln2b_ref,
                         out_ref, attn_ref,
                         q_scr, k_scr, v_scr, ctx_scr, res_scr,
                         *, n_head, B, L, d_k, d_v):
    f32 = jnp.float32

    # ---- 1. Q/K/V projections, per (head, batch) with pre-split per-head weights ----
    # (no lane-slicing of activations; each result is written lane-dense for its head)
    for h in range(n_head):
        wq_h = wqh_ref[h]          # (D, d_k)
        wk_h = wkh_ref[h]
        wv_h = wvh_ref[h]
        bq_h = bqh_ref[h]          # (1, d_k)
        bk_h = bkh_ref[h]
        bv_h = bvh_ref[h]
        for b in range(B):
            xb = x_ref[b]          # (L, D)
            i = h * B + b          # torch head-major flattening: view(-1, len_q, d_k)
            q_scr[i] = jnp.dot(xb, wq_h, preferred_element_type=f32) + bq_h
            k_scr[i] = jnp.dot(xb, wk_h, preferred_element_type=f32) + bk_h
            v_scr[i] = jnp.dot(xb, wv_h, preferred_element_type=f32) + bv_h

    # ---- 2. scaled dot-product attention, batched over the (head*batch) axis ----
    q = q_scr[...]                 # (n_head*B, L, d_k)
    k = k_scr[...]
    v = v_scr[...]
    scale = 1.0 / (float(d_k) ** 0.5)
    s = jnp.einsum('ind,imd->inm', q, k, preferred_element_type=f32) * scale
    # TODO(synk): slf_attn_mask (masked_fill with -inf) and attention dropout are not
    #             implemented; this is the mask=None / eval() path of the reference.
    s = s - jnp.max(s, axis=-1, keepdims=True)
    e = jnp.exp(s)
    p = e * pl.reciprocal(jnp.sum(e, axis=-1, keepdims=True), approx=True)
    attn_ref[...] = p                                              # (n_head*B, L, L)
    ctx_scr[...] = jnp.einsum('inm,imd->ind', p, v, preferred_element_type=f32)

    # ---- 3. output projection (heads accumulated), residual, LayerNorm 1 ----
    # fc(concat_h ctx_h) == sum_h ctx_h @ W_fc[h]  -> no lane-sliced concatenation needed
    for b in range(B):
        acc = fcb_ref[...] + x_ref[b]                              # bias + residual (L, D)
        for h in range(n_head):
            acc = acc + jnp.dot(ctx_scr[h * B + b], fcwh_ref[h],
                                preferred_element_type=f32)
        res_scr[b * L:(b + 1) * L, :] = _layer_norm(acc, ln1g_ref[...], ln1b_ref[...])

    # ---- 4. position-wise FFN (1x1 conv == per-position linear) + residual + LN 2 ----
    res = res_scr[...]                                             # (B*L, D)
    h1 = jnp.maximum(jnp.dot(res, w1_ref[...], preferred_element_type=f32) + b1_ref[...],
                     0.0)
    h2 = jnp.dot(h1, w2_ref[...], preferred_element_type=f32) + b2_ref[...]
    out_ref[...] = _layer_norm(h2 + res, ln2g_ref[...], ln2b_ref[...])


# --------------------------------------------------------------------------
# Wrapper: reshape parameters (once, outside the kernel) and launch one pallas_call
# --------------------------------------------------------------------------
def encoder_layer_forward(x, params):
    B, L, D = x.shape
    n_head, d_k, d_v = params["n_head"], params["d_k"], params["d_v"]
    d_inner = params["w1"].shape[0]

    def split_heads(w, b, dh):
        # torch Linear weight (n_head*dh, D): y = x @ W.T + b; columns split head-major
        wh = w.T.reshape(D, n_head, dh).transpose(1, 0, 2)         # (n_head, D, dh)
        bh = b.reshape(n_head, 1, dh)
        return wh, bh

    wqh, bqh = split_heads(params["wq"], params["bq"], d_k)
    wkh, bkh = split_heads(params["wk"], params["bk"], d_k)
    wvh, bvh = split_heads(params["wv"], params["bv"], d_v)
    fcwh = params["fc_w"].T.reshape(n_head, d_v, D)                # fc.weight.T row-blocks
    fcb = params["fc_b"].reshape(1, D)
    ln1g = params["ln1_g"].reshape(1, D)
    ln1b = params["ln1_b"].reshape(1, D)
    w1 = params["w1"][:, :, 0].T                                   # (D, d_inner)
    b1 = params["b1"].reshape(1, d_inner)
    w2 = params["w2"][:, :, 0].T                                   # (d_inner, D)
    b2 = params["b2"].reshape(1, D)
    ln2g = params["ln2_g"].reshape(1, D)
    ln2b = params["ln2_b"].reshape(1, D)

    kernel = functools.partial(encoder_layer_kernel,
                               n_head=n_head, B=B, L=L, d_k=d_k, d_v=d_v)

    out2d, attn = pl.pallas_call(
        kernel,
        out_shape=(jax.ShapeDtypeStruct((B * L, D), jnp.float32),
                   jax.ShapeDtypeStruct((n_head * B, L, L), jnp.float32)),
        in_specs=[_vmem_spec()] * 17,
        out_specs=(_vmem_spec(), _vmem_spec()),
        scratch_shapes=[
            pltpu.VMEM((n_head * B, L, d_k), jnp.float32),   # q
            pltpu.VMEM((n_head * B, L, d_k), jnp.float32),   # k
            pltpu.VMEM((n_head * B, L, d_v), jnp.float32),   # v
            pltpu.VMEM((n_head * B, L, d_v), jnp.float32),   # attention context
            pltpu.VMEM((B * L, D), jnp.float32),             # post-LN1 activations
        ],
    )(x, wqh, bqh, wkh, bkh, wvh, bvh, fcwh, fcb, ln1g, ln1b,
      w1, b1, w2, b2, ln2g, ln2b)

    # enc_output: (B, L, d_model); enc_slf_attn: (n_head*B, L, L) as in torch
    return out2d.reshape(B, L, D), attn


# --------------------------------------------------------------------------
# Deterministic synthetic parameters (shapes match the PyTorch module)
# --------------------------------------------------------------------------
def init_params(key, d_model, d_inner, n_head, d_k, d_v):
    ks = iter(jax.random.split(key, 20))
    std_qk = (2.0 / (d_model + d_k)) ** 0.5
    std_v = (2.0 / (d_model + d_v)) ** 0.5
    wq = std_qk * jax.random.normal(next(ks), (n_head * d_k, d_model), jnp.float32)
    wk = std_qk * jax.random.normal(next(ks), (n_head * d_k, d_model), jnp.float32)
    wv = std_v * jax.random.normal(next(ks), (n_head * d_v, d_model), jnp.float32)
    bq = 0.02 * jax.random.normal(next(ks), (n_head * d_k,), jnp.float32)
    bk = 0.02 * jax.random.normal(next(ks), (n_head * d_k,), jnp.float32)
    bv = 0.02 * jax.random.normal(next(ks), (n_head * d_v,), jnp.float32)
    fc_w = ((2.0 / (n_head * d_v + d_model)) ** 0.5
            * jax.random.normal(next(ks), (d_model, n_head * d_v), jnp.float32))
    fc_b = 0.02 * jax.random.normal(next(ks), (d_model,), jnp.float32)
    ln1_g = 1.0 + 0.05 * jax.random.normal(next(ks), (d_model,), jnp.float32)
    ln1_b = 0.05 * jax.random.normal(next(ks), (d_model,), jnp.float32)
    w1 = ((1.0 / d_model) ** 0.5
          * jax.random.normal(next(ks), (d_inner, d_model, 1), jnp.float32))
    b1 = 0.02 * jax.random.normal(next(ks), (d_inner,), jnp.float32)
    w2 = ((1.0 / d_inner) ** 0.5
          * jax.random.normal(next(ks), (d_model, d_inner, 1), jnp.float32))
    b2 = 0.02 * jax.random.normal(next(ks), (d_model,), jnp.float32)
    ln2_g = 1.0 + 0.05 * jax.random.normal(next(ks), (d_model,), jnp.float32)
    ln2_b = 0.05 * jax.random.normal(next(ks), (d_model,), jnp.float32)
    return dict(wq=wq, wk=wk, wv=wv, bq=bq, bk=bk, bv=bv, fc_w=fc_w, fc_b=fc_b,
                ln1_g=ln1_g, ln1_b=ln1_b, w1=w1, b1=b1, w2=w2, b2=b2,
                ln2_g=ln2_g, ln2_b=ln2_b, n_head=n_head, d_k=d_k, d_v=d_v)


if __name__ == "__main__":
    # small shapes consistent with the module (lane-dense d_model)
    B, L = 2, 16
    d_model, d_inner = 128, 256
    n_head, d_k, d_v = 4, 32, 32

    key = jax.random.PRNGKey(0)
    pkey, xkey = jax.random.split(key)
    params = init_params(pkey, d_model, d_inner, n_head, d_k, d_v)
    enc_input = jax.random.normal(xkey, (B, L, d_model), jnp.float32)

    enc_output, enc_slf_attn = encoder_layer_forward(enc_input, params)
    jax.block_until_ready((enc_output, enc_slf_attn))

    assert enc_output.shape == (B, L, d_model), enc_output.shape
    assert enc_slf_attn.shape == (n_head * B, L, L), enc_slf_attn.shape
    assert bool(jnp.all(jnp.isfinite(enc_output)))
    assert bool(jnp.all(jnp.isfinite(enc_slf_attn)))
    # softmax rows should (approximately) sum to 1
    row_sums = jnp.sum(enc_slf_attn, axis=-1)
    assert bool(jnp.all(jnp.abs(row_sums - 1.0) < 1e-2)), "softmax rows not normalized"
    print("KERNEL_OK")
</pallas_src>

<mosaic_0001>
module attributes {stable_mosaic.version = 11 : i64} {
  func.func @encoder_layer_kernel(%arg0: memref<2x16x128xf32, #tpu.memory_space<vmem>>, %arg1: memref<4x128x32xf32, #tpu.memory_space<vmem>>, %arg2: memref<4x1x32xf32, #tpu.memory_space<vmem>>, %arg3: memref<4x128x32xf32, #tpu.memory_space<vmem>>, %arg4: memref<4x1x32xf32, #tpu.memory_space<vmem>>, %arg5: memref<4x128x32xf32, #tpu.memory_space<vmem>>, %arg6: memref<4x1x32xf32, #tpu.memory_space<vmem>>, %arg7: memref<4x32x128xf32, #tpu.memory_space<vmem>>, %arg8: memref<1x128xf32, #tpu.memory_space<vmem>>, %arg9: memref<1x128xf32, #tpu.memory_space<vmem>>, %arg10: memref<1x128xf32, #tpu.memory_space<vmem>>, %arg11: memref<128x256xf32, #tpu.memory_space<vmem>>, %arg12: memref<1x256xf32, #tpu.memory_space<vmem>>, %arg13: memref<256x128xf32, #tpu.memory_space<vmem>>, %arg14: memref<1x128xf32, #tpu.memory_space<vmem>>, %arg15: memref<1x128xf32, #tpu.memory_space<vmem>>, %arg16: memref<1x128xf32, #tpu.memory_space<vmem>>, %arg17: memref<32x128xf32, #tpu.memory_space<vmem>>, %arg18: memref<8x16x16xf32, #tpu.memory_space<vmem>>, %arg19: memref<8x16x32xf32, #tpu.memory_space<vmem>>, %arg20: memref<8x16x32xf32, #tpu.memory_space<vmem>>, %arg21: memref<8x16x32xf32, #tpu.memory_space<vmem>>, %arg22: memref<8x16x32xf32, #tpu.memory_space<vmem>>, %arg23: memref<32x128xf32, #tpu.memory_space<vmem>>) attributes {dimension_semantics = [], scalar_prefetch = 0 : i64, scratch_operands = 5 : i64, tpu.core_type = #tpu.core_type<tc>} {
    %c0 = arith.constant 0 : index
    %c0_0 = arith.constant 0 : index
    %c0_1 = arith.constant 0 : index
    %0 = vector.load %arg1[%c0, %c0_0, %c0_1] : memref<4x128x32xf32, #tpu.memory_space<vmem>>, vector<1x128x32xf32>
    %1 = vector.shape_cast %0 : vector<1x128x32xf32> to vector<128x32xf32>
    %c0_2 = arith.constant 0 : index
    %c0_3 = arith.constant 0 : index
    %c0_4 = arith.constant 0 : index
    %2 = vector.load %arg3[%c0_2, %c0_3, %c0_4] : memref<4x128x32xf32, #tpu.memory_space<vmem>>, vector<1x128x32xf32>
    %3 = vector.shape_cast %2 : vector<1x128x32xf32> to vector<128x32xf32>
    %c0_5 = arith.constant 0 : index
    %c0_6 = arith.constant 0 : index
    %c0_7 = arith.constant 0 : index
    %4 = vector.load %arg5[%c0_5, %c0_6, %c0_7] : memref<4x128x32xf32, #tpu.memory_space<vmem>>, vector<1x128x32xf32>
    %5 = vector.shape_cast %4 : vector<1x128x32xf32> to vector<128x32xf32>
    %c0_8 = arith.constant 0 : index
    %c0_9 = arith.constant 0 : index
    %c0_10 = arith.constant 0 : index
    %6 = vector.load %arg2[%c0_8, %c0_9, %c0_10] : memref<4x1x32xf32, #tpu.memory_space<vmem>>, vector<1x1x32xf32>
    %7 = vector.shape_cast %6 : vector<1x1x32xf32> to vector<1x32xf32>
    %c0_11 = arith.constant 0 : index
    %c0_12 = arith.constant 0 : index
    %c0_13 = arith.constant 0 : index
    %8 = vector.load %arg4[%c0_11, %c0_12, %c0_13] : memref<4x1x32xf32, #tpu.memory_space<vmem>>, vector<1x1x32xf32>
    %9 = vector.shape_cast %8 : vector<1x1x32xf32> to vector<1x32xf32>
    %c0_14 = arith.constant 0 : index
    %c0_15 = arith.constant 0 : index
    %c0_16 = arith.constant 0 : index
    %10 = vector.load %arg6[%c0_14, %c0_15, %c0_16] : memref<4x1x32xf32, #tpu.memory_space<vmem>>, vector<1x1x32xf32>
    %11 = vector.shape_cast %10 : vector<1x1x32xf32> to vector<1x32xf32>
    %c0_17 = arith.constant 0 : index
    %c0_18 = arith.constant 0 : index
    %c0_19 = arith.constant 0 : index
    %12 = vector.load %arg0[%c0_17, %c0_18, %c0_19] : memref<2x16x128xf32, #tpu.memory_space<vmem>>, vector<1x16x128xf32>
    %13 = vector.shape_cast %12 : vector<1x16x128xf32> to vector<16x128xf32>
    %cst = arith.constant dense<0.000000e+00> : vector<16x32xf32>
    %14 = tpu.matmul %13, %1, %cst {dimension_numbers = #tpu.dot_dimension_numbers<[1], [0], [0], [1], [0, 0, 1, 1], [], []>} : vector<16x128xf32>, vector<128x32xf32>, vector<16x32xf32> -> vector<16x32xf32>
    %15 = vector.broadcast %7 : vector<1x32xf32> to vector<16x32xf32>
    %16 = arith.addf %14, %15 : vector<16x32xf32>
    %c0_20 = arith.constant 0 : index
    %c0_21 = arith.constant 0 : index
    %c0_22 = arith.constant 0 : index
    %17 = vector.load %arg19[%c0_20, %c0_21, %c0_22] : memref<8x16x32xf32, #tpu.memory_space<vmem>>, vector<1x16x32xf32>
    %18 = vector.shape_cast %17 : vector<1x16x32xf32> to vector<16x32xf32>
    %19 = vector.shape_cast %16 : vector<16x32xf32> to vector<1x16x32xf32>
    tpu.vector_store %arg19[%c0_20, %c0_21, %c0_22], %19 {strides = array<i32>} : memref<8x16x32xf32, #tpu.memory_space<vmem>>, vector<1x16x32xf32>,
    %cst_23 = arith.constant dense<0.000000e+00> : vector<16x32xf32>
    %20 = tpu.matmul %13, %3, %cst_23 {dimension_numbers = #tpu.dot_dimension_numbers<[1], [0], [0], [1], [0, 0, 1, 1], [], []>} : vector<16x128xf32>, vector<128x32xf32>, vector<16x32xf32> -> vector<16x32xf32>
    %21 = vector.broadcast %9 : vector<1x32xf32> to vector<16x32xf32>
    %22 = arith.addf %20, %21 : vector<16x32xf32>
    %c0_24 = arith.constant 0 : index
    %c0_25 = arith.constant 0 : index
    %c0_26 = arith.constant 0 : index
    %23 = vector.load %arg20[%c0_24, %c0_25, %c0_26] : memref<8x16x32xf32, #tpu.memory_space<vmem>>, vector<1x16x32xf32>
    %24 = vector.shape_cast %23 : vector<1x16x32xf32> to vector<16x32xf32>
    %25 = vector.shape_cast %22 : vector<16x32xf32> to vector<1x16x32xf32>
    tpu.vector_store %arg20[%c0_24, %c0_25, %c0_26], %25 {strides = array<i32>} : memref<8x16x32xf32, #tpu.memory_space<vmem>>, vector<1x16x32xf32>,
    %cst_27 = arith.constant dense<0.000000e+00> : vector<16x32xf32>
    %26 = tpu.matmul %13, %5, %cst_27 {dimension_numbers = #tpu.dot_dimension_numbers<[1], [0], [0], [1], [0, 0, 1, 1], [], []>} : vector<16x128xf32>, vector<128x32xf32>, vector<16x32xf32> -> vector<16x32xf32>
    %27 = vector.broadcast %11 : vector<1x32xf32> to vector<16x32xf32>
    %28 = arith.addf %26, %27 : vector<16x32xf32>
    %c0_28 = arith.constant 0 : index
    %c0_29 = arith.constant 0 : index
    %c0_30 = arith.constant 0 : index
    %29 = vector.load %arg21[%c0_28, %c0_29, %c0_30] : memref<8x16x32xf32, #tpu.memory_space<vmem>>, vector<1x16x32xf32>
    %30 = vector.shape_cast %29 : vector<1x16x32xf32> to vector<16x32xf32>
    %31 = vector.shape_cast %28 : vector<16x32xf32> to vector<1x16x32xf32>
    tpu.vector_store %arg21[%c0_28, %c0_29, %c0_30], %31 {strides = array<i32>} : memref<8x16x32xf32, #tpu.memory_space<vmem>>, vector<1x16x32xf32>,
    %c1 = arith.constant 1 : index
    %c0_31 = arith.constant 0 : index
    %c0_32 = arith.constant 0 : index
    %32 = vector.load %arg0[%c1, %c0_31, %c0_32] : memref<2x16x128xf32, #tpu.memory_space<vmem>>, vector<1x16x128xf32>
    %33 = vector.shape_cast %32 : vector<1x16x128xf32> to vector<16x128xf32>
    %cst_33 = arith.constant dense<0.000000e+00> : vector<16x32xf32>
    %34 = tpu.matmul %33, %1, %cst_33 {dimension_numbers = #tpu.dot_dimension_numbers<[1], [0], [0], [1], [0, 0, 1, 1], [], []>} : vector<16x128xf32>, vector<128x32xf32>, vector<16x32xf32> -> vector<16x32xf32>
    %35 = vector.broadcast %7 : vector<1x32xf32> to vector<16x32xf32>
    %36 = arith.addf %34, %35 : vector<16x32xf32>
    %c1_34 = arith.constant 1 : index
    %c0_35 = arith.constant 0 : index
    %c0_36 = arith.constant 0 : index
    %37 = vector.load %arg19[%c1_34, %c0_35, %c0_36] : memref<8x16x32xf32, #tpu.memory_space<vmem>>, vector<1x16x32xf32>
    %38 = vector.shape_cast %37 : vector<1x16x32xf32> to vector<16x32xf32>
    %39 = vector.shape_cast %36 : vector<16x32xf32> to vector<1x16x32xf32>
    tpu.vector_store %arg19[%c1_34, %c0_35, %c0_36], %39 {strides = array<i32>} : memref<8x16x32xf32, #tpu.memory_space<vmem>>, vector<1x16x32xf32>,
    %cst_37 = arith.constant dense<0.000000e+00> : vector<16x32xf32>
    %40 = tpu.matmul %33, %3, %cst_37 {dimension_numbers = #tpu.dot_dimension_numbers<[1], [0], [0], [1], [0, 0, 1, 1], [], []>} : vector<16x128xf32>, vector<128x32xf32>, vector<16x32xf32> -> vector<16x32xf32>
    %41 = vector.broadcast %9 : vector<1x32xf32> to vector<16x32xf32>
    %42 = arith.addf %40, %41 : vector<16x32xf32>
    %c1_38 = arith.constant 1 : index
    %c0_39 = arith.constant 0 : index
    %c0_40 = arith.constant 0 : index
    %43 = vector.load %arg20[%c1_38, %c0_39, %c0_40] : memref<8x16x32xf32, #tpu.memory_space<vmem>>, vector<1x16x32xf32>
    %44 = vector.shape_cast %43 : vector<1x16x32xf32> to vector<16x32xf32>
    %45 = vector.shape_cast %42 : vector<16x32xf32> to vector<1x16x32xf32>
    tpu.vector_store %arg20[%c1_38, %c0_39, %c0_40], %45 {strides = array<i32>} : memref<8x16x32xf32, #tpu.memory_space<vmem>>, vector<1x16x32xf32>,
    %cst_41 = arith.constant dense<0.000000e+00> : vector<16x32xf32>
    %46 = tpu.matmul %33, %5, %cst_41 {dimension_numbers = #tpu.dot_dimension_numbers<[1], [0], [0], [1], [0, 0, 1, 1], [], []>} : vector<16x128xf32>, vector<128x32xf32>, vector<16x32xf32> -> vector<16x32xf32>
    %47 = vector.broadcast %11 : vector<1x32xf32> to vector<16x32xf32>
    %48 = arith.addf %46, %47 : vector<16x32xf32>
    %c1_42 = arith.constant 1 : index
    %c0_43 = arith.constant 0 : index
    %c0_44 = arith.constant 0 : index
    %49 = vector.load %arg21[%c1_42, %c0_43, %c0_44] : memref<8x16x32xf32, #tpu.memory_space<vmem>>, vector<1x16x32xf32>
    %50 = vector.shape_cast %49 : vector<1x16x32xf32> to vector<16x32xf32>
    %51 = vector.shape_cast %48 : vector<16x32xf32> to vector<1x16x32xf32>
    tpu.vector_store %arg21[%c1_42, %c0_43, %c0_44], %51 {strides = array<i32>} : memref<8x16x32xf32, #tpu.memory_space<vmem>>, vector<1x16x32xf32>,
    %c1_45 = arith.constant 1 : index
    %c0_46 = arith.constant 0 : index
    %c0_47 = arith.constant 0 : index
    %52 = vector.load %arg1[%c1_45, %c0_46, %c0_47] : memref<4x128x32xf32, #tpu.memory_space<vmem>>, vector<1x128x32xf32>
    %53 = vector.shape_cast %52 : vector<1x128x32xf32> to vector<128x32xf32>
    %c1_48 = arith.constant 1 : index
    %c0_49 = arith.constant 0 : index
    %c0_50 = arith.constant 0 : index
    %54 = vector.load %arg3[%c1_48, %c0_49, %c0_50] : memref<4x128x32xf32, #tpu.memory_space<vmem>>, vector<1x128x32xf32>
    %55 = vector.shape_cast %54 : vector<1x128x32xf32> to vector<128x32xf32>
    %c1_51 = arith.constant 1 : index
    %c0_52 = arith.constant 0 : index
    %c0_53 = arith.constant 0 : index
    %56 = vector.load %arg5[%c1_51, %c0_52, %c0_53] : memref<4x128x32xf32, #tpu.memory_space<vmem>>, vector<1x128x32xf32>
    %57 = vector.shape_cast %56 : vector<1x128x32xf32> to vector<128x32xf32>
    %c1_54 = arith.constant 1 : index
    %c0_55 = arith.constant 0 : index
    %c0_56 = arith.constant 0 : index
    %58 = vector.load %arg2[%c1_54, %c0_55, %c0_56] : memref<4x1x32xf32, #tpu.memory_space<vmem>>, vector<1x1x32xf32>
    %59 = vector.shape_cast %58 : vector<1x1x32xf32> to vector<1x32xf32>
    %c1_57 = arith.constant 1 : index
    %c0_58 = arith.constant 0 : index
    %c0_59 = arith.constant 0 : index
    %60 = vector.load %arg4[%c1_57, %c0_58, %c0_59] : memref<4x1x32xf32, #tpu.memory_space<vmem>>, vector<1x1x32xf32>
    %61 = vector.shape_cast %60 : vector<1x1x32xf32> to vector<1x32xf32>
    %c1_60 = arith.constant 1 : index
    %c0_61 = arith.constant 0 : index
    %c0_62 = arith.constant 0 : index
    %62 = vector.load %arg6[%c1_60, %c0_61, %c0_62] : memref<4x1x32xf32, #tpu.memory_space<vmem>>, vector<1x1x32xf32>
    %63 = vector.shape_cast %62 : vector<1x1x32xf32> to vector<1x32xf32>
    %c0_63 = arith.constant 0 : index
    %c0_64 = arith.constant 0 : index
    %c0_65 = arith.constant 0 : index
    %64 = vector.load %arg0[%c0_63, %c0_64, %c0_65] : memref<2x16x128xf32, #tpu.memory_space<vmem>>, vector<1x16x128xf32>
    %65 = vector.shape_cast %64 : vector<1x16x128xf32> to vector<16x128xf32>
    %cst_66 = arith.constant dense<0.000000e+00> : vector<16x32xf32>
    %66 = tpu.matmul %65, %53, %cst_66 {dimension_numbers = #tpu.dot_dimension_numbers<[1], [0], [0], [1], [0, 0, 1, 1], [], []>} : vector<16x128xf32>, vector<128x32xf32>, vector<16x32xf32> -> vector<16x32xf32>
    %67 = vector.broadcast %59 : vector<1x32xf32> to vector<16x32xf32>
    %68 = arith.addf %66, %67 : vector<16x32xf32>
    %c2 = arith.constant 2 : index
    %c0_67 = arith.constant 0 : index
    %c0_68 = arith.constant 0 : index
    %69 = vector.load %arg19[%c2, %c0_67, %c0_68] : memref<8x16x32xf32, #tpu.memory_space<vmem>>, vector<1x16x32xf32>
    %70 = vector.shape_cast %69 : vector<1x16x32xf32> to vector<16x32xf32>
    %71 = vector.shape_cast %68 : vector<16x32xf32> to vector<1x16x32xf32>
    tpu.vector_store %arg19[%c2, %c0_67, %c0_68], %71 {strides = array<i32>} : memref<8x16x32xf32, #tpu.memory_space<vmem>>, vector<1x16x32xf32>,
    %cst_69 = arith.constant dense<0.000000e+00> : vector<16x32xf32>
    %72 = tpu.matmul %65, %55, %cst_69 {dimension_numbers = #tpu.dot_dimension_numbers<[1], [0], [0], [1], [0, 0, 1, 1], [], []>} : vector<16x128xf32>, vector<128x32xf32>, vector<16x32xf32> -> vector<16x32xf32>
    %73 = vector.broadcast %61 : vector<1x32xf32> to vector<16x32xf32>
    %74 = arith.addf %72, %73 : vector<16x32xf32>
    %c2_70 = arith.constant 2 : index
    %c0_71 = arith.constant 0 : index
    %c0_72 = arith.constant 0 : index
    %75 = vector.load %arg20[%c2_70, %c0_71, %c0_72] : memref<8x16x32xf32, #tpu.memory_space<vmem>>, vector<1x16x32xf32>
    %76 = vector.shape_cast %75 : vector<1x16x32xf32> to vector<16x32xf32>
    %77 = vector.shape_cast %74 : vector<16x32xf32> to vector<1x16x32xf32>
    tpu.vector_store %arg20[%c2_70, %c0_71, %c0_72], %77 {strides = array<i32>} : memref<8x16x32xf32, #tpu.memory_space<vmem>>, vector<1x16x32xf32>,
    %cst_73 = arith.constant dense<0.000000e+00> : vector<16x32xf32>
    %78 = tpu.matmul %65, %57, %cst_73 {dimension_numbers = #tpu.dot_dimension_numbers<[1], [0], [0], [1], [0, 0, 1, 1], [], []>} : vector<16x128xf32>, vector<128x32xf32>, vector<16x32xf32> -> vector<16x32xf32>
    %79 = vector.broadcast %63 : vector<1x32xf32> to vector<16x32xf32>
    %80 = arith.addf %78, %79 : vector<16x32xf32>
    %c2_74 = arith.constant 2 : index
    %c0_75 = arith.constant 0 : index
    %c0_76 = arith.constant 0 : index
    %81 = vector.load %arg21[%c2_74, %c0_75, %c0_76] : memref<8x16x32xf32, #tpu.memory_space<vmem>>, vector<1x16x32xf32>
    %82 = vector.shape_cast %81 : vector<1x16x32xf32> to vector<16x32xf32>
    %83 = vector.shape_cast %80 : vector<16x32xf32> to vector<1x16x32xf32>
    tpu.vector_store %arg21[%c2_74, %c0_75, %c0_76], %83 {strides = array<i32>} : memref<8x16x32xf32, #tpu.memory_space<vmem>>, vector<1x16x32xf32>,
    %c1_77 = arith.constant 1 : index
    %c0_78 = arith.constant 0 : index
    %c0_79 = arith.constant 0 : index
    %84 = vector.load %arg0[%c1_77, %c0_78, %c0_79] : memref<2x16x128xf32, #tpu.memory_space<vmem>>, vector<1x16x128xf32>
    %85 = vector.shape_cast %84 : vector<1x16x128xf32> to vector<16x128xf32>
    %cst_80 = arith.constant dense<0.000000e+00> : vector<16x32xf32>
    %86 = tpu.matmul %85, %53, %cst_80 {dimension_numbers = #tpu.dot_dimension_numbers<[1], [0], [0], [1], [0, 0, 1, 1], [], []>} : vector<16x128xf32>, vector<128x32xf32>, vector<16x32xf32> -> vector<16x32xf32>
    %87 = vector.broadcast %59 : vector<1x32xf32> to vector<16x32xf32>
    %88 = arith.addf %86, %87 : vector<16x32xf32>
    %c3 = arith.constant 3 : index
    %c0_81 = arith.constant 0 : index
    %c0_82 = arith.constant 0 : index
    %89 = vector.load %arg19[%c3, %c0_81, %c0_82] : memref<8x16x32xf32, #tpu.memory_space<vmem>>, vector<1x16x32xf32>
    %90 = vector.shape_cast %89 : vector<1x16x32xf32> to vector<16x32xf32>
    %91 = vector.shape_cast %88 : vector<16x32xf32> to vector<1x16x32xf32>
    tpu.vector_store %arg19[%c3, %c0_81, %c0_82], %91 {strides = array<i32>} : memref<8x16x32xf32, #tpu.memory_space<vmem>>, vector<1x16x32xf32>,
    %cst_83 = arith.constant dense<0.000000e+00> : vector<16x32xf32>
    %92 = tpu.matmul %85, %55, %cst_83 {dimension_numbers = #tpu.dot_dimension_numbers<[1], [0], [0], [1], [0, 0, 1, 1], [], []>} : vector<16x128xf32>, vector<128x32xf32>, vector<16x32xf32> -> vector<16x32xf32>
    %93 = vector.broadcast %61 : vector<1x32xf32> to vector<16x32xf32>
    %94 = arith.addf %92, %93 : vector<16x32xf32>
    %c3_84 = arith.constant 3 : index
    %c0_85 = arith.constant 0 : index
    %c0_86 = arith.constant 0 : index
    %95 = vector.load %arg20[%c3_84, %c0_85, %c0_86] : memref<8x16x32xf32, #tpu.memory_space<vmem>>, vector<1x16x32xf32>
    %96 = vector.shape_cast %95 : vector<1x16x32xf32> to vector<16x32xf32>
    %97 = vector.shape_cast %94 : vector<16x32xf32> to vector<1x16x32xf32>
    tpu.vector_store %arg20[%c3_84, %c0_85, %c0_86], %97 {strides = array<i32>} : memref<8x16x32xf32, #tpu.memory_space<vmem>>, vector<1x16x32xf32>,
    %cst_87 = arith.constant dense<0.000000e+00> : vector<16x32xf32>
    %98 = tpu.matmul %85, %57, %cst_87 {dimension_numbers = #tpu.dot_dimension_numbers<[1], [0], [0], [1], [0, 0, 1, 1], [], []>} : vector<16x128xf32>, vector<128x32xf32>, vector<16x32xf32> -> vector<16x32xf32>
    %99 = vector.broadcast %63 : vector<1x32xf32> to vector<16x32xf32>
    %100 = arith.addf %98, %99 : vector<16x32xf32>
    %c3_88 = arith.constant 3 : index
    %c0_89 = arith.constant 0 : index
    %c0_90 = arith.constant 0 : index
    %101 = vector.load %arg21[%c3_88, %c0_89, %c0_90] : memref<8x16x32xf32, #tpu.memory_space<vmem>>, vector<1x16x32xf32>
    %102 = vector.shape_cast %101 : vector<1x16x32xf32> to vector<16x32xf32>
    %103 = vector.shape_cast %100 : vector<16x32xf32> to vector<1x16x32xf32>
    tpu.vector_store %arg21[%c3_88, %c0_89, %c0_90], %103 {strides = array<i32>} : memref<8x16x32xf32, #tpu.memory_space<vmem>>, vector<1x16x32xf32>,
    %c2_91 = arith.constant 2 : index
    %c0_92 = arith.constant 0 : index
    %c0_93 = arith.constant 0 : index
    %104 = vector.load %arg1[%c2_91, %c0_92, %c0_93] : memref<4x128x32xf32, #tpu.memory_space<vmem>>, vector<1x128x32xf32>
    %105 = vector.shape_cast %104 : vector<1x128x32xf32> to vector<128x32xf32>
    %c2_94 = arith.constant 2 : index
    %c0_95 = arith.constant 0 : index
    %c0_96 = arith.constant 0 : index
    %106 = vector.load %arg3[%c2_94, %c0_95, %c0_96] : memref<4x128x32xf32, #tpu.memory_space<vmem>>, vector<1x128x32xf32>
    %107 = vector.shape_cast %106 : vector<1x128x32xf32> to vector<128x32xf32>
    %c2_97 = arith.constant 2 : index
    %c0_98 = arith.constant 0 : index
    %c0_99 = arith.constant 0 : index
    %108 = vector.load %arg5[%c2_97, %c0_98, %c0_99] : memref<4x128x32xf32, #tpu.memory_space<vmem>>, vector<1x128x32xf32>
    %109 = vector.shape_cast %108 : vector<1x128x32xf32> to vector<128x32xf32>
    %c2_100 = arith.constant 2 : index
    %c0_101 = arith.constant 0 : index
    %c0_102 = arith.constant 0 : index
    %110 = vector.load %arg2[%c2_100, %c0_101, %c0_102] : memref<4x1x32xf32, #tpu.memory_space<vmem>>, vector<1x1x32xf32>
    %111 = vector.shape_cast %110 : vector<1x1x32xf32> to vector<1x32xf32>
    %c2_103 = arith.constant 2 : index
    %c0_104 = arith.constant 0 : index
    %c0_105 = arith.constant 0 : index
    %112 = vector.load %arg4[%c2_103, %c0_104, %c0_105] : memref<4x1x32xf32, #tpu.memory_space<vmem>>, vector<1x1x32xf32>
    %113 = vector.shape_cast %112 : vector<1x1x32xf32> to vector<1x32xf32>
    %c2_106 = arith.constant 2 : index
    %c0_107 = arith.constant 0 : index
    %c0_108 = arith.constant 0 : index
    %114 = vector.load %arg6[%c2_106, %c0_107, %c0_108] : memref<4x1x32xf32, #tpu.memory_space<vmem>>, vector<1x1x32xf32>
    %115 = vector.shape_cast %114 : vector<1x1x32xf32> to vector<1x32xf32>
    %c0_109 = arith.constant 0 : index
    %c0_110 = arith.constant 0 : index
    %c0_111 = arith.constant 0 : index
    %116 = vector.load %arg0[%c0_109, %c0_110, %c0_111] : memref<2x16x128xf32, #tpu.memory_space<vmem>>, vector<1x16x128xf32>
    %117 = vector.shape_cast %116 : vector<1x16x128xf32> to vector<16x128xf32>
    %cst_112 = arith.constant dense<0.000000e+00> : vector<16x32xf32>
    %118 = tpu.matmul %117, %105, %cst_112 {dimension_numbers = #tpu.dot_dimension_numbers<[1], [0], [0], [1], [0, 0, 1, 1], [], []>} : vector<16x128xf32>, vector<128x32xf32>, vector<16x32xf32> -> vector<16x32xf32>
    %119 = vector.broadcast %111 : vector<1x32xf32> to vector<16x32xf32>
    %120 = arith.addf %118, %119 : vector<16x32xf32>
    %c4 = arith.constant 4 : index
    %c0_113 = arith.constant 0 : index
    %c0_114 = arith.constant 0 : index
    %121 = vector.load %arg19[%c4, %c0_113, %c0_114] : memref<8x16x32xf32, #tpu.memory_space<vmem>>, vector<1x16x32xf32>
    %122 = vector.shape_cast %121 : vector<1x16x32xf32> to vector<16x32xf32>
    %123 = vector.shape_cast %120 : vector<16x32xf32> to vector<1x16x32xf32>
    tpu.vector_store %arg19[%c4, %c0_113, %c0_114], %123 {strides = array<i32>} : memref<8x16x32xf32, #tpu.memory_space<vmem>>, vector<1x16x32xf32>,
    %cst_115 = arith.constant dense<0.000000e+00> : vector<16x32xf32>
    %124 = tpu.matmul %117, %107, %cst_115 {dimension_numbers = #tpu.dot_dimension_numbers<[1], [0], [0], [1], [0, 0, 1, 1], [], []>} : vector<16x128xf32>, vector<128x32xf32>, vector<16x32xf32> -> vector<16x32xf32>
    %125 = vector.broadcast %113 : vector<1x32xf32> to vector<16x32xf32>
    %126 = arith.addf %124, %125 : vector<16x32xf32>
    %c4_116 = arith.constant 4 : index
    %c0_117 = arith.constant 0 : index
    %c0_118 = arith.constant 0 : index
    %127 = vector.load %arg20[%c4_116, %c0_117, %c0_118] : memref<8x16x32xf32, #tpu.memory_space<vmem>>, vector<1x16x32xf32>
    %128 = vector.shape_cast %127 : vector<1x16x32xf32> to vector<16x32xf32>
    %129 = vector.shape_cast %126 : vector<16x32xf32> to vector<1x16x32xf32>
    tpu.vector_store %arg20[%c4_116, %c0_117, %c0_118], %129 {strides = array<i32>} : memref<8x16x32xf32, #tpu.memory_space<vmem>>, vector<1x16x32xf32>,
    %cst_119 = arith.constant dense<0.000000e+00> : vector<16x32xf32>
    %130 = tpu.matmul %117, %109, %cst_119 {dimension_numbers = #tpu.dot_dimension_numbers<[1], [0], [0], [1], [0, 0, 1, 1], [], []>} : vector<16x128xf32>, vector<128x32xf32>, vector<16x32xf32> -> vector<16x32xf32>
    %131 = vector.broadcast %115 : vector<1x32xf32> to vector<16x32xf32>
    %132 = arith.addf %130, %131 : vector<16x32xf32>
    %c4_120 = arith.constant 4 : index
    %c0_121 = arith.constant 0 : index
    %c0_122 = arith.constant 0 : index
    %133 = vector.load %arg21[%c4_120, %c0_121, %c0_122] : memref<8x16x32xf32, #tpu.memory_space<vmem>>, vector<1x16x32xf32>
    %134 = vector.shape_cast %133 : vector<1x16x32xf32> to vector<16x32xf32>
    %135 = vector.shape_cast %132 : vector<16x32xf32> to vector<1x16x32xf32>
    tpu.vector_store %arg21[%c4_120, %c0_121, %c0_122], %135 {strides = array<i32>} : memref<8x16x32xf32, #tpu.memory_space<vmem>>, vector<1x16x32xf32>,
    %c1_123 = arith.constant 1 : index
    %c0_124 = arith.constant 0 : index
    %c0_125 = arith.constant 0 : index
    %136 = vector.load %arg0[%c1_123, %c0_124, %c0_125] : memref<2x16x128xf32, #tpu.memory_space<vmem>>, vector<1x16x128xf32>
    %137 = vector.shape_cast %136 : vector<1x16x128xf32> to vector<16x128xf32>
    %cst_126 = arith.constant dense<0.000000e+00> : vector<16x32xf32>
    %138 = tpu.matmul %137, %105, %cst_126 {dimension_numbers = #tpu.dot_dimension_numbers<[1], [0], [0], [1], [0, 0, 1, 1], [], []>} : vector<16x128xf32>, vector<128x32xf32>, vector<16x32xf32> -> vector<16x32xf32>
    %139 = vector.broadcast %111 : vector<1x32xf32> to vector<16x32xf32>
    %140 = arith.addf %138, %139 : vector<16x32xf32>
    %c5 = arith.constant 5 : index
    %c0_127 = arith.constant 0 : index
    %c0_128 = arith.constant 0 : index
    %141 = vector.load %arg19[%c5, %c0_127, %c0_128] : memref<8x16x32xf32, #tpu.memory_space<vmem>>, vector<1x16x32xf32>
    %142 = vector.shape_cast %141 : vector<1x16x32xf32> to vector<16x32xf32>
    %143 = vector.shape_cast %140 : vector<16x32xf32> to vector<1x16x32xf32>
    tpu.vector_store %arg19[%c5, %c0_127, %c0_128], %143 {strides = array<i32>} : memref<8x16x32xf32, #tpu.memory_space<vmem>>, vector<1x16x32xf32>,
    %cst_129 = arith.constant dense<0.000000e+00> : vector<16x32xf32>
    %144 = tpu.matmul %137, %107, %cst_129 {dimension_numbers = #tpu.dot_dimension_numbers<[1], [0], [0], [1], [0, 0, 1, 1], [], []>} : vector<16x128xf32>, vector<128x32xf32>, vector<16x32xf32> -> vector<16x32xf32>
    %145 = vector.broadcast %113 : vector<1x32xf32> to vector<16x32xf32>
    %146 = arith.addf %144, %145 : vector<16x32xf32>
    %c5_130 = arith.constant 5 : index
    %c0_131 = arith.constant 0 : index
    %c0_132 = arith.constant 0 : index
    %147 = vector.load %arg20[%c5_130, %c0_131, %c0_132] : memref<8x16x32xf32, #tpu.memory_space<vmem>>, vector<1x16x32xf32>
    %148 = vector.shape_cast %147 : vector<1x16x32xf32> to vector<16x32xf32>
    %149 = vector.shape_cast %146 : vector<16x32xf32> to vector<1x16x32xf32>
    tpu.vector_store %arg20[%c5_130, %c0_131, %c0_132], %149 {strides = array<i32>} : memref<8x16x32xf32, #tpu.memory_space<vmem>>, vector<1x16x32xf32>,
    %cst_133 = arith.constant dense<0.000000e+00> : vector<16x32xf32>
    %150 = tpu.matmul %137, %109, %cst_133 {dimension_numbers = #tpu.dot_dimension_numbers<[1], [0], [0], [1], [0, 0, 1, 1], [], []>} : vector<16x128xf32>, vector<128x32xf32>, vector<16x32xf32> -> vector<16x32xf32>
    %151 = vector.broadcast %115 : vector<1x32xf32> to vector<16x32xf32>
    %152 = arith.addf %150, %151 : vector<16x32xf32>
    %c5_134 = arith.constant 5 : index
    %c0_135 = arith.constant 0 : index
    %c0_136 = arith.constant 0 : index
    %153 = vector.load %arg21[%c5_134, %c0_135, %c0_136] : memref<8x16x32xf32, #tpu.memory_space<vmem>>, vector<1x16x32xf32>
    %154 = vector.shape_cast %153 : vector<1x16x32xf32> to vector<16x32xf32>
    %155 = vector.shape_cast %152 : vector<16x32xf32> to vector<1x16x32xf32>
    tpu.vector_store %arg21[%c5_134, %c0_135, %c0_136], %155 {strides = array<i32>} : memref<8x16x32xf32, #tpu.memory_space<vmem>>, vector<1x16x32xf32>,
    %c3_137 = arith.constant 3 : index
    %c0_138 = arith.constant 0 : index
    %c0_139 = arith.constant 0 : index
    %156 = vector.load %arg1[%c3_137, %c0_138, %c0_139] : memref<4x128x32xf32, #tpu.memory_space<vmem>>, vector<1x128x32xf32>
    %157 = vector.shape_cast %156 : vector<1x128x32xf32> to vector<128x32xf32>
    %c3_140 = arith.constant 3 : index
    %c0_141 = arith.constant 0 : index
    %c0_142 = arith.constant 0 : index
    %158 = vector.load %arg3[%c3_140, %c0_141, %c0_142] : memref<4x128x32xf32, #tpu.memory_space<vmem>>, vector<1x128x32xf32>
    %159 = vector.shape_cast %158 : vector<1x128x32xf32> to vector<128x32xf32>
    %c3_143 = arith.constant 3 : index
    %c0_144 = arith.constant 0 : index
    %c0_145 = arith.constant 0 : index
    %160 = vector.load %arg5[%c3_143, %c0_144, %c0_145] : memref<4x128x32xf32, #tpu.memory_space<vmem>>, vector<1x128x32xf32>
    %161 = vector.shape_cast %160 : vector<1x128x32xf32> to vector<128x32xf32>
    %c3_146 = arith.constant 3 : index
    %c0_147 = arith.constant 0 : index
    %c0_148 = arith.constant 0 : index
    %162 = vector.load %arg2[%c3_146, %c0_147, %c0_148] : memref<4x1x32xf32, #tpu.memory_space<vmem>>, vector<1x1x32xf32>
    %163 = vector.shape_cast %162 : vector<1x1x32xf32> to vector<1x32xf32>
    %c3_149 = arith.constant 3 : index
    %c0_150 = arith.constant 0 : index
    %c0_151 = arith.constant 0 : index
    %164 = vector.load %arg4[%c3_149, %c0_150, %c0_151] : memref<4x1x32xf32, #tpu.memory_space<vmem>>, vector<1x1x32xf32>
    %165 = vector.shape_cast %164 : vector<1x1x32xf32> to vector<1x32xf32>
    %c3_152 = arith.constant 3 : index
    %c0_153 = arith.constant 0 : index
    %c0_154 = arith.constant 0 : index
    %166 = vector.load %arg6[%c3_152, %c0_153, %c0_154] : memref<4x1x32xf32, #tpu.memory_space<vmem>>, vector<1x1x32xf32>
    %167 = vector.shape_cast %166 : vector<1x1x32xf32> to vector<1x32xf32>
    %c0_155 = arith.constant 0 : index
    %c0_156 = arith.constant 0 : index
    %c0_157 = arith.constant 0 : index
    %168 = vector.load %arg0[%c0_155, %c0_156, %c0_157] : memref<2x16x128xf32, #tpu.memory_space<vmem>>, vector<1x16x128xf32>
    %169 = vector.shape_cast %168 : vector<1x16x128xf32> to vector<16x128xf32>
    %cst_158 = arith.constant dense<0.000000e+00> : vector<16x32xf32>
    %170 = tpu.matmul %169, %157, %cst_158 {dimension_numbers = #tpu.dot_dimension_numbers<[1], [0], [0], [1], [0, 0, 1, 1], [], []>} : vector<16x128xf32>, vector<128x32xf32>, vector<16x32xf32> -> vector<16x32xf32>
    %171 = vector.broadcast %163 : vector<1x32xf32> to vector<16x32xf32>
    %172 = arith.addf %170, %171 : vector<16x32xf32>
    %c6 = arith.constant 6 : index
    %c0_159 = arith.constant 0 : index
    %c0_160 = arith.constant 0 : index
    %173 = vector.load %arg19[%c6, %c0_159, %c0_160] : memref<8x16x32xf32, #tpu.memory_space<vmem>>, vector<1x16x32xf32>
    %174 = vector.shape_cast %173 : vector<1x16x32xf32> to vector<16x32xf32>
    %175 = vector.shape_cast %172 : vector<16x32xf32> to vector<1x16x32xf32>
    tpu.vector_store %arg19[%c6, %c0_159, %c0_160], %175 {strides = array<i32>} : memref<8x16x32xf32, #tpu.memory_space<vmem>>, vector<1x16x32xf32>,
    %cst_161 = arith.constant dense<0.000000e+00> : vector<16x32xf32>
    %176 = tpu.matmul %169, %159, %cst_161 {dimension_numbers = #tpu.dot_dimension_numbers<[1], [0], [0], [1], [0, 0, 1, 1], [], []>} : vector<16x128xf32>, vector<128x32xf32>, vector<16x32xf32> -> vector<16x32xf32>
    %177 = vector.broadcast %165 : vector<1x32xf32> to vector<16x32xf32>
    %178 = arith.addf %176, %177 : vector<16x32xf32>
    %c6_162 = arith.constant 6 : index
    %c0_163 = arith.constant 0 : index
    %c0_164 = arith.constant 0 : index
    %179 = vector.load %arg20[%c6_162, %c0_163, %c0_164] : memref<8x16x32xf32, #tpu.memory_space<vmem>>, vector<1x16x32xf32>
    %180 = vector.shape_cast %179 : vector<1x16x32xf32> to vector<16x32xf32>
    %181 = vector.shape_cast %178 : vector<16x32xf32> to vector<1x16x32xf32>
    tpu.vector_store %arg20[%c6_162, %c0_163, %c0_164], %181 {strides = array<i32>} : memref<8x16x32xf32, #tpu.memory_space<vmem>>, vector<1x16x32xf32>,
    %cst_165 = arith.constant dense<0.000000e+00> : vector<16x32xf32>
    %182 = tpu.matmul %169, %161, %cst_165 {dimension_numbers = #tpu.dot_dimension_numbers<[1], [0], [0], [1], [0, 0, 1, 1], [], []>} : vector<16x128xf32>, vector<128x32xf32>, vector<16x32xf32> -> vector<16x32xf32>
    %183 = vector.broadcast %167 : vector<1x32xf32> to vector<16x32xf32>
    %184 = arith.addf %182, %183 : vector<16x32xf32>
    %c6_166 = arith.constant 6 : index
    %c0_167 = arith.constant 0 : index
    %c0_168 = arith.constant 0 : index
    %185 = vector.load %arg21[%c6_166, %c0_167, %c0_168] : memref<8x16x32xf32, #tpu.memory_space<vmem>>, vector<1x16x32xf32>
    %186 = vector.shape_cast %185 : vector<1x16x32xf32> to vector<16x32xf32>
    %187 = vector.shape_cast %184 : vector<16x32xf32> to vector<1x16x32xf32>
    tpu.vector_store %arg21[%c6_166, %c0_167, %c0_168], %187 {strides = array<i32>} : memref<8x16x32xf32, #tpu.memory_space<vmem>>, vector<1x16x32xf32>,
    %c1_169 = arith.constant 1 : index
    %c0_170 = arith.constant 0 : index
    %c0_171 = arith.constant 0 : index
    %188 = vector.load %arg0[%c1_169, %c0_170, %c0_171] : memref<2x16x128xf32, #tpu.memory_space<vmem>>, vector<1x16x128xf32>
    %189 = vector.shape_cast %188 : vector<1x16x128xf32> to vector<16x128xf32>
    %cst_172 = arith.constant dense<0.000000e+00> : vector<16x32xf32>
    %190 = tpu.matmul %189, %157, %cst_172 {dimension_numbers = #tpu.dot_dimension_numbers<[1], [0], [0], [1], [0, 0, 1, 1], [], []>} : vector<16x128xf32>, vector<128x32xf32>, vector<16x32xf32> -> vector<16x32xf32>
    %191 = vector.broadcast %163 : vector<1x32xf32> to vector<16x32xf32>
    %192 = arith.addf %190, %191 : vector<16x32xf32>
    %c7 = arith.constant 7 : index
    %c0_173 = arith.constant 0 : index
    %c0_174 = arith.constant 0 : index
    %193 = vector.load %arg19[%c7, %c0_173, %c0_174] : memref<8x16x32xf32, #tpu.memory_space<vmem>>, vector<1x16x32xf32>
    %194 = vector.shape_cast %193 : vector<1x16x32xf32> to vector<16x32xf32>
    %195 = vector.shape_cast %192 : vector<16x32xf32> to vector<1x16x32xf32>
    tpu.vector_store %arg19[%c7, %c0_173, %c0_174], %195 {strides = array<i32>} : memref<8x16x32xf32, #tpu.memory_space<vmem>>, vector<1x16x32xf32>,
    %cst_175 = arith.constant dense<0.000000e+00> : vector<16x32xf32>
    %196 = tpu.matmul %189, %159, %cst_175 {dimension_numbers = #tpu.dot_dimension_numbers<[1], [0], [0], [1], [0, 0, 1, 1], [], []>} : vector<16x128xf32>, vector<128x32xf32>, vector<16x32xf32> -> vector<16x32xf32>
    %197 = vector.broadcast %165 : vector<1x32xf32> to vector<16x32xf32>
    %198 = arith.addf %196, %197 : vector<16x32xf32>
    %c7_176 = arith.constant 7 : index
    %c0_177 = arith.constant 0 : index
    %c0_178 = arith.constant 0 : index
    %199 = vector.load %arg20[%c7_176, %c0_177, %c0_178] : memref<8x16x32xf32, #tpu.memory_space<vmem>>, vector<1x16x32xf32>
    %200 = vector.shape_cast %199 : vector<1x16x32xf32> to vector<16x32xf32>
    %201 = vector.shape_cast %198 : vector<16x32xf32> to vector<1x16x32xf32>
    tpu.vector_store %arg20[%c7_176, %c0_177, %c0_178], %201 {strides = array<i32>} : memref<8x16x32xf32, #tpu.memory_space<vmem>>, vector<1x16x32xf32>,
    %cst_179 = arith.constant dense<0.000000e+00> : vector<16x32xf32>
    %202 = tpu.matmul %189, %161, %cst_179 {dimension_numbers = #tpu.dot_dimension_numbers<[1], [0], [0], [1], [0, 0, 1, 1], [], []>} : vector<16x128xf32>, vector<128x32xf32>, vector<16x32xf32> -> vector<16x32xf32>
    %203 = vector.broadcast %167 : vector<1x32xf32> to vector<16x32xf32>
    %204 = arith.addf %202, %203 : vector<16x32xf32>
    %c7_180 = arith.constant 7 : index
    %c0_181 = arith.constant 0 : index
    %c0_182 = arith.constant 0 : index
    %205 = vector.load %arg21[%c7_180, %c0_181, %c0_182] : memref<8x16x32xf32, #tpu.memory_space<vmem>>, vector<1x16x32xf32>
    %206 = vector.shape_cast %205 : vector<1x16x32xf32> to vector<16x32xf32>
    %207 = vector.shape_cast %204 : vector<16x32xf32> to vector<1x16x32xf32>
    tpu.vector_store %arg21[%c7_180, %c0_181, %c0_182], %207 {strides = array<i32>} : memref<8x16x32xf32, #tpu.memory_space<vmem>>, vector<1x16x32xf32>,
    %c0_183 = arith.constant 0 : index
    %c0_184 = arith.constant 0 : index
    %c0_185 = arith.constant 0 : index
    %208 = vector.load %arg19[%c0_183, %c0_184, %c0_185] : memref<8x16x32xf32, #tpu.memory_space<vmem>>, vector<8x16x32xf32>
    %c0_186 = arith.constant 0 : index
    %c0_187 = arith.constant 0 : index
    %c0_188 = arith.constant 0 : index
    %209 = vector.load %arg20[%c0_186, %c0_187, %c0_188] : memref<8x16x32xf32, #tpu.memory_space<vmem>>, vector<8x16x32xf32>
    %c0_189 = arith.constant 0 : index
    %c0_190 = arith.constant 0 : index
    %c0_191 = arith.constant 0 : index
    %210 = vector.load %arg21[%c0_189, %c0_190, %c0_191] : memref<8x16x32xf32, #tpu.memory_space<vmem>>, vector<8x16x32xf32>
    "tpu.trace_start"() <{level = 10 : i32, message = "ind,imd->inm"}> : () -> ()
    %cst_192 = arith.constant dense<0.000000e+00> : vector<8x16x16xf32>
    %211 = tpu.matmul %208, %209, %cst_192 {dimension_numbers = #tpu.dot_dimension_numbers<[2], [2], [1], [1], [0, 0, 0, 1, 1, 1], [0], [0]>} : vector<8x16x32xf32>, vector<8x16x32xf32>, vector<8x16x16xf32> -> vector<8x16x16xf32>
    "tpu.trace_stop"() : () -> ()
    %cst_193 = arith.constant 0.176776692 : f32
    %212 = vector.broadcast %cst_193 : f32 to vector<8x16x16xf32>
    %213 = arith.mulf %211, %212 : vector<8x16x16xf32>
    %cst_194 = arith.constant dense<0xFF800000> : vector<8x16xf32>
    %214 = vector.multi_reduction <maximumf>, %213, %cst_194 [2] : vector<8x16x16xf32> to vector<8x16xf32>
    %215 = vector.shape_cast %214 : vector<8x16xf32> to vector<8x16x1xf32>
    %216 = vector.broadcast %215 : vector<8x16x1xf32> to vector<8x16x16xf32>
    %217 = arith.subf %213, %216 : vector<8x16x16xf32>
    %218 = math.exp %217 : vector<8x16x16xf32>
    %cst_195 = arith.constant dense<0.000000e+00> : vector<8x16xf32>
    %219 = vector.multi_reduction <add>, %218, %cst_195 [2] : vector<8x16x16xf32> to vector<8x16xf32>
    %220 = vector.shape_cast %219 : vector<8x16xf32> to vector<8x16x1xf32>
    %221 = tpu.reciprocal %220 {approx = true} : vector<8x16x1xf32> -> vector<8x16x1xf32>
    %222 = vector.broadcast %221 : vector<8x16x1xf32> to vector<8x16x16xf32>
    %223 = arith.mulf %218, %222 : vector<8x16x16xf32>
    %c0_196 = arith.constant 0 : index
    %c0_197 = arith.constant 0 : index
    %c0_198 = arith.constant 0 : index
    %224 = vector.load %arg18[%c0_196, %c0_197, %c0_198] : memref<8x16x16xf32, #tpu.memory_space<vmem>>, vector<8x16x16xf32>
    tpu.vector_store %arg18[%c0_196, %c0_197, %c0_198], %223 {strides = array<i32>} : memref<8x16x16xf32, #tpu.memory_space<vmem>>, vector<8x16x16xf32>,
    "tpu.trace_start"() <{level = 10 : i32, message = "inm,imd->ind"}> : () -> ()
    %cst_199 = arith.constant dense<0.000000e+00> : vector<8x16x32xf32>
    %225 = tpu.matmul %223, %210, %cst_199 {dimension_numbers = #tpu.dot_dimension_numbers<[2], [1], [1], [2], [0, 0, 0, 1, 1, 2], [0], [0]>} : vector<8x16x16xf32>, vector<8x16x32xf32>, vector<8x16x32xf32> -> vector<8x16x32xf32>
    "tpu.trace_stop"() : () -> ()
    %c0_200 = arith.constant 0 : index
    %c0_201 = arith.constant 0 : index
    %c0_202 = arith.constant 0 : index
    %226 = vector.load %arg22[%c0_200, %c0_201, %c0_202] : memref<8x16x32xf32, #tpu.memory_space<vmem>>, vector<8x16x32xf32>
    tpu.vector_store %arg22[%c0_200, %c0_201, %c0_202], %225 {strides = array<i32>} : memref<8x16x32xf32, #tpu.memory_space<vmem>>, vector<8x16x32xf32>,
    %c0_203 = arith.constant 0 : index
    %c0_204 = arith.constant 0 : index
    %227 = vector.load %arg8[%c0_203, %c0_204] : memref<1x128xf32, #tpu.memory_space<vmem>>, vector<1x128xf32>
    %c0_205 = arith.constant 0 : index
    %c0_206 = arith.constant 0 : index
    %c0_207 = arith.constant 0 : index
    %228 = vector.load %arg0[%c0_205, %c0_206, %c0_207] : memref<2x16x128xf32, #tpu.memory_space<vmem>>, vector<1x16x128xf32>
    %229 = vector.shape_cast %228 : vector<1x16x128xf32> to vector<16x128xf32>
    %230 = vector.broadcast %227 : vector<1x128xf32> to vector<16x128xf32>
    %231 = arith.addf %230, %229 : vector<16x128xf32>
    %c0_208 = arith.constant 0 : index
    %c0_209 = arith.constant 0 : index
    %c0_210 = arith.constant 0 : index
    %232 = vector.load %arg22[%c0_208, %c0_209, %c0_210] : memref<8x16x32xf32, #tpu.memory_space<vmem>>, vector<1x16x32xf32>
    %233 = vector.shape_cast %232 : vector<1x16x32xf32> to vector<16x32xf32>
    %c0_211 = arith.constant 0 : index
    %c0_212 = arith.constant 0 : index
    %c0_213 = arith.constant 0 : index
    %234 = vector.load %arg7[%c0_211, %c0_212, %c0_213] : memref<4x32x128xf32, #tpu.memory_space<vmem>>, vector<1x32x128xf32>
    %235 = vector.shape_cast %234 : vector<1x32x128xf32> to vector<32x128xf32>
    %cst_214 = arith.constant dense<0.000000e+00> : vector<16x128xf32>
    %236 = tpu.matmul %233, %235, %cst_214 {dimension_numbers = #tpu.dot_dimension_numbers<[1], [0], [0], [1], [0, 0, 1, 1], [], []>} : vector<16x32xf32>, vector<32x128xf32>, vector<16x128xf32> -> vector<16x128xf32>
    %237 = arith.addf %231, %236 : vector<16x128xf32>
    %c2_215 = arith.constant 2 : index
    %c0_216 = arith.constant 0 : index
    %c0_217 = arith.constant 0 : index
    %238 = vector.load %arg22[%c2_215, %c0_216, %c0_217] : memref<8x16x32xf32, #tpu.memory_space<vmem>>, vector<1x16x32xf32>
    %239 = vector.shape_cast %238 : vector<1x16x32xf32> to vector<16x32xf32>
    %c1_218 = arith.constant 1 : index
    %c0_219 = arith.constant 0 : index
    %c0_220 = arith.constant 0 : index
    %240 = vector.load %arg7[%c1_218, %c0_219, %c0_220] : memref<4x32x128xf32, #tpu.memory_space<vmem>>, vector<1x32x128xf32>
    %241 = vector.shape_cast %240 : vector<1x32x128xf32> to vector<32x128xf32>
    %cst_221 = arith.constant dense<0.000000e+00> : vector<16x128xf32>
    %242 = tpu.matmul %239, %241, %cst_221 {dimension_numbers = #tpu.dot_dimension_numbers<[1], [0], [0], [1], [0, 0, 1, 1], [], []>} : vector<16x32xf32>, vector<32x128xf32>, vector<16x128xf32> -> vector<16x128xf32>
    %243 = arith.addf %237, %242 : vector<16x128xf32>
    %c4_222 = arith.constant 4 : index
    %c0_223 = arith.constant 0 : index
    %c0_224 = arith.constant 0 : index
    %244 = vector.load %arg22[%c4_222, %c0_223, %c0_224] : memref<8x16x32xf32, #tpu.memory_space<vmem>>, vector<1x16x32xf32>
    %245 = vector.shape_cast %244 : vector<1x16x32xf32> to vector<16x32xf32>
    %c2_225 = arith.constant 2 : index
    %c0_226 = arith.constant 0 : index
    %c0_227 = arith.constant 0 : index
    %246 = vector.load %arg7[%c2_225, %c0_226, %c0_227] : memref<4x32x128xf32, #tpu.memory_space<vmem>>, vector<1x32x128xf32>
    %247 = vector.shape_cast %246 : vector<1x32x128xf32> to vector<32x128xf32>
    %cst_228 = arith.constant dense<0.000000e+00> : vector<16x128xf32>
    %248 = tpu.matmul %245, %247, %cst_228 {dimension_numbers = #tpu.dot_dimension_numbers<[1], [0], [0], [1], [0, 0, 1, 1], [], []>} : vector<16x32xf32>, vector<32x128xf32>, vector<16x128xf32> -> vector<16x128xf32>
    %249 = arith.addf %243, %248 : vector<16x128xf32>
    %c6_229 = arith.constant 6 : index
    %c0_230 = arith.constant 0 : index
    %c0_231 = arith.constant 0 : index
    %250 = vector.load %arg22[%c6_229, %c0_230, %c0_231] : memref<8x16x32xf32, #tpu.memory_space<vmem>>, vector<1x16x32xf32>
    %251 = vector.shape_cast %250 : vector<1x16x32xf32> to vector<16x32xf32>
    %c3_232 = arith.constant 3 : index
    %c0_233 = arith.constant 0 : index
    %c0_234 = arith.constant 0 : index
    %252 = vector.load %arg7[%c3_232, %c0_233, %c0_234] : memref<4x32x128xf32, #tpu.memory_space<vmem>>, vector<1x32x128xf32>
    %253 = vector.shape_cast %252 : vector<1x32x128xf32> to vector<32x128xf32>
    %cst_235 = arith.constant dense<0.000000e+00> : vector<16x128xf32>
    %254 = tpu.matmul %251, %253, %cst_235 {dimension_numbers = #tpu.dot_dimension_numbers<[1], [0], [0], [1], [0, 0, 1, 1], [], []>} : vector<16x32xf32>, vector<32x128xf32>, vector<16x128xf32> -> vector<16x128xf32>
    %255 = arith.addf %249, %254 : vector<16x128xf32>
    %c0_236 = arith.constant 0 : index
    %c0_237 = arith.constant 0 : index
    %256 = vector.load %arg9[%c0_236, %c0_237] : memref<1x128xf32, #tpu.memory_space<vmem>>, vector<1x128xf32>
    %c0_238 = arith.constant 0 : index
    %c0_239 = arith.constant 0 : index
    %257 = vector.load %arg10[%c0_238, %c0_239] : memref<1x128xf32, #tpu.memory_space<vmem>>, vector<1x128xf32>
    %cst_240 = arith.constant dense<0.000000e+00> : vector<16xf32>
    %258 = vector.multi_reduction <add>, %255, %cst_240 [1] : vector<16x128xf32> to vector<16xf32>
    %259 = vector.shape_cast %258 : vector<16xf32> to vector<16x1xf32>
    %cst_241 = arith.constant 1.280000e+02 : f32
    %260 = vector.broadcast %cst_241 : f32 to vector<16x1xf32>
    %261 = arith.divf %259, %260 : vector<16x1xf32>
    %262 = arith.mulf %255, %255 : vector<16x128xf32>
    %cst_242 = arith.constant dense<0.000000e+00> : vector<16xf32>
    %263 = vector.multi_reduction <add>, %262, %cst_242 [1] : vector<16x128xf32> to vector<16xf32>
    %264 = vector.shape_cast %263 : vector<16xf32> to vector<16x1xf32>
    %cst_243 = arith.constant 1.280000e+02 : f32
    %265 = vector.broadcast %cst_243 : f32 to vector<16x1xf32>
    %266 = arith.divf %264, %265 : vector<16x1xf32>
    %267 = arith.mulf %261, %261 : vector<16x1xf32>
    %268 = arith.subf %266, %267 : vector<16x1xf32>
    %269 = vector.broadcast %261 : vector<16x1xf32> to vector<16x128xf32>
    %270 = arith.subf %255, %269 : vector<16x128xf32>
    %cst_244 = arith.constant 9.99999974E-6 : f32
    %271 = vector.broadcast %cst_244 : f32 to vector<16x1xf32>
    %272 = arith.addf %268, %271 : vector<16x1xf32>
    %273 = math.rsqrt %272 : vector<16x1xf32>
    %274 = vector.broadcast %273 : vector<16x1xf32> to vector<16x128xf32>
    %275 = arith.mulf %270, %274 : vector<16x128xf32>
    %276 = vector.broadcast %256 : vector<1x128xf32> to vector<16x128xf32>
    %277 = arith.mulf %275, %276 : vector<16x128xf32>
    %278 = vector.broadcast %257 : vector<1x128xf32> to vector<16x128xf32>
    %279 = arith.addf %277, %278 : vector<16x128xf32>
    %c0_245 = arith.constant 0 : index
    %c0_246 = arith.constant 0 : index
    %280 = vector.load %arg23[%c0_245, %c0_246] : memref<32x128xf32, #tpu.memory_space<vmem>>, vector<16x128xf32>
    tpu.vector_store %arg23[%c0_245, %c0_246], %279 {strides = array<i32>} : memref<32x128xf32, #tpu.memory_space<vmem>>, vector<16x128xf32>,
    %c0_247 = arith.constant 0 : index
    %c0_248 = arith.constant 0 : index
    %281 = vector.load %arg8[%c0_247, %c0_248] : memref<1x128xf32, #tpu.memory_space<vmem>>, vector<1x128xf32>
    %c1_249 = arith.constant 1 : index
    %c0_250 = arith.constant 0 : index
    %c0_251 = arith.constant 0 : index
    %282 = vector.load %arg0[%c1_249, %c0_250, %c0_251] : memref<2x16x128xf32, #tpu.memory_space<vmem>>, vector<1x16x128xf32>
    %283 = vector.shape_cast %282 : vector<1x16x128xf32> to vector<16x128xf32>
    %284 = vector.broadcast %281 : vector<1x128xf32> to vector<16x128xf32>
    %285 = arith.addf %284, %283 : vector<16x128xf32>
    %c1_252 = arith.constant 1 : index
    %c0_253 = arith.constant 0 : index
    %c0_254 = arith.constant 0 : index
    %286 = vector.load %arg22[%c1_252, %c0_253, %c0_254] : memref<8x16x32xf32, #tpu.memory_space<vmem>>, vector<1x16x32xf32>
    %287 = vector.shape_cast %286 : vector<1x16x32xf32> to vector<16x32xf32>
    %c0_255 = arith.constant 0 : index
    %c0_256 = arith.constant 0 : index
    %c0_257 = arith.constant 0 : index
    %288 = vector.load %arg7[%c0_255, %c0_256, %c0_257] : memref<4x32x128xf32, #tpu.memory_space<vmem>>, vector<1x32x128xf32>
    %289 = vector.shape_cast %288 : vector<1x32x128xf32> to vector<32x128xf32>
    %cst_258 = arith.constant dense<0.000000e+00> : vector<16x128xf32>
    %290 = tpu.matmul %287, %289, %cst_258 {dimension_numbers = #tpu.dot_dimension_numbers<[1], [0], [0], [1], [0, 0, 1, 1], [], []>} : vector<16x32xf32>, vector<32x128xf32>, vector<16x128xf32> -> vector<16x128xf32>
    %291 = arith.addf %285, %290 : vector<16x128xf32>
    %c3_259 = arith.constant 3 : index
    %c0_260 = arith.constant 0 : index
    %c0_261 = arith.constant 0 : index
    %292 = vector.load %arg22[%c3_259, %c0_260, %c0_261] : memref<8x16x32xf32, #tpu.memory_space<vmem>>, vector<1x16x32xf32>
    %293 = vector.shape_cast %292 : vector<1x16x32xf32> to vector<16x32xf32>
    %c1_262 = arith.constant 1 : index
    %c0_263 = arith.constant 0 : index
    %c0_264 = arith.constant 0 : index
    %294 = vector.load %arg7[%c1_262, %c0_263, %c0_264] : memref<4x32x128xf32, #tpu.memory_space<vmem>>, vector<1x32x128xf32>
    %295 = vector.shape_cast %294 : vector<1x32x128xf32> to vector<32x128xf32>
    %cst_265 = arith.constant dense<0.000000e+00> : vector<16x128xf32>
    %296 = tpu.matmul %293, %295, %cst_265 {dimension_numbers = #tpu.dot_dimension_numbers<[1], [0], [0], [1], [0, 0, 1, 1], [], []>} : vector<16x32xf32>, vector<32x128xf32>, vector<16x128xf32> -> vector<16x128xf32>
    %297 = arith.addf %291, %296 : vector<16x128xf32>
    %c5_266 = arith.constant 5 : index
    %c0_267 = arith.constant 0 : index
    %c0_268 = arith.constant 0 : index
    %298 = vector.load %arg22[%c5_266, %c0_267, %c0_268] : memref<8x16x32xf32, #tpu.memory_space<vmem>>, vector<1x16x32xf32>
    %299 = vector.shape_cast %298 : vector<1x16x32xf32> to vector<16x32xf32>
    %c2_269 = arith.constant 2 : index
    %c0_270 = arith.constant 0 : index
    %c0_271 = arith.constant 0 : index
    %300 = vector.load %arg7[%c2_269, %c0_270, %c0_271] : memref<4x32x128xf32, #tpu.memory_space<vmem>>, vector<1x32x128xf32>
    %301 = vector.shape_cast %300 : vector<1x32x128xf32> to vector<32x128xf32>
    %cst_272 = arith.constant dense<0.000000e+00> : vector<16x128xf32>
    %302 = tpu.matmul %299, %301, %cst_272 {dimension_numbers = #tpu.dot_dimension_numbers<[1], [0], [0], [1], [0, 0, 1, 1], [], []>} : vector<16x32xf32>, vector<32x128xf32>, vector<16x128xf32> -> vector<16x128xf32>
    %303 = arith.addf %297, %302 : vector<16x128xf32>
    %c7_273 = arith.constant 7 : index
    %c0_274 = arith.constant 0 : index
    %c0_275 = arith.constant 0 : index
    %304 = vector.load %arg22[%c7_273, %c0_274, %c0_275] : memref<8x16x32xf32, #tpu.memory_space<vmem>>, vector<1x16x32xf32>
    %305 = vector.shape_cast %304 : vector<1x16x32xf32> to vector<16x32xf32>
    %c3_276 = arith.constant 3 : index
    %c0_277 = arith.constant 0 : index
    %c0_278 = arith.constant 0 : index
    %306 = vector.load %arg7[%c3_276, %c0_277, %c0_278] : memref<4x32x128xf32, #tpu.memory_space<vmem>>, vector<1x32x128xf32>
    %307 = vector.shape_cast %306 : vector<1x32x128xf32> to vector<32x128xf32>
    %cst_279 = arith.constant dense<0.000000e+00> : vector<16x128xf32>
    %308 = tpu.matmul %305, %307, %cst_279 {dimension_numbers = #tpu.dot_dimension_numbers<[1], [0], [0], [1], [0, 0, 1, 1], [], []>} : vector<16x32xf32>, vector<32x128xf32>, vector<16x128xf32> -> vector<16x128xf32>
    %309 = arith.addf %303, %308 : vector<16x128xf32>
    %c0_280 = arith.constant 0 : index
    %c0_281 = arith.constant 0 : index
    %310 = vector.load %arg9[%c0_280, %c0_281] : memref<1x128xf32, #tpu.memory_space<vmem>>, vector<1x128xf32>
    %c0_282 = arith.constant 0 : index
    %c0_283 = arith.constant 0 : index
    %311 = vector.load %arg10[%c0_282, %c0_283] : memref<1x128xf32, #tpu.memory_space<vmem>>, vector<1x128xf32>
    %cst_284 = arith.constant dense<0.000000e+00> : vector<16xf32>
    %312 = vector.multi_reduction <add>, %309, %cst_284 [1] : vector<16x128xf32> to vector<16xf32>
    %313 = vector.shape_cast %312 : vector<16xf32> to vector<16x1xf32>
    %cst_285 = arith.constant 1.280000e+02 : f32
    %314 = vector.broadcast %cst_285 : f32 to vector<16x1xf32>
    %315 = arith.divf %313, %314 : vector<16x1xf32>
    %316 = arith.mulf %309, %309 : vector<16x128xf32>
    %cst_286 = arith.constant dense<0.000000e+00> : vector<16xf32>
    %317 = vector.multi_reduction <add>, %316, %cst_286 [1] : vector<16x128xf32> to vector<16xf32>
    %318 = vector.shape_cast %317 : vector<16xf32> to vector<16x1xf32>
    %cst_287 = arith.constant 1.280000e+02 : f32
    %319 = vector.broadcast %cst_287 : f32 to vector<16x1xf32>
    %320 = arith.divf %318, %319 : vector<16x1xf32>
    %321 = arith.mulf %315, %315 : vector<16x1xf32>
    %322 = arith.subf %320, %321 : vector<16x1xf32>
    %323 = vector.broadcast %315 : vector<16x1xf32> to vector<16x128xf32>
    %324 = arith.subf %309, %323 : vector<16x128xf32>
    %cst_288 = arith.constant 9.99999974E-6 : f32
    %325 = vector.broadcast %cst_288 : f32 to vector<16x1xf32>
    %326 = arith.addf %322, %325 : vector<16x1xf32>
    %327 = math.rsqrt %326 : vector<16x1xf32>
    %328 = vector.broadcast %327 : vector<16x1xf32> to vector<16x128xf32>
    %329 = arith.mulf %324, %328 : vector<16x128xf32>
    %330 = vector.broadcast %310 : vector<1x128xf32> to vector<16x128xf32>
    %331 = arith.mulf %329, %330 : vector<16x128xf32>
    %332 = vector.broadcast %311 : vector<1x128xf32> to vector<16x128xf32>
    %333 = arith.addf %331, %332 : vector<16x128xf32>
    %c16 = arith.constant 16 : index
    %c0_289 = arith.constant 0 : index
    %334 = vector.load %arg23[%c16, %c0_289] : memref<32x128xf32, #tpu.memory_space<vmem>>, vector<16x128xf32>
    tpu.vector_store %arg23[%c16, %c0_289], %333 {strides = array<i32>} : memref<32x128xf32, #tpu.memory_space<vmem>>, vector<16x128xf32>,
    %c0_290 = arith.constant 0 : index
    %c0_291 = arith.constant 0 : index
    %335 = vector.load %arg23[%c0_290, %c0_291] : memref<32x128xf32, #tpu.memory_space<vmem>>, vector<32x128xf32>
    %c0_292 = arith.constant 0 : index
    %c0_293 = arith.constant 0 : index
    %336 = vector.load %arg11[%c0_292, %c0_293] : memref<128x256xf32, #tpu.memory_space<vmem>>, vector<128x256xf32>
    %cst_294 = arith.constant dense<0.000000e+00> : vector<32x256xf32>
    %337 = tpu.matmul %335, %336, %cst_294 {dimension_numbers = #tpu.dot_dimension_numbers<[1], [0], [0], [1], [0, 0, 1, 1], [], []>} : vector<32x128xf32>, vector<128x256xf32>, vector<32x256xf32> -> vector<32x256xf32>
    %c0_295 = arith.constant 0 : index
    %c0_296 = arith.constant 0 : index
    %338 = vector.load %arg12[%c0_295, %c0_296] : memref<1x256xf32, #tpu.memory_space<vmem>>, vector<1x256xf32>
    %339 = vector.broadcast %338 : vector<1x256xf32> to vector<32x256xf32>
    %340 = arith.addf %337, %339 : vector<32x256xf32>
    %cst_297 = arith.constant 0.000000e+00 : f32
    %341 = vector.broadcast %cst_297 : f32 to vector<32x256xf32>
    %342 = arith.maximumf %340, %341 : vector<32x256xf32>
    %c0_298 = arith.constant 0 : index
    %c0_299 = arith.constant 0 : index
    %343 = vector.load %arg13[%c0_298, %c0_299] : memref<256x128xf32, #tpu.memory_space<vmem>>, vector<256x128xf32>
    %cst_300 = arith.constant dense<0.000000e+00> : vector<32x128xf32>
    %344 = tpu.matmul %342, %343, %cst_300 {dimension_numbers = #tpu.dot_dimension_numbers<[1], [0], [0], [1], [0, 0, 1, 1], [], []>} : vector<32x256xf32>, vector<256x128xf32>, vector<32x128xf32> -> vector<32x128xf32>
    %c0_301 = arith.constant 0 : index
    %c0_302 = arith.constant 0 : index
    %345 = vector.load %arg14[%c0_301, %c0_302] : memref<1x128xf32, #tpu.memory_space<vmem>>, vector<1x128xf32>
    %346 = vector.broadcast %345 : vector<1x128xf32> to vector<32x128xf32>
    %347 = arith.addf %344, %346 : vector<32x128xf32>
    %348 = arith.addf %347, %335 : vector<32x128xf32>
    %c0_303 = arith.constant 0 : index
    %c0_304 = arith.constant 0 : index
    %349 = vector.load %arg15[%c0_303, %c0_304] : memref<1x128xf32, #tpu.memory_space<vmem>>, vector<1x128xf32>
    %c0_305 = arith.constant 0 : index
    %c0_306 = arith.constant 0 : index
    %350 = vector.load %arg16[%c0_305, %c0_306] : memref<1x128xf32, #tpu.memory_space<vmem>>, vector<1x128xf32>
    %cst_307 = arith.constant dense<0.000000e+00> : vector<32xf32>
    %351 = vector.multi_reduction <add>, %348, %cst_307 [1] : vector<32x128xf32> to vector<32xf32>
    %352 = vector.shape_cast %351 : vector<32xf32> to vector<32x1xf32>
    %cst_308 = arith.constant 1.280000e+02 : f32
    %353 = vector.broadcast %cst_308 : f32 to vector<32x1xf32>
    %354 = arith.divf %352, %353 : vector<32x1xf32>
    %355 = arith.mulf %348, %348 : vector<32x128xf32>
    %cst_309 = arith.constant dense<0.000000e+00> : vector<32xf32>
    %356 = vector.multi_reduction <add>, %355, %cst_309 [1] : vector<32x128xf32> to vector<32xf32>
    %357 = vector.shape_cast %356 : vector<32xf32> to vector<32x1xf32>
    %cst_310 = arith.constant 1.280000e+02 : f32
    %358 = vector.broadcast %cst_310 : f32 to vector<32x1xf32>
    %359 = arith.divf %357, %358 : vector<32x1xf32>
    %360 = arith.mulf %354, %354 : vector<32x1xf32>
    %361 = arith.subf %359, %360 : vector<32x1xf32>
    %362 = vector.broadcast %354 : vector<32x1xf32> to vector<32x128xf32>
    %363 = arith.subf %348, %362 : vector<32x128xf32>
    %cst_311 = arith.constant 9.99999974E-6 : f32
    %364 = vector.broadcast %cst_311 : f32 to vector<32x1xf32>
    %365 = arith.addf %361, %364 : vector<32x1xf32>
    %366 = math.rsqrt %365 : vector<32x1xf32>
    %367 = vector.broadcast %366 : vector<32x1xf32> to vector<32x128xf32>
    %368 = arith.mulf %363, %367 : vector<32x128xf32>
    %369 = vector.broadcast %349 : vector<1x128xf32> to vector<32x128xf32>
    %370 = arith.mulf %368, %369 : vector<32x128xf32>
    %371 = vector.broadcast %350 : vector<1x128xf32> to vector<32x128xf32>
    %372 = arith.addf %370, %371 : vector<32x128xf32>
    %c0_312 = arith.constant 0 : index
    %c0_313 = arith.constant 0 : index
    %373 = vector.load %arg17[%c0_312, %c0_313] : memref<32x128xf32, #tpu.memory_space<vmem>>, vector<32x128xf32>
    tpu.vector_store %arg17[%c0_312, %c0_313], %372 {strides = array<i32>} : memref<32x128xf32, #tpu.memory_space<vmem>>, vector<32x128xf32>,
    return
  }
}

</mosaic_0001>

<bundles_post_ra>
// kernel: tpu_custom_call.1
= control target key start
LH: loop header
LB: loop body
LE: loop exit
PB: predicated region body
PF: predicated region fallthrough
CT: control target
= control target key end

     0   :  { %s4990_s0 = inlined_call_operand.vmem [shape: f32[2,16,128], index: 0, kind: input, shape index: {}]   ;;  %s4991_s1 = inlined_call_operand.vmem [shape: f32[4,128,32], index: 1, kind: input, shape index: {}]   ;;  %s4992_s2 = inlined_call_operand.vmem [shape: f32[4,1,32], index: 2, kind: input, shape index: {}]   ;;  %s4993_s3 = inlined_call_operand.vmem [shape: f32[4,128,32], index: 3, kind: input, shape index: {}]   ;;  %s4994_s4 = inlined_call_operand.vmem [shape: f32[4,1,32], index: 4, kind: input, shape index: {}]   ;;  %s4995_s5 = inlined_call_operand.vmem [shape: f32[4,128,32], index: 5, kind: input, shape index: {}]   ;;  %s4996_s6 = inlined_call_operand.vmem [shape: f32[4,1,32], index: 6, kind: input, shape index: {}]   ;;  %s4997_s7 = inlined_call_operand.vmem [shape: f32[4,32,128], index: 7, kind: input, shape index: {}]   ;;  %s4998_s8 = inlined_call_operand.vmem [shape: f32[1,128], index: 8, kind: input, shape index: {}]   ;;  %s4999_s9 = inlined_call_operand.vmem [shape: f32[1,128], index: 9, kind: input, shape index: {}]   ;;  %s5000_s10 = inlined_call_operand.vmem [shape: f32[1,128], index: 10, kind: input, shape index: {}]   ;;  %s5001_s11 = inlined_call_operand.vmem [shape: f32[128,256], index: 11, kind: input, shape index: {}]   ;;  %s5002_s12 = inlined_call_operand.vmem [shape: f32[1,256], index: 12, kind: input, shape index: {}]   ;;  %s5003_s13 = inlined_call_operand.vmem [shape: f32[256,128], index: 13, kind: input, shape index: {}]   ;;  %s5004_s14 = inlined_call_operand.vmem [shape: f32[1,128], index: 14, kind: input, shape index: {}]   ;;  %s5005_s15 = inlined_call_operand.vmem [shape: f32[1,128], index: 15, kind: input, shape index: {}]   ;;  %s5006_s16 = inlined_call_operand.vmem [shape: f32[1,128], index: 16, kind: input, shape index: {}]   ;;  %s5007_s17 = inlined_call_operand.hbm [shape: f32[32,128], index: 17, kind: output, shape index: {0}]   ;;  %s5008_s18 = inlined_call_operand.hbm [shape: f32[8,16,16], index: 18, kind: output, shape index: {1}]  }
   0x1   :  { %5012 = sst [smem:[#allocation13_spill]] %s4990_s0 }
   0x2   :  { %5013 = sst [smem:[#allocation14_spill]] %s4991_s1 }
   0x3   :  { %5014 = sst [smem:[#allocation15_spill]] %s4992_s2 }
   0x4   :  { %24 = vsyncpa [#allocation8], 0  ;;  %s5015_s29 = sld [smem:[#allocation14_spill]]  ;;  %v3055_v1 = vld [vmem:[%s4993_s3 + $0x78] sm:$0xff]  ;;  %v3069_v4 = vld [vmem:[%s4993_s3 + $0x70] sm:$0xff] }
   0x5   :  { %v3060_v2 = vld [vmem:[%s4995_s5 + $0x78] sm:$0xff]  ;;  %145 = vmatpush.msra.mxu1 %v3055_v1  ;;  %v3074_v5 = vld [vmem:[%s4995_s5 + $0x70] sm:$0xff]  ;;  %v3083_v7 = vld [vmem:[%s4993_s3 + $0x68] sm:$0xff] }
   0x6   :  { %173 = vmatpush.msra.mxu2 %v3060_v2  ;;  %v3089_v8 = vld [vmem:[%s4995_s5 + $0x68] sm:$0xff]  ;;  %v3098_v10 = vld [vmem:[%s4993_s3 + $0x60] sm:$0xff]  ;;  %v3113_v13 = vld [vmem:[%s4993_s3 + $0x58] sm:$0xff] }
   0x7   :  { %146 = vmatpush.msra.mxu1 %v3069_v4  ;;  %v3104_v11 = vld [vmem:[%s4995_s5 + $0x60] sm:$0xff]  ;;  %v3119_v14 = vld [vmem:[%s4995_s5 + $0x58] sm:$0xff]  ;;  %v3128_v16 = vld [vmem:[%s4993_s3 + $0x50] sm:$0xff] }
   0x8   :  { %174 = vmatpush.msra.mxu2 %v3074_v5  ;;  %v3134_v17 = vld [vmem:[%s4995_s5 + $0x50] sm:$0xff]  ;;  %v3143_v19 = vld [vmem:[%s4993_s3 + $0x48] sm:$0xff]  ;;  %v3158_v22 = vld [vmem:[%s4993_s3 + $0x40] sm:$0xff] }
   0x9   :  { %147 = vmatpush.msra.mxu1 %v3083_v7  ;;  %v3149_v20 = vld [vmem:[%s4995_s5 + $0x48] sm:$0xff]  ;;  %v3164_v23 = vld [vmem:[%s4995_s5 + $0x40] sm:$0xff]  ;;  %v3173_v25 = vld [vmem:[%s4993_s3 + $0x38] sm:$0xff] }
   0xa   :  { %v75_v0 = vld [vmem:[%s5015_s29 + $0x78] sm:$0xff]  ;;  %v74_v3 = vld [vmem:[%s5015_s29 + $0x70] sm:$0xff]  ;;  %v73_v6 = vld [vmem:[%s5015_s29 + $0x68] sm:$0xff]  ;;  %175 = vmatpush.msra.mxu2 %v3089_v8 }
   0xb   :  { %116 = vmatpush.msra.mxu0 %v75_v0  ;;  %201 = vmatpush.msra.mxu3 %v75_v0  ;;  %v72_v9 = vld [vmem:[%s5015_s29 + $0x60] sm:$0xff]  ;;  %v71_v12 = vld [vmem:[%s5015_s29 + $0x58] sm:$0xff]  ;;  %v70_v15 = vld [vmem:[%s5015_s29 + $0x50] sm:$0xff] }
   0xc   :  { %148 = vmatpush.msra.mxu1 %v3098_v10  ;;  %176 = vmatpush.msra.mxu2 %v3104_v11  ;;  %v69_v18 = vld [vmem:[%s5015_s29 + $0x48] sm:$0xff]  ;;  %v68_v21 = vld [vmem:[%s5015_s29 + $0x40] sm:$0xff]  ;;  %v67_v24 = vld [vmem:[%s5015_s29 + $0x38] sm:$0xff] }
   0xd   :  { %117 = vmatpush.msra.mxu0 %v74_v3  ;;  %202 = vmatpush.msra.mxu3 %v74_v3  ;;  %v3179_v26 = vld [vmem:[%s4995_s5 + $0x38] sm:$0xff]  ;;  %v66_v27 = vld [vmem:[%s5015_s29 + $0x30] sm:$0xff]  ;;  %v65_v30 = vld [vmem:[%s5015_s29 + $0x28] sm:$0xff] }
   0xe   :  { %149 = vmatpush.msra.mxu1 %v3113_v13  ;;  %177 = vmatpush.msra.mxu2 %v3119_v14  ;;  %v3188_v28 = vld [vmem:[%s4993_s3 + $0x30] sm:$0xff]  ;;  %v3203_v31 = vld [vmem:[%s4993_s3 + $0x28] sm:$0xff]  ;;  %v64_v33 = vld [vmem:[%s5015_s29 + $0x20] sm:$0xff] }
   0xf   :  { %118 = vmatpush.msra.mxu0 %v73_v6  ;;  %203 = vmatpush.msra.mxu3 %v73_v6  ;;  %v3194_v29 = vld [vmem:[%s4995_s5 + $0x30] sm:$0xff]  ;;  %v3209_v32 = vld [vmem:[%s4995_s5 + $0x28] sm:$0xff]  ;;  %v3218_v34 = vld [vmem:[%s4993_s3 + $0x20] sm:$0xff] }
  0x10   :  { %150 = vmatpush.msra.mxu1 %v3128_v16  ;;  %178 = vmatpush.msra.mxu2 %v3134_v17  ;;  %v3224_v35 = vld [vmem:[%s4995_s5 + $0x20] sm:$0xff]  ;;  %v63_v36 = vld [vmem:[%s5015_s29 + $0x18] sm:$0xff]  ;;  %v62_v39 = vld [vmem:[%s5015_s29 + $0x10] sm:$0xff] }
  0x11   :  { %119 = vmatpush.msra.mxu0 %v72_v9  ;;  %204 = vmatpush.msra.mxu3 %v72_v9  ;;  %v3233_v37 = vld [vmem:[%s4993_s3 + $0x18] sm:$0xff]  ;;  %v3247_v40 = vld [vmem:[%s4993_s3 + $0x10] sm:$0xff]  ;;  %v61_v42 = vld [vmem:[%s5015_s29 + $0x8] sm:$0xff] }
  0x12   :  { %151 = vmatpush.msra.mxu1 %v3143_v19  ;;  %179 = vmatpush.msra.mxu2 %v3149_v20  ;;  %v3239_v38 = vld [vmem:[%s4995_s5 + $0x18] sm:$0xff]  ;;  %v3253_v41 = vld [vmem:[%s4995_s5 + $0x10] sm:$0xff]  ;;  %v3262_v43 = vld [vmem:[%s4993_s3 + $0x8] sm:$0xff] }
  0x13   :  { %120 = vmatpush.msra.mxu0 %v71_v12  ;;  %205 = vmatpush.msra.mxu3 %v71_v12  ;;  %v3268_v44 = vld [vmem:[%s4995_s5 + $0x8] sm:$0xff]  ;;  %v60_v45 = vld [vmem:[%s5015_s29] sm:$0xff]  ;;  %v3291_v48 = vld [vmem:[%s5015_s29 + $0xf8] sm:$0xff] }
  0x14   :  { %152 = vmatpush.msra.mxu1 %v3158_v22  ;;  %180 = vmatpush.msra.mxu2 %v3164_v23  ;;  %v3278_v46 = vld [vmem:[%s4993_s3] sm:$0xff]  ;;  %v3296_v49 = vld [vmem:[%s4993_s3 + $0xf8] sm:$0xff]  ;;  %v3304_v50 = vld [vmem:[%s5015_s29 + $0xf0] sm:$0xff] }
  0x15   :  { %121 = vmatpush.msra.mxu0 %v70_v15  ;;  %206 = vmatpush.msra.mxu3 %v70_v15  ;;  %v3284_v47 = vld [vmem:[%s4995_s5] sm:$0xff]  ;;  %v3309_v51 = vld [vmem:[%s4993_s3 + $0xf0] sm:$0xff]  ;;  %v3318_v52 = vld [vmem:[%s5015_s29 + $0xe8] sm:$0xff] }
  0x16   :  { %153 = vmatpush.msra.mxu1 %v3173_v25  ;;  %181 = vmatpush.msra.mxu2 %v3179_v26  ;;  %v3323_v53 = vld [vmem:[%s4993_s3 + $0xe8] sm:$0xff] }
  0x17   :  { %122 = vmatpush.msra.mxu0 %v69_v18  ;;  %207 = vmatpush.msra.mxu3 %v69_v18 }
  0x18   :  { %154 = vmatpush.msra.mxu1 %v3188_v28  ;;  %182 = vmatpush.msra.mxu2 %v3194_v29 }
  0x19   :  { %123 = vmatpush.msra.mxu0 %v68_v21  ;;  %208 = vmatpush.msra.mxu3 %v68_v21 }
  0x1a   :  { %155 = vmatpush.msra.mxu1 %v3203_v31  ;;  %183 = vmatpush.msra.mxu2 %v3209_v32 }
  0x1b   :  { %124 = vmatpush.msra.mxu0 %v67_v24  ;;  %209 = vmatpush.msra.mxu3 %v67_v24 }
  0x1c   :  { %156 = vmatpush.msra.mxu1 %v3218_v34  ;;  %184 = vmatpush.msra.mxu2 %v3224_v35 }
  0x1d   :  { %125 = vmatpush.msra.mxu0 %v66_v27  ;;  %210 = vmatpush.msra.mxu3 %v66_v27 }
  0x1e   :  { %157 = vmatpush.msra.mxu1 %v3233_v37  ;;  %185 = vmatpush.msra.mxu2 %v3239_v38 }
  0x1f   :  { %126 = vmatpush.msra.mxu0 %v65_v30  ;;  %211 = vmatpush.msra.mxu3 %v65_v30 }
  0x20   :  { %158 = vmatpush.msra.mxu1 %v3247_v40  ;;  %186 = vmatpush.msra.mxu2 %v3253_v41 }
  0x21   :  { %127 = vmatpush.msra.mxu0 %v64_v33  ;;  %212 = vmatpush.msra.mxu3 %v64_v33 }
  0x22   :  { %159 = vmatpush.msra.mxu1 %v3262_v43  ;;  %187 = vmatpush.msra.mxu2 %v3268_v44 }
  0x23   :  { %128 = vmatpush.msra.mxu0 %v63_v36  ;;  %213 = vmatpush.msra.mxu3 %v63_v36 }
  0x24   :  { %160 = vmatpush.msra.mxu1 %v3278_v46  ;;  %188 = vmatpush.msra.mxu2 %v3284_v47 }
  0x25   :  { %129 = vmatpush.msra.mxu0 %v62_v39  ;;  %214 = vmatpush.msra.mxu3 %v62_v39 }
  0x26   :  { %253 = vmatpush.msrb.mxu1 %v3060_v2  ;;  %341 = vmatpush.msrb.mxu2 %v3291_v48 }
  0x27   :  { %130 = vmatpush.msra.mxu0 %v61_v42  ;;  %215 = vmatpush.msra.mxu3 %v61_v42 }
  0x28   :  { %254 = vmatpush.msrb.mxu1 %v3074_v5 }
  0x29   :  { %131 = vmatpush.msra.mxu0 %v60_v45  ;;  %216 = vmatpush.msra.mxu3 %v60_v45 }
  0x2b   :  { %227 = vmatpush.msrb.mxu0 %v3055_v1  ;;  %370 = vmatpush.msrb.mxu3 %v3296_v49 }
  0x2d   :  { %228 = vmatpush.msrb.mxu0 %v3069_v4 }
  0x2e   :  { %25 = vsyncpa [#allocation10], 0  ;;  %342 = vmatpush.msrb.mxu2 %v3304_v50  ;;  %371 = vmatpush.msrb.mxu3 %v3309_v51  ;;  %v3332_v54 = vld [vmem:[%s5015_s29 + $0xe0] sm:$0xff]  ;;  %v3346_v56 = vld [vmem:[%s5015_s29 + $0xd8] sm:$0xff]  ;;  %s5016_s19 = sld [smem:[#allocation13_spill]]  ;;  %vm139_vm0 = vcmask 261120  }
  0x2f   :  { %229 = vmatpush.msrb.mxu0 %v3083_v7  ;;  %255 = vmatpush.msrb.mxu1 %v3089_v8  ;;  %v3337_v55 = vld [vmem:[%s4993_s3 + $0xe0] sm:$0xff]  ;;  %v3351_v57 = vld [vmem:[%s4993_s3 + $0xd8] sm:$0xff]  ;;  %v3360_v58 = vld [vmem:[%s5015_s29 + $0xd0] sm:$0xff]  ;;  %s5017_s1 = sld [smem:[#allocation15_spill]]  ;;  %vm1301_vm1 = vcmask 130048   ;;  %s2520_s2 = sshll.u32 %s5008_s18, 4  ;;  %s2521_s2 = int_to_ptr.hbm [resolvable:$true] %s2520_s2 }
  0x30   :  { %343 = vmatpush.msrb.mxu2 %v3318_v52  ;;  %372 = vmatpush.msrb.mxu3 %v3323_v53  ;;  %v3365_v59 = vld [vmem:[%s4993_s3 + $0xd0] sm:$0xff]  ;;  %v3374_v60 = vld [vmem:[%s5015_s29 + $0xc8] sm:$0xff]  ;;  %v3388_v62 = vld [vmem:[%s5015_s29 + $0xc0] sm:$0xff]  ;;  %s2951_s23 = smov 128   ;;  %s2507_s25 = sshll.u32 %s5007_s17, 4  ;;  %s2508_s25 = int_to_ptr.hbm [resolvable:$true] %s2507_s25 }
  0x31   :  { %230 = vmatpush.msrb.mxu0 %v3098_v10  ;;  %256 = vmatpush.msrb.mxu1 %v3104_v11  ;;  %v3379_v61 = vld [vmem:[%s4993_s3 + $0xc8] sm:$0xff]  ;;  %v3393_v63 = vld [vmem:[%s4993_s3 + $0xc0] sm:$0xff]  ;;  %v3407_v1 = vld [vmem:[%s5015_s29 + $0xb8] sm:$0xff] }
  0x32   :  { %344 = vmatpush.msrb.mxu2 %v3332_v54  ;;  %373 = vmatpush.msrb.mxu3 %v3337_v55  ;;  %v3414_v2 = vld [vmem:[%s4993_s3 + $0xb8] sm:$0xff]  ;;  %v3428_v4 = vld [vmem:[%s5015_s29 + $0xb0] sm:$0xff]  ;;  %v3442_v6 = vld [vmem:[%s5015_s29 + $0xa8] sm:$0xff] }
  0x33   :  { %231 = vmatpush.msrb.mxu0 %v3113_v13  ;;  %257 = vmatpush.msrb.mxu1 %v3119_v14  ;;  %v3433_v5 = vld [vmem:[%s4993_s3 + $0xb0] sm:$0xff]  ;;  %v3447_v7 = vld [vmem:[%s4993_s3 + $0xa8] sm:$0xff]  ;;  %v3456_v8 = vld [vmem:[%s5015_s29 + $0xa0] sm:$0xff] }
  0x34   :  { %345 = vmatpush.msrb.mxu2 %v3346_v56  ;;  %374 = vmatpush.msrb.mxu3 %v3351_v57  ;;  %v3400_v0 = vld [vmem:[%s5016_s19 + $0x10] sm:$0xff]  ;;  %v3419_v3 = vld [vmem:[%s5016_s19] sm:$0xff]  ;;  %v3468_v10 = vld [vmem:[%s5016_s19 + $0x18] sm:$0xff] }
  0x35   :  { %232 = vmatpush.msrb.mxu0 %v3128_v16  ;;  %258 = vmatpush.msrb.mxu1 %v3134_v17  ;;  %v3461_v9 = vld [vmem:[%s4993_s3 + $0xa0] sm:$0xff]  ;;  %v3475_v11 = vld [vmem:[%s5015_s29 + $0x98] sm:$0xff]  ;;  %v3487_v13 = vld [vmem:[%s5016_s19 + $0x8] sm:$0xff] }
  0x36   :  { %346 = vmatpush.msrb.mxu2 %v3360_v58  ;;  %375 = vmatpush.msrb.mxu3 %v3365_v59  ;;  %v3482_v12 = vld [vmem:[%s4993_s3 + $0x98] sm:$0xff]  ;;  %v3496_v14 = vld [vmem:[%s5015_s29 + $0x90] sm:$0xff]  ;;  %v3510_v16 = vld [vmem:[%s5015_s29 + $0x88] sm:$0xff] }
  0x37   :  { %233 = vmatpush.msrb.mxu0 %v3143_v19  ;;  %259 = vmatpush.msrb.mxu1 %v3149_v20  ;;  %v3501_v15 = vld [vmem:[%s4993_s3 + $0x90] sm:$0xff]  ;;  %v3515_v17 = vld [vmem:[%s4993_s3 + $0x88] sm:$0xff]  ;;  %v3524_v18 = vld [vmem:[%s5015_s29 + $0x80] sm:$0xff] }
  0x38   :  { %347 = vmatpush.msrb.mxu2 %v3374_v60  ;;  %376 = vmatpush.msrb.mxu3 %v3379_v61  ;;  %v3531_v19 = vld [vmem:[%s4993_s3 + $0x80] sm:$0xff]  ;;  %v2586_v20 = vld [vmem:[%s4995_s5 + $0xf8] sm:$0xff]  ;;  %v2585_v21 = vld [vmem:[%s4995_s5 + $0xf0] sm:$0xff] }
  0x39   :  { %234 = vmatpush.msrb.mxu0 %v3158_v22  ;;  %260 = vmatpush.msrb.mxu1 %v3164_v23  ;;  %v2584_v22 = vld [vmem:[%s4995_s5 + $0xe8] sm:$0xff]  ;;  %v2583_v23 = vld [vmem:[%s4995_s5 + $0xe0] sm:$0xff]  ;;  %v2582_v24 = vld [vmem:[%s4995_s5 + $0xd8] sm:$0xff] }
  0x3a   :  { %348 = vmatpush.msrb.mxu2 %v3388_v62  ;;  %377 = vmatpush.msrb.mxu3 %v3393_v63  ;;  %v2579_v27 = vld [vmem:[%s4995_s5 + $0xc0] sm:$0xff]  ;;  %v2576_v30 = vld [vmem:[%s4995_s5 + $0xa8] sm:$0xff]  ;;  %v2573_v33 = vld [vmem:[%s4995_s5 + $0x90] sm:$0xff] }
  0x3b   :  { %217 = vmatmul.f32.vlgmr.msra.gmra.mxu3 %v3400_v0  ;;  %235 = vmatpush.msrb.mxu0 %v3173_v25  ;;  %v2581_v25 = vld [vmem:[%s4995_s5 + $0xd0] sm:$0xff]  ;;  %v2607_v36 = vld [vmem:[%s5015_s29 + $0x178] sm:$0xff]  ;;  %v2605_v42 = vld [vmem:[%s5015_s29 + $0x168] sm:$0xff] }
  0x3c   :  { %261 = vmatpush.msrb.mxu1 %v3179_v26  ;;  %349 = vmatpush.msrb.mxu2 %v3407_v1  ;;  %v2580_v26 = vld [vmem:[%s4995_s5 + $0xc8] sm:$0xff]  ;;  %v2606_v39 = vld [vmem:[%s5015_s29 + $0x170] sm:$0xff]  ;;  %v2604_v45 = vld [vmem:[%s5015_s29 + $0x160] sm:$0xff] }
  0x3d   :  { %378 = vmatpush.msrb.mxu3 %v3414_v2  ;;  %132 = vmatmul.f32.vlgmr.msra.gmra.mxu0 %v3419_v3 }
  0x3e   :  { %236 = vmatpush.msrb.mxu0 %v3188_v28  ;;  %262 = vmatpush.msrb.mxu1 %v3194_v29  ;;  %v2578_v28 = vld [vmem:[%s4995_s5 + $0xb8] sm:$0xff]  ;;  %v2577_v29 = vld [vmem:[%s4995_s5 + $0xb0] sm:$0xff] }
  0x3f   :  { %350 = vmatpush.msrb.mxu2 %v3428_v4  ;;  %379 = vmatpush.msrb.mxu3 %v3433_v5 }
  0x40   :  { %237 = vmatpush.msrb.mxu0 %v3203_v31  ;;  %263 = vmatpush.msrb.mxu1 %v3209_v32  ;;  %v2575_v31 = vld [vmem:[%s4995_s5 + $0xa0] sm:$0xff]  ;;  %v2574_v32 = vld [vmem:[%s4995_s5 + $0x98] sm:$0xff] }
  0x41   :  { %351 = vmatpush.msrb.mxu2 %v3442_v6  ;;  %380 = vmatpush.msrb.mxu3 %v3447_v7 }
  0x42   :  { %238 = vmatpush.msrb.mxu0 %v3218_v34  ;;  %264 = vmatpush.msrb.mxu1 %v3224_v35  ;;  %v2572_v34 = vld [vmem:[%s4995_s5 + $0x88] sm:$0xff]  ;;  %v2571_v35 = vld [vmem:[%s4995_s5 + $0x80] sm:$0xff] }
  0x43   :  { %352 = vmatpush.msrb.mxu2 %v3456_v8  ;;  %381 = vmatpush.msrb.mxu3 %v3461_v9 }
  0x44   :  { %220 = vmatmul.f32.gmra.mxu3 %v3468_v10  ;;  %239 = vmatpush.msrb.mxu0 %v3233_v37  ;;  %v3632_v37 = vld [vmem:[%s4993_s3 + $0x178] sm:$0xff] }
  0x45   :  { %265 = vmatpush.msrb.mxu1 %v3239_v38  ;;  %353 = vmatpush.msrb.mxu2 %v3475_v11  ;;  %v3639_v38 = vld [vmem:[%s4995_s5 + $0x178] sm:$0xff] }
  0x46   :  { %382 = vmatpush.msrb.mxu3 %v3482_v12  ;;  %135 = vmatmul.f32.gmra.mxu0 %v3487_v13 }
  0x47   :  { %240 = vmatpush.msrb.mxu0 %v3247_v40  ;;  %266 = vmatpush.msrb.mxu1 %v3253_v41  ;;  %v3648_v40 = vld [vmem:[%s4993_s3 + $0x170] sm:$0xff] }
  0x48   :  { %354 = vmatpush.msrb.mxu2 %v3496_v14  ;;  %383 = vmatpush.msrb.mxu3 %v3501_v15  ;;  %v3654_v41 = vld [vmem:[%s4995_s5 + $0x170] sm:$0xff] }
  0x49   :  { %241 = vmatpush.msrb.mxu0 %v3262_v43  ;;  %267 = vmatpush.msrb.mxu1 %v3268_v44  ;;  %v3663_v43 = vld [vmem:[%s4993_s3 + $0x168] sm:$0xff] }
  0x4a   :  { %355 = vmatpush.msrb.mxu2 %v3510_v16  ;;  %384 = vmatpush.msrb.mxu3 %v3515_v17  ;;  %v3669_v44 = vld [vmem:[%s4995_s5 + $0x168] sm:$0xff] }
  0x4b   :  { %189 = vmatmul.f32.vlgmr.msra.gmra.mxu2 %v3419_v3  ;;  %242 = vmatpush.msrb.mxu0 %v3278_v46  ;;  %v3678_v46 = vld [vmem:[%s4993_s3 + $0x160] sm:$0xff] }
  0x4c   :  { %268 = vmatpush.msrb.mxu1 %v3284_v47  ;;  %356 = vmatpush.msrb.mxu2 %v3524_v18  ;;  %v3684_v47 = vld [vmem:[%s4995_s5 + $0x160] sm:$0xff] }
  0x4d   :  { %385 = vmatpush.msrb.mxu3 %v3531_v19  ;;  %161 = vmatmul.f32.vlgmr.msra.gmra.mxu1 %v3419_v3 }
  0x4e   :  { %386 = vmatmul.f32.vlgmr.msrb.gmra.mxu3 %v3419_v3  ;;  %399 = vmatpush.msra.mxu0 %v2586_v20 }
  0x4f   :  { %427 = vmatpush.msra.mxu1 %v3291_v48  ;;  %453 = vmatpush.msra.mxu2 %v3296_v49  ;;  %v2603_v48 = vld [vmem:[%s5015_s29 + $0x158] sm:$0xff] }
  0x50   :  { %479 = vmatpush.msra.mxu3 %v2586_v20  ;;  %243 = vmatmul.f32.vlgmr.msrb.gmra.mxu0 %v3400_v0  ;;  %v3694_v49 = vld [vmem:[%s4993_s3 + $0x158] sm:$0xff]  ;;  %v3853_v20 = vld [vmem:[%s4995_s5 + $0x108] sm:$0xff] }
  0x51   :  { %400 = vmatpush.msra.mxu0 %v2585_v21  ;;  %428 = vmatpush.msra.mxu1 %v3304_v50  ;;  %v3700_v50 = vld [vmem:[%s4995_s5 + $0x158] sm:$0xff] }
  0x52   :  { %454 = vmatpush.msra.mxu2 %v3309_v51  ;;  %480 = vmatpush.msra.mxu3 %v2585_v21  ;;  %v2602_v51 = vld [vmem:[%s5015_s29 + $0x150] sm:$0xff]  ;;  %v2592_v21 = vld [vmem:[%s5015_s29 + $0x100] sm:$0xff] }
  0x53   :  { %401 = vmatpush.msra.mxu0 %v2584_v22  ;;  %429 = vmatpush.msra.mxu1 %v3318_v52  ;;  %v3710_v52 = vld [vmem:[%s4993_s3 + $0x150] sm:$0xff] }
  0x54   :  { %455 = vmatpush.msra.mxu2 %v3323_v53  ;;  %481 = vmatpush.msra.mxu3 %v2584_v22  ;;  %v3716_v53 = vld [vmem:[%s4995_s5 + $0x150] sm:$0xff]  ;;  %v3863_v22 = vld [vmem:[%s4993_s3 + $0x100] sm:$0xff] }
  0x55   :  { %402 = vmatpush.msra.mxu0 %v2583_v23  ;;  %430 = vmatpush.msra.mxu1 %v3332_v54  ;;  %v2601_v54 = vld [vmem:[%s5015_s29 + $0x148] sm:$0xff] }
  0x56   :  { %456 = vmatpush.msra.mxu2 %v3337_v55  ;;  %482 = vmatpush.msra.mxu3 %v2583_v23  ;;  %v3725_v55 = vld [vmem:[%s4993_s3 + $0x148] sm:$0xff]  ;;  %v3869_v23 = vld [vmem:[%s4995_s5 + $0x100] sm:$0xff] }
  0x57   :  { %192 = vmatmul.f32.gmra.mxu2 %v3487_v13  ;;  %389 = vmatmul.f32.gmra.mxu3 %v3487_v13 }
  0x58   :  { %403 = vmatpush.msra.mxu0 %v2582_v24  ;;  %431 = vmatpush.msra.mxu1 %v3346_v56  ;;  %v3731_v56 = vld [vmem:[%s4995_s5 + $0x148] sm:$0xff] }
  0x59   :  { %457 = vmatpush.msra.mxu2 %v3351_v57  ;;  %483 = vmatpush.msra.mxu3 %v2582_v24  ;;  %v2600_v57 = vld [vmem:[%s5015_s29 + $0x140] sm:$0xff]  ;;  %v3877_v24 = vld [vmem:[%s5015_s29 + $0x1f8] sm:$0xff] }
  0x5a   :  { %246 = vmatmul.f32.gmra.mxu0 %v3468_v10  ;;  %432 = vmatpush.msra.mxu1 %v3360_v58  ;;  %v3740_v58 = vld [vmem:[%s4993_s3 + $0x140] sm:$0xff] }
  0x5b   :  { %404 = vmatpush.msra.mxu0 %v2581_v25  ;;  %458 = vmatpush.msra.mxu2 %v3365_v59  ;;  %v3746_v59 = vld [vmem:[%s4995_s5 + $0x140] sm:$0xff] }
  0x5c   :  { %484 = vmatpush.msra.mxu3 %v2581_v25  ;;  %433 = vmatpush.msra.mxu1 %v3374_v60  ;;  %v2599_v60 = vld [vmem:[%s5015_s29 + $0x138] sm:$0xff] }
  0x5d   :  { %405 = vmatpush.msra.mxu0 %v2580_v26  ;;  %459 = vmatpush.msra.mxu2 %v3379_v61  ;;  %v3756_v61 = vld [vmem:[%s4993_s3 + $0x138] sm:$0xff] }
  0x5e   :  { %485 = vmatpush.msra.mxu3 %v2580_v26  ;;  %434 = vmatpush.msra.mxu1 %v3388_v62  ;;  %v3761_v62 = vld [vmem:[%s4995_s5 + $0x138] sm:$0xff]  ;;  %v3890_v26 = vld [vmem:[%s5015_s29 + $0x1f0] sm:$0xff] }
  0x5f   :  { %406 = vmatpush.msra.mxu0 %v2579_v27  ;;  %460 = vmatpush.msra.mxu2 %v3393_v63  ;;  %v2598_v63 = vld [vmem:[%s5015_s29 + $0x130] sm:$0xff]  ;;  %v3882_v25 = vld [vmem:[%s4993_s3 + $0x1f8] sm:$0xff] }
  0x60   :  { %486 = vmatpush.msra.mxu3 %v2579_v27  ;;  %357 = vmatmul.f32.vlgmr.msrb.gmra.mxu2 %v3419_v3  ;;  %v3895_v27 = vld [vmem:[%s4993_s3 + $0x1f0] sm:$0xff] }
  0x61   :  { %407 = vmatpush.msra.mxu0 %v2578_v28  ;;  %435 = vmatpush.msra.mxu1 %v3407_v1  ;;  %v3771_v1 = vld [vmem:[%s4993_s3 + $0x130] sm:$0xff] }
  0x62   :  { %461 = vmatpush.msra.mxu2 %v3414_v2  ;;  %487 = vmatpush.msra.mxu3 %v2578_v28  ;;  %v3776_v2 = vld [vmem:[%s4995_s5 + $0x130] sm:$0xff]  ;;  %v3903_v28 = vld [vmem:[%s5015_s29 + $0x1e8] sm:$0xff] }
  0x63   :  { %408 = vmatpush.msra.mxu0 %v2577_v29  ;;  %436 = vmatpush.msra.mxu1 %v3428_v4  ;;  %v2597_v4 = vld [vmem:[%s5015_s29 + $0x128] sm:$0xff] }
  0x64   :  { %462 = vmatpush.msra.mxu2 %v3433_v5  ;;  %488 = vmatpush.msra.mxu3 %v2577_v29  ;;  %v3786_v5 = vld [vmem:[%s4993_s3 + $0x128] sm:$0xff] }
  0x65   :  { %409 = vmatpush.msra.mxu0 %v2576_v30  ;;  %437 = vmatpush.msra.mxu1 %v3442_v6  ;;  %v3791_v6 = vld [vmem:[%s4995_s5 + $0x128] sm:$0xff] }
  0x66   :  { %463 = vmatpush.msra.mxu2 %v3447_v7  ;;  %489 = vmatpush.msra.mxu3 %v2576_v30  ;;  %v2596_v7 = vld [vmem:[%s5015_s29 + $0x120] sm:$0xff]  ;;  %v3908_v29 = vld [vmem:[%s4993_s3 + $0x1e8] sm:$0xff] }
  0x67   :  { %164 = vmatmul.f32.gmra.mxu1 %v3487_v13  ;;  %410 = vmatpush.msra.mxu0 %v2575_v31  ;;  %v3917_v30 = vld [vmem:[%s5015_s29 + $0x1e0] sm:$0xff] }
  0x68   :  { %438 = vmatpush.msra.mxu1 %v3456_v8  ;;  %464 = vmatpush.msra.mxu2 %v3461_v9  ;;  %v3801_v8 = vld [vmem:[%s4993_s3 + $0x120] sm:$0xff] }
  0x69   :  { %490 = vmatpush.msra.mxu3 %v2575_v31  ;;  %360 = vmatmul.f32.gmra.mxu2 %v3487_v13  ;;  %v3806_v9 = vld [vmem:[%s4995_s5 + $0x120] sm:$0xff] }
  0x6a   :  { %411 = vmatpush.msra.mxu0 %v2574_v32  ;;  %439 = vmatpush.msra.mxu1 %v3475_v11  ;;  %v2595_v11 = vld [vmem:[%s5015_s29 + $0x118] sm:$0xff]  ;;  %v3922_v31 = vld [vmem:[%s4993_s3 + $0x1e0] sm:$0xff] }
  0x6b   :  { %465 = vmatpush.msra.mxu2 %v3482_v12  ;;  %491 = vmatpush.msra.mxu3 %v2574_v32  ;;  %v3816_v12 = vld [vmem:[%s4993_s3 + $0x118] sm:$0xff] }
  0x6c   :  { %412 = vmatpush.msra.mxu0 %v2573_v33  ;;  %440 = vmatpush.msra.mxu1 %v3496_v14  ;;  %v3823_v14 = vld [vmem:[%s4995_s5 + $0x118] sm:$0xff] }
  0x6d   :  { %466 = vmatpush.msra.mxu2 %v3501_v15  ;;  %492 = vmatpush.msra.mxu3 %v2573_v33  ;;  %v2594_v15 = vld [vmem:[%s5015_s29 + $0x110] sm:$0xff]  ;;  %v3932_v32 = vld [vmem:[%s5015_s29 + $0x1d8] sm:$0xff] }
  0x6e   :  { %413 = vmatpush.msra.mxu0 %v2572_v34  ;;  %441 = vmatpush.msra.mxu1 %v3510_v16  ;;  %v3832_v16 = vld [vmem:[%s4993_s3 + $0x110] sm:$0xff]  ;;  %v3939_v33 = vld [vmem:[%s4993_s3 + $0x1d8] sm:$0xff] }
  0x6f   :  { %467 = vmatpush.msra.mxu2 %v3515_v17  ;;  %493 = vmatpush.msra.mxu3 %v2572_v34  ;;  %v3838_v17 = vld [vmem:[%s4995_s5 + $0x110] sm:$0xff] }
  0x70   :  { %269 = vmatmul.f32.vlgmr.msrb.gmra.mxu1 %v3400_v0  ;;  %414 = vmatpush.msra.mxu0 %v2571_v35  ;;  %v3946_v34 = vld [vmem:[%s5015_s29 + $0x1d0] sm:$0xff] }
  0x71   :  { %442 = vmatpush.msra.mxu1 %v3524_v18  ;;  %468 = vmatpush.msra.mxu2 %v3531_v19  ;;  %v2593_v18 = vld [vmem:[%s5015_s29 + $0x108] sm:$0xff] }
  0x72   :  { %494 = vmatpush.msra.mxu3 %v2571_v35  ;;  %469 = vmatmul.f32.vlgmr.msra.gmra.mxu2 %v3400_v0  ;;  %v3847_v19 = vld [vmem:[%s4993_s3 + $0x108] sm:$0xff]  ;;  %v3953_v35 = vld [vmem:[%s4993_s3 + $0x1d0] sm:$0xff] }
  0x73   :  { %567 = vmatpush.msrb.mxu0 %v2607_v36  ;;  %596 = vmatpush.msrb.mxu1 %v3632_v37 }
  0x74   :  { %625 = vmatpush.msrb.mxu2 %v3639_v38  ;;  %653 = vmatpush.msrb.mxu3 %v2607_v36  ;;  %v3959_v36 = vld [vmem:[%s5015_s29 + $0x1c8] sm:$0xff] }
  0x75   :  { %568 = vmatpush.msrb.mxu0 %v2606_v39  ;;  %597 = vmatpush.msrb.mxu1 %v3648_v40 }
  0x76   :  { %626 = vmatpush.msrb.mxu2 %v3654_v41  ;;  %654 = vmatpush.msrb.mxu3 %v2606_v39  ;;  %v3981_v39 = vld [vmem:[%s4993_s3 + $0x1c0] sm:$0xff] }
  0x77   :  { %569 = vmatpush.msrb.mxu0 %v2605_v42  ;;  %598 = vmatpush.msrb.mxu1 %v3663_v43 }
  0x78   :  { %627 = vmatpush.msrb.mxu2 %v3669_v44  ;;  %655 = vmatpush.msrb.mxu3 %v2605_v42  ;;  %v4004_v42 = vld [vmem:[%s5015_s29 + $0x1b0] sm:$0xff] }
  0x79   :  { %570 = vmatpush.msrb.mxu0 %v2604_v45  ;;  %599 = vmatpush.msrb.mxu1 %v3678_v46 }
  0x7a   :  { %628 = vmatpush.msrb.mxu2 %v3684_v47  ;;  %656 = vmatpush.msrb.mxu3 %v2604_v45  ;;  %v4022_v45 = vld [vmem:[%s4993_s3 + $0x1a8] sm:$0xff] }
  0x7b   :  { %272 = vmatmul.f32.gmra.mxu1 %v3468_v10  ;;  %472 = vmatmul.f32.gmra.mxu2 %v3468_v10 }
  0x7c   :  { %571 = vmatpush.msrb.mxu0 %v2603_v48  ;;  %600 = vmatpush.msrb.mxu1 %v3694_v49 }
  0x7d   :  { %629 = vmatpush.msrb.mxu2 %v3700_v50  ;;  %657 = vmatpush.msrb.mxu3 %v2603_v48  ;;  %v4045_v48 = vld [vmem:[%s5015_s29 + $0x198] sm:$0xff] }
  0x7e   :  { %572 = vmatpush.msrb.mxu0 %v2602_v51  ;;  %601 = vmatpush.msrb.mxu1 %v3710_v52 }
  0x7f   :  { %630 = vmatpush.msrb.mxu2 %v3716_v53  ;;  %658 = vmatpush.msrb.mxu3 %v2602_v51  ;;  %v4067_v51 = vld [vmem:[%s4993_s3 + $0x190] sm:$0xff] }
  0x80   :  { %573 = vmatpush.msrb.mxu0 %v2601_v54  ;;  %602 = vmatpush.msrb.mxu1 %v3725_v55 }
  0x81   :  { %631 = vmatpush.msrb.mxu2 %v3731_v56  ;;  %659 = vmatpush.msrb.mxu3 %v2601_v54  ;;  %v4088_v54 = vld [vmem:[%s5015_s29 + $0x180] sm:$0xff] }
  0x82   :  { %574 = vmatpush.msrb.mxu0 %v2600_v57  ;;  %603 = vmatpush.msrb.mxu1 %v3740_v58 }
  0x83   :  { %632 = vmatpush.msrb.mxu2 %v3746_v59  ;;  %660 = vmatpush.msrb.mxu3 %v2600_v57  ;;  %v2691_v57 = vld [vmem:[%s4995_s5 + $0x1f0] sm:$0xff] }
  0x84   :  { %443 = vmatmul.f32.vlgmr.msra.gmra.mxu1 %v3400_v0  ;;  %575 = vmatpush.msrb.mxu0 %v2599_v60 }
  0x85   :  { %604 = vmatpush.msrb.mxu1 %v3756_v61  ;;  %633 = vmatpush.msrb.mxu2 %v3761_v62 }
  0x86   :  { %661 = vmatpush.msrb.mxu3 %v2599_v60  ;;  %576 = vmatpush.msrb.mxu0 %v2598_v63  ;;  %v2690_v60 = vld [vmem:[%s4995_s5 + $0x1e8] sm:$0xff] }
  0x87   :  { %605 = vmatpush.msrb.mxu1 %v3771_v1  ;;  %634 = vmatpush.msrb.mxu2 %v3776_v2 }
  0x88   :  { %662 = vmatpush.msrb.mxu3 %v2598_v63  ;;  %577 = vmatpush.msrb.mxu0 %v2597_v4  ;;  %v2689_v63 = vld [vmem:[%s4995_s5 + $0x1e0] sm:$0xff] }
  0x89   :  { %606 = vmatpush.msrb.mxu1 %v3786_v5  ;;  %635 = vmatpush.msrb.mxu2 %v3791_v6 }
  0x8a   :  { %663 = vmatpush.msrb.mxu3 %v2597_v4  ;;  %578 = vmatpush.msrb.mxu0 %v2596_v7 }
  0x8b   :  { %607 = vmatpush.msrb.mxu1 %v3801_v8  ;;  %636 = vmatpush.msrb.mxu2 %v3806_v9 }
  0x8c   :  { %664 = vmatpush.msrb.mxu3 %v2596_v7  ;;  %446 = vmatmul.f32.gmra.mxu1 %v3468_v10  ;;  %v2686_v7 = vld [vmem:[%s4995_s5 + $0x1c8] sm:$0xff] }
  0x8d   :  { %579 = vmatpush.msrb.mxu0 %v2595_v11  ;;  %608 = vmatpush.msrb.mxu1 %v3816_v12 }
  0x8e   :  { %637 = vmatpush.msrb.mxu2 %v3823_v14  ;;  %665 = vmatpush.msrb.mxu3 %v2595_v11 }
  0x8f   :  { %580 = vmatpush.msrb.mxu0 %v2594_v15  ;;  %609 = vmatpush.msrb.mxu1 %v3832_v16 }
  0x90   :  { %638 = vmatpush.msrb.mxu2 %v3838_v17  ;;  %666 = vmatpush.msrb.mxu3 %v2594_v15 }
  0x91   :  { %581 = vmatpush.msrb.mxu0 %v2593_v18  ;;  %610 = vmatpush.msrb.mxu1 %v3847_v19 }
  0x92   :  { %639 = vmatpush.msrb.mxu2 %v3853_v20  ;;  %667 = vmatpush.msrb.mxu3 %v2593_v18  ;;  %v2683_v18 = vld [vmem:[%s4995_s5 + $0x1b0] sm:$0xff] }
  0x93   :  { %415 = vmatmul.f32.vlgmr.msra.gmra.mxu0 %v3419_v3  ;;  %495 = vmatmul.f32.vlgmr.msra.gmra.mxu3 %v3400_v0 }
  0x94   :  { %582 = vmatpush.msrb.mxu0 %v2592_v21  ;;  %611 = vmatpush.msrb.mxu1 %v3863_v22 }
  0x95   :  { %640 = vmatpush.msrb.mxu2 %v3869_v23  ;;  %668 = vmatpush.msrb.mxu3 %v2592_v21 }
  0x96   :  { %612 = vmatmul.f32.vlgmr.msrb.gmra.mxu1 %v3419_v3  ;;  %679 = vmatpush.msra.mxu0 %v3632_v37  ;;  %v3967_v37 = vld [vmem:[%s4993_s3 + $0x1c8] sm:$0xff] }
  0x97   :  { %793 = vmatpush.msra.mxu2 %v3877_v24  ;;  %822 = vmatpush.msra.mxu3 %v3882_v25 }
  0x98   :  { %680 = vmatpush.msra.mxu0 %v3648_v40  ;;  %705 = vmatpush.msra.mxu1 %v3639_v38  ;;  %v3973_v38 = vld [vmem:[%s5015_s29 + $0x1c0] sm:$0xff]  ;;  %v3990_v40 = vld [vmem:[%s5015_s29 + $0x1b8] sm:$0xff] }
  0x99   :  { %794 = vmatpush.msra.mxu2 %v3890_v26  ;;  %823 = vmatpush.msra.mxu3 %v3895_v27 }
  0x9a   :  { %681 = vmatpush.msra.mxu0 %v3663_v43  ;;  %706 = vmatpush.msra.mxu1 %v3654_v41  ;;  %v3995_v41 = vld [vmem:[%s4993_s3 + $0x1b8] sm:$0xff]  ;;  %v4009_v43 = vld [vmem:[%s4993_s3 + $0x1b0] sm:$0xff] }
  0x9b   :  { %795 = vmatpush.msra.mxu2 %v3903_v28  ;;  %824 = vmatpush.msra.mxu3 %v3908_v29 }
  0x9c   :  { %682 = vmatpush.msra.mxu0 %v3678_v46  ;;  %498 = vmatmul.f32.gmra.mxu3 %v3468_v10  ;;  %v4031_v46 = vld [vmem:[%s5015_s29 + $0x1a0] sm:$0xff] }
  0x9d   :  { %796 = vmatpush.msra.mxu2 %v3917_v30  ;;  %825 = vmatpush.msra.mxu3 %v3922_v31 }
  0x9e   :  { %418 = vmatmul.f32.gmra.mxu0 %v3487_v13  ;;  %615 = vmatmul.f32.gmra.mxu1 %v3487_v13 }
  0x9f   :  { %683 = vmatpush.msra.mxu0 %v3694_v49  ;;  %797 = vmatpush.msra.mxu2 %v3932_v32  ;;  %v4053_v49 = vld [vmem:[%s4993_s3 + $0x198] sm:$0xff] }
  0xa0   :  { %826 = vmatpush.msra.mxu3 %v3939_v33  ;;  %707 = vmatpush.msra.mxu1 %v3669_v44  ;;  %v4017_v44 = vld [vmem:[%s5015_s29 + $0x1a8] sm:$0xff] }
  0xa1   :  { %684 = vmatpush.msra.mxu0 %v3710_v52  ;;  %798 = vmatpush.msra.mxu2 %v3946_v34  ;;  %v4074_v52 = vld [vmem:[%s5015_s29 + $0x188] sm:$0xff] }
  0xa2   :  { %827 = vmatpush.msra.mxu3 %v3953_v35  ;;  %708 = vmatpush.msra.mxu1 %v3684_v47  ;;  %v4036_v47 = vld [vmem:[%s4993_s3 + $0x1a0] sm:$0xff] }
  0xa3   :  { %685 = vmatpush.msra.mxu0 %v3725_v55  ;;  %799 = vmatpush.msra.mxu2 %v3959_v36  ;;  %v4095_v55 = vld [vmem:[%s4993_s3 + $0x180] sm:$0xff] }
  0xa4   :  { %828 = vmatpush.msra.mxu3 %v3967_v37  ;;  %641 = vmatmul.f32.vlgmr.msrb.gmra.mxu2 %v3419_v3 }
  0xa5   :  { %686 = vmatpush.msra.mxu0 %v3740_v58  ;;  %800 = vmatpush.msra.mxu2 %v3973_v38  ;;  %v2793_v58 = vld [vmem:[%s5017_s1] ss:$0 sm:$0xff] }
  0xa6   :  { %829 = vmatpush.msra.mxu3 %v3981_v39  ;;  %583 = vmatmul.f32.vlgmr.msrb.gmra.mxu0 %v3419_v3 }
  0xa7   :  { %669 = vmatmul.f32.vlgmr.msrb.gmra.mxu3 %v3400_v0  ;;  %687 = vmatpush.msra.mxu0 %v3756_v61 }
  0xa8   :  { %801 = vmatpush.msra.mxu2 %v3990_v40  ;;  %830 = vmatpush.msra.mxu3 %v3995_v41 }
  0xa9   :  { %688 = vmatpush.msra.mxu0 %v3771_v1  ;;  %709 = vmatpush.msra.mxu1 %v3700_v50  ;;  %v4060_v50 = vld [vmem:[%s5015_s29 + $0x190] sm:$0xff] }
  0xaa   :  { %802 = vmatpush.msra.mxu2 %v4004_v42  ;;  %831 = vmatpush.msra.mxu3 %v4009_v43 }
  0xab   :  { %689 = vmatpush.msra.mxu0 %v3786_v5  ;;  %710 = vmatpush.msra.mxu1 %v3716_v53  ;;  %v4081_v53 = vld [vmem:[%s4993_s3 + $0x188] sm:$0xff]  ;;  %v2687_v5 = vld [vmem:[%s4995_s5 + $0x1d0] sm:$0xff] }
  0xac   :  { %803 = vmatpush.msra.mxu2 %v4017_v44  ;;  %832 = vmatpush.msra.mxu3 %v4022_v45 }
  0xad   :  { %690 = vmatpush.msra.mxu0 %v3801_v8  ;;  %711 = vmatpush.msra.mxu1 %v3731_v56  ;;  %v2692_v56 = vld [vmem:[%s4995_s5 + $0x1f8] sm:$0xff] }
  0xae   :  { %804 = vmatpush.msra.mxu2 %v4031_v46  ;;  %833 = vmatpush.msra.mxu3 %v4036_v47 }
  0xaf   :  { %586 = vmatmul.f32.gmra.mxu0 %v3487_v13  ;;  %672 = vmatmul.f32.gmra.mxu3 %v3468_v10 }
  0xb0   :  { %691 = vmatpush.msra.mxu0 %v3816_v12  ;;  %805 = vmatpush.msra.mxu2 %v4045_v48  ;;  %v4161_v12 = vld [vmem:[%s4994_s4] ss:$0 sm:$0xff] }
  0xb1   :  { %834 = vmatpush.msra.mxu3 %v4053_v49  ;;  %712 = vmatpush.msra.mxu1 %v3746_v59 }
  0xb2   :  { %692 = vmatpush.msra.mxu0 %v3832_v16  ;;  %806 = vmatpush.msra.mxu2 %v4060_v50  ;;  %v4172_v16 = vld [vmem:[%s4996_s6] ss:$0 sm:$0xff] }
  0xb3   :  { %835 = vmatpush.msra.mxu3 %v4067_v51  ;;  %644 = vmatmul.f32.gmra.mxu2 %v3487_v13 }
  0xb4   :  { %693 = vmatpush.msra.mxu0 %v3847_v19  ;;  %807 = vmatpush.msra.mxu2 %v4074_v52 }
  0xb5   :  { %836 = vmatpush.msra.mxu3 %v4081_v53  ;;  %713 = vmatpush.msra.mxu1 %v3761_v62 }
  0xb6   :  { %694 = vmatpush.msra.mxu0 %v3863_v22  ;;  %808 = vmatpush.msra.mxu2 %v4088_v54 }
  0xb7   :  { %837 = vmatpush.msra.mxu3 %v4095_v55  ;;  %695 = vmatmul.f32.vlgmr.msra.gmra.mxu0 %v3400_v0 }
  0xb8   :  { %714 = vmatpush.msra.mxu1 %v3776_v2  ;;  %838 = vmatmul.f32.vlgmr.msra.gmra.mxu3 %v3419_v3  ;;  %v2688_v2 = vld [vmem:[%s4995_s5 + $0x1d8] sm:$0xff] }
  0xb9   :  { %905 = vmatpush.msrb.mxu2 %v3882_v25  ;;  %851 = vmatpush.msrb.mxu0 %v2692_v56  ;;  %v4196_v25 = vld [vmem:[%s4994_s4 + $0x1] ss:$0 sm:$0xff] }
  0xba   :  { %715 = vmatpush.msra.mxu1 %v3791_v6  ;;  %v133_v59 = vpop.f32.mrf.mxu0  ;;  %931 = vmatpush.msrb.mxu3 %v2692_v56 }
  0xbb   :  { %906 = vmatpush.msrb.mxu2 %v3895_v27  ;;  %v134_v61 = vadd.f32 %v2793_v58, %v133_v59  ;;  %852 = vmatpush.msrb.mxu0 %v2691_v57  ;;  %v2680_v27 = vld [vmem:[%s4995_s5 + $0x198] sm:$0xff] }
  0xbc   :  { %716 = vmatpush.msra.mxu1 %v3806_v9  ;;  %809 = vmatmul.f32.vlgmr.msra.gmra.mxu2 %v3419_v3  ;;  %v2685_v9 = vld [vmem:[%s4995_s5 + $0x1c0] sm:$0xff] }
  0xbd   :  { %907 = vmatpush.msrb.mxu2 %v3908_v29  ;;  %140 = vst.msk [vmem:[#allocation2] sm:$0xff] %vm139_vm0, %v134_v61  ;;  %853 = vmatpush.msrb.mxu0 %v2690_v60  ;;  %v2679_v29 = vld [vmem:[%s4995_s5 + $0x190] sm:$0xff] }
  0xbe   :  { %717 = vmatpush.msra.mxu1 %v3823_v14  ;;  %v218_v62 = vpop.f32.mrf.mxu3  ;;  %932 = vmatpush.msrb.mxu3 %v2691_v57  ;;  %v2684_v14 = vld [vmem:[%s4995_s5 + $0x1b8] sm:$0xff] }
  0xbf   :  { %908 = vmatpush.msrb.mxu2 %v3922_v31  ;;  %698 = vmatmul.f32.gmra.mxu0 %v3468_v10  ;;  %v219_v1 = vadd.f32 %v2793_v58, %v218_v62 }
  0xc0   :  { %718 = vmatpush.msra.mxu1 %v3838_v17  ;;  %841 = vmatmul.f32.gmra.mxu3 %v3487_v13 }
  0xc1   :  { %909 = vmatpush.msrb.mxu2 %v3939_v33  ;;  %225 = vst.msk [vmem:[#allocation2 + $0x10] sm:$0xff] %vm139_vm0, %v219_v1  ;;  %854 = vmatpush.msrb.mxu0 %v2689_v63 }
  0xc2   :  { %719 = vmatpush.msra.mxu1 %v3853_v20  ;;  %933 = vmatpush.msrb.mxu3 %v2690_v60  ;;  %v2682_v20 = vld [vmem:[%s4995_s5 + $0x1a8] sm:$0xff] }
  0xc3   :  { %910 = vmatpush.msrb.mxu2 %v3953_v35  ;;  %v136_v4 = vpop.f32.mrf.mxu0  ;;  %855 = vmatpush.msrb.mxu0 %v2688_v2 }
  0xc4   :  { %720 = vmatpush.msra.mxu1 %v3869_v23  ;;  %812 = vmatmul.f32.gmra.mxu2 %v3487_v13  ;;  %v137_v6 = vadd.f32 %v2793_v58, %v136_v4 }
  0xc5   :  { %911 = vmatpush.msrb.mxu2 %v3967_v37  ;;  %721 = vmatmul.f32.vlgmr.msra.gmra.mxu1 %v3400_v0 }
  0xc6   :  { %879 = vmatpush.msrb.mxu1 %v3877_v24  ;;  %141 = vst.msk [vmem:[#allocation2 + $0x8] sm:$0xff] %vm139_vm0, %v137_v6  ;;  %856 = vmatpush.msrb.mxu0 %v2687_v5  ;;  %v2681_v24 = vld [vmem:[%s4995_s5 + $0x1a0] sm:$0xff] }
  0xc7   :  { %912 = vmatpush.msrb.mxu2 %v3981_v39  ;;  %v221_v8 = vpop.f32.mrf.mxu3  ;;  %934 = vmatpush.msrb.mxu3 %v2689_v63 }
  0xc8   :  { %880 = vmatpush.msrb.mxu1 %v3890_v26  ;;  %v222_v11 = vadd.f32 %v2793_v58, %v221_v8  ;;  %857 = vmatpush.msrb.mxu0 %v2686_v7 }
  0xc9   :  { %913 = vmatpush.msrb.mxu2 %v3995_v41  ;;  %935 = vmatpush.msrb.mxu3 %v2688_v2 }
  0xca   :  { %881 = vmatpush.msrb.mxu1 %v3903_v28  ;;  %226 = vst.msk [vmem:[#allocation2 + $0x18] sm:$0xff] %vm139_vm0, %v222_v11  ;;  %858 = vmatpush.msrb.mxu0 %v2685_v9  ;;  %v162_v15 = vpop.f32.mrf.mxu1  ;;  %v2799_v11 = vld [vmem:[%s4994_s4 + $0x2] ss:$0 sm:$0xff] }
  0xcb   :  { %914 = vmatpush.msrb.mxu2 %v4009_v43  ;;  %v163_v17 = vadd.f32 %v4161_v12, %v162_v15  ;;  %936 = vmatpush.msrb.mxu3 %v2687_v5 }
  0xcc   :  { %882 = vmatpush.msrb.mxu1 %v3917_v30  ;;  %859 = vmatpush.msrb.mxu0 %v2684_v14  ;;  %v2678_v30 = vld [vmem:[%s4995_s5 + $0x188] sm:$0xff] }
  0xcd   :  { %915 = vmatpush.msrb.mxu2 %v4022_v45  ;;  %v244_v19 = vpop.f32.mrf.mxu0  ;;  %168 = vst.msk [vmem:[#allocation3] sm:$0xff] %vm139_vm0, %v163_v17  ;;  %724 = vmatmul.f32.gmra.mxu1 %v3468_v10  ;;  %v958_v59 = vld [vmem:[#allocation2 + $0x8] sm:$0xff] }
  0xce   :  { %883 = vmatpush.msrb.mxu1 %v3932_v32  ;;  %v245_v21 = vadd.f32 %v4161_v12, %v244_v19  ;;  %v190_v22 = vpop.f32.mrf.mxu2  ;;  %860 = vmatpush.msrb.mxu0 %v2683_v18  ;;  %v2677_v32 = vld [vmem:[%s4995_s5 + $0x180] sm:$0xff] }
  0xcf   :  { %916 = vmatpush.msrb.mxu2 %v4036_v47  ;;  %v191_v23 = vadd.f32 %v4172_v16, %v190_v22  ;;  %937 = vmatpush.msrb.mxu3 %v2686_v7  ;;  %v2798_v7 = vld [vmem:[%s4996_s6 + $0x1] ss:$0 sm:$0xff] }
  0xd0   :  { %884 = vmatpush.msrb.mxu1 %v3946_v34  ;;  %251 = vst.msk [vmem:[#allocation3 + $0x10] sm:$0xff] %vm139_vm0, %v245_v21  ;;  %861 = vmatpush.msrb.mxu0 %v2682_v20 }
  0xd1   :  { %917 = vmatpush.msrb.mxu2 %v4053_v49  ;;  %196 = vst.msk [vmem:[#allocation4] sm:$0xff] %vm139_vm0, %v191_v23  ;;  %v387_v26 = vpop.f32.mrf.mxu3  ;;  %938 = vmatpush.msrb.mxu3 %v2685_v9  ;;  %v960_v58 = vld [vmem:[#allocation2 + $0x18] sm:$0xff]  ;;  %v2800_v23 = vld [vmem:[%s5017_s1 + $0x2] ss:$0 sm:$0xff] }
  0xd2   :  { %885 = vmatpush.msrb.mxu1 %v3959_v36  ;;  %v388_v28 = vadd.f32 %v4196_v25, %v387_v26  ;;  %862 = vmatpush.msrb.mxu0 %v2681_v24 }
  0xd3   :  { %918 = vmatpush.msrb.mxu2 %v4067_v51  ;;  %939 = vmatpush.msrb.mxu3 %v2684_v14 }
  0xd4   :  { %886 = vmatpush.msrb.mxu1 %v3973_v38  ;;  %394 = vst.msk [vmem:[#allocation3 + $0x20] sm:$0xff] %vm139_vm0, %v388_v28  ;;  %863 = vmatpush.msrb.mxu0 %v2680_v27  ;;  %v4237_v38 = vld [vmem:[%s5017_s1 + $0x1] ss:$0 sm:$0xff] }
  0xd5   :  { %919 = vmatpush.msrb.mxu2 %v4081_v53  ;;  %940 = vmatpush.msrb.mxu3 %v2683_v18  ;;  %v973_v51 = vld [vmem:[#allocation3] sm:$0xff] }
  0xd6   :  { %887 = vmatpush.msrb.mxu1 %v3990_v40  ;;  %864 = vmatpush.msrb.mxu0 %v2679_v29  ;;  %v957_v53 = vld [vmem:[#allocation2] sm:$0xff] }
  0xd7   :  { %920 = vmatpush.msrb.mxu2 %v4095_v55  ;;  %v247_v31 = vpop.f32.mrf.mxu0  ;;  %941 = vmatpush.msrb.mxu3 %v2682_v20  ;;  %v975_v45 = vld [vmem:[#allocation3 + $0x10] sm:$0xff] }
  0xd8   :  { %888 = vmatpush.msrb.mxu1 %v4004_v42  ;;  %921 = vmatmul.f32.vlgmr.msrb.gmra.mxu2 %v3400_v0  ;;  %v248_v33 = vadd.f32 %v4161_v12, %v247_v31 }
  0xd9   :  { %865 = vmatpush.msrb.mxu0 %v2678_v30  ;;  %942 = vmatpush.msrb.mxu3 %v2681_v24 }
  0xda   :  { %889 = vmatpush.msrb.mxu1 %v4017_v44  ;;  %252 = vst.msk [vmem:[#allocation3 + $0x18] sm:$0xff] %vm139_vm0, %v248_v33  ;;  %v193_v34 = vpop.f32.mrf.mxu2  ;;  %v390_v35 = vpop.f32.mrf.mxu3  ;;  %v2896_v44 = vld [vmem:[%s5016_s19 + $0x10] sm:$0xff] }
  0xdb   :  { %866 = vmatpush.msrb.mxu0 %v2677_v32  ;;  %v194_v36 = vadd.f32 %v4172_v16, %v193_v34  ;;  %v391_v37 = vadd.f32 %v4196_v25, %v390_v35  ;;  %943 = vmatpush.msrb.mxu3 %v2680_v27  ;;  %v4300_v27 = vld [vmem:[%s4996_s6 + $0x2] ss:$0 sm:$0xff] }
  0xdc   :  { %890 = vmatpush.msrb.mxu1 %v4031_v46  ;;  %867 = vmatmul.f32.vlgmr.msrb.gmra.mxu0 %v3419_v3 }
  0xdd   :  { %197 = vst.msk [vmem:[#allocation4 + $0x8] sm:$0xff] %vm139_vm0, %v194_v36  ;;  %944 = vmatpush.msrb.mxu3 %v2679_v29 }
  0xde   :  { %891 = vmatpush.msrb.mxu1 %v4045_v48  ;;  %395 = vst.msk [vmem:[#allocation3 + $0x28] sm:$0xff] %vm139_vm0, %v391_v37 }
  0xdf   :  { %945 = vmatpush.msrb.mxu3 %v2678_v30 }
  0xe0   :  { %892 = vmatpush.msrb.mxu1 %v4060_v50  ;;  %924 = vmatmul.f32.gmra.mxu2 %v3468_v10 }
  0xe1   :  { %v976_v3 = vld [vmem:[#allocation3 + $0x18] sm:$0xff]  ;;  %946 = vmatpush.msrb.mxu3 %v2677_v32 }
  0xe2   :  { %893 = vmatpush.msrb.mxu1 %v4074_v52  ;;  %947 = vmatmul.f32.vlgmr.msrb.gmra.mxu3 %v2896_v44  ;;  %v959_v52 = vld [vmem:[#allocation2 + $0x10] sm:$0xff]  ;;  %v4317_v44 = vld [vmem:[%s4994_s4 + $0x3] ss:$0 sm:$0xff] }
  0xe3   :  { %v358_v39 = vpop.f32.mrf.mxu2 }
  0xe4   :  { %894 = vmatpush.msrb.mxu1 %v4088_v54  ;;  %870 = vmatmul.f32.gmra.mxu0 %v3487_v13  ;;  %v359_v40 = vadd.f32 %v4237_v38, %v358_v39  ;;  %v165_v41 = vpop.f32.mrf.mxu1  ;;  %v990_v33 = vld [vmem:[#allocation4 + $0x8] sm:$0xff] }
  0xe5   :  { %895 = vmatmul.f32.vlgmr.msrb.gmra.mxu1 %v3400_v0  ;;  %v166_v42 = vadd.f32 %v4161_v12, %v165_v41  ;;  %v978_v43 = vld [vmem:[#allocation3 + $0x28] sm:$0xff]  ;;  %v977_v0 = vld [vmem:[#allocation3 + $0x20] sm:$0xff] }
  0xe6   :  { %2702 = vmatpush.xpose.msk.msra.mxu1 %vm139_vm0, %v976_v3  ;;  %365 = vst.msk [vmem:[#allocation2 + $0x20] sm:$0xff] %vm139_vm0, %v359_v40  ;;  %2706 = vmatpush.xpose.msk.msra.mxu2 %vm139_vm0, %v978_v43 }
  0xe7   :  { %169 = vst.msk [vmem:[#allocation3 + $0x8] sm:$0xff] %vm139_vm0, %v166_v42 }
  0xea   :  { %2703 = vmatpush.xpose.msk.msra.mxu1 %vm139_vm0, %v975_v45  ;;  %2707 = vmatpush.xpose.msk.msra.mxu2 %vm139_vm0, %v977_v0 }
  0xeb   :  { %950 = vmatmul.f32.gmra.mxu3 %v3468_v10 }
  0xec   :  { %v361_v13 = vpop.f32.mrf.mxu2 }
  0xed   :  { %898 = vmatmul.f32.gmra.mxu1 %v3468_v10  ;;  %v362_v46 = vadd.f32 %v4237_v38, %v361_v13  ;;  %v270_v47 = vpop.f32.mrf.mxu1  ;;  %v961_v48 = vld [vmem:[#allocation2 + $0x20] sm:$0xff] }
  0xee   :  { %v271_v49 = vadd.f32 %v4172_v16, %v270_v47  ;;  %2708 = vmatmul.msk.f32.vlgmr.msra.gmra.mxu2 %vm139_vm0, %v961_v48  ;;  %v974_v50 = vld [vmem:[#allocation3 + $0x8] sm:$0xff] }
  0xef   :  { %366 = vst.msk [vmem:[#allocation2 + $0x28] sm:$0xff] %vm139_vm0, %v362_v46  ;;  %2698 = vmatpush.xpose.msk.msra.mxu0 %vm139_vm0, %v974_v50  ;;  %v4323_v46 = vld [vmem:[%s5017_s1 + $0x3] ss:$0 sm:$0xff] }
  0xf0   :  { %277 = vst.msk [vmem:[#allocation4 + $0x10] sm:$0xff] %vm139_vm0, %v271_v49 }
  0xf3   :  { %2699 = vmatpush.xpose.msk.msra.mxu0 %vm139_vm0, %v973_v51 }
  0xf5   :  { %2704 = vmatmul.msk.f32.vlgmr.msra.gmra.mxu1 %vm139_vm0, %v959_v52  ;;  %v470_v54 = vpop.f32.mrf.mxu2 }
  0xf6   :  { %v471_v10 = vadd.f32 %v4196_v25, %v470_v54  ;;  %v962_v55 = vld [vmem:[#allocation2 + $0x28] sm:$0xff]  ;;  %2700 = vmatmul.msk.f32.vlgmr.msra.gmra.mxu0 %vm139_vm0, %v957_v53 }
  0xf7   :  { %2709 = vmatmul.msk.f32.gmra.mxu2 %vm139_vm0, %v962_v55 }
  0xf8   :  { %477 = vst.msk [vmem:[#allocation3 + $0x30] sm:$0xff] %vm139_vm0, %v471_v10  ;;  %v273_v56 = vpop.f32.mrf.mxu1 }
  0xf9   :  { %v274_v57 = vadd.f32 %v4172_v16, %v273_v56 }
  0xfb   :  { %278 = vst.msk [vmem:[#allocation4 + $0x18] sm:$0xff] %vm139_vm0, %v274_v57 }
  0xfd   :  { %2705 = vmatmul.msk.f32.gmra.mxu1 %vm139_vm0, %v960_v58 }
  0xfe   :  { %v473_v60 = vpop.f32.mrf.mxu2  ;;  %2701 = vmatmul.msk.f32.gmra.mxu0 %vm139_vm0, %v958_v59 }
  0xff   :  { %v474_v61 = vadd.f32 %v4196_v25, %v473_v60  ;;  %v979_v5 = vld [vmem:[#allocation3 + $0x30] sm:$0xff] }
 0x101   :  { %478 = vst.msk [vmem:[#allocation3 + $0x38] sm:$0xff] %vm139_vm0, %v474_v61  ;;  %v444_v62 = vpop.f32.mrf.mxu1 }
 0x102   :  { %v445_v63 = vadd.f32 %v4237_v38, %v444_v62  ;;  %v992_v60 = vld [vmem:[#allocation4 + $0x18] sm:$0xff] }
 0x104   :  { %451 = vst.msk [vmem:[#allocation2 + $0x30] sm:$0xff] %vm139_vm0, %v445_v63 }
 0x108   :  { %v980_v1 = vld [vmem:[#allocation3 + $0x38] sm:$0xff] }
 0x109   :  { %v447_v2 = vpop.f32.mrf.mxu1  ;;  %2710 = vmatpush.xpose.msk.msra.mxu3 %vm139_vm0, %v980_v1 }
 0x10a   :  { %v448_v4 = vadd.f32 %v4237_v38, %v447_v2  ;;  %v989_v38 = vld [vmem:[#allocation4] sm:$0xff]  ;;  %v991_v2 = vld [vmem:[#allocation4 + $0x10] sm:$0xff] }
 0x10b   :  { %v963_v6 = vld [vmem:[#allocation2 + $0x30] sm:$0xff] }
 0x10c   :  { %452 = vst.msk [vmem:[#allocation2 + $0x38] sm:$0xff] %vm139_vm0, %v448_v4 }
 0x10d   :  { %2711 = vmatpush.xpose.msk.msra.mxu3 %vm139_vm0, %v979_v5 }
 0x110   :  { %v416_v8 = vpop.f32.mrf.mxu0  ;;  %2712 = vmatmul.msk.f32.vlgmr.msra.gmra.mxu3 %vm139_vm0, %v963_v6 }
 0x111   :  { %v417_v9 = vadd.f32 %v2798_v7, %v416_v8 }
 0x113   :  { %423 = vst.msk [vmem:[#allocation4 + $0x20] sm:$0xff] %vm139_vm0, %v417_v9  ;;  %v613_v12 = vpop.f32.mrf.mxu1  ;;  %v964_v35 = vld [vmem:[#allocation2 + $0x38] sm:$0xff] }
 0x114   :  { %v614_v14 = vadd.f32 %v2799_v11, %v613_v12  ;;  %v2804_v12 = vld [vmem:[%s4996_s6 + $0x3] ss:$0 sm:$0xff] }
 0x116   :  { %620 = vst.msk [vmem:[#allocation3 + $0x40] sm:$0xff] %vm139_vm0, %v614_v14  ;;  %v496_v15 = vpop.f32.mrf.mxu3 }
 0x117   :  { %v497_v16 = vadd.f32 %v2798_v7, %v496_v15 }
 0x118   :  { %2713 = vmatmul.msk.f32.gmra.mxu3 %vm139_vm0, %v964_v35 }
 0x119   :  { %503 = vst.msk [vmem:[#allocation4 + $0x30] sm:$0xff] %vm139_vm0, %v497_v16 }
 0x11b   :  { %v419_v17 = vpop.f32.mrf.mxu0  ;;  %v616_v18 = vpop.f32.mrf.mxu1 }
 0x11c   :  { %v420_v19 = vadd.f32 %v2798_v7, %v419_v17  ;;  %v617_v20 = vadd.f32 %v2799_v11, %v616_v18 }
 0x11d   :  { %v981_v29 = vld [vmem:[#allocation3 + $0x40] sm:$0xff] }
 0x11e   :  { %424 = vst.msk [vmem:[#allocation4 + $0x28] sm:$0xff] %vm139_vm0, %v420_v19 }
 0x11f   :  { %621 = vst.msk [vmem:[#allocation3 + $0x48] sm:$0xff] %vm139_vm0, %v617_v20  ;;  %v499_v21 = vpop.f32.mrf.mxu3 }
 0x120   :  { %v500_v22 = vadd.f32 %v2798_v7, %v499_v21  ;;  %v993_v7 = vld [vmem:[#allocation4 + $0x20] sm:$0xff] }
 0x122   :  { %504 = vst.msk [vmem:[#allocation4 + $0x38] sm:$0xff] %vm139_vm0, %v500_v22 }
 0x123   :  { %v584_v24 = vpop.f32.mrf.mxu0 }
 0x124   :  { %v585_v25 = vadd.f32 %v2800_v23, %v584_v24 }
 0x125   :  { %v994_v5 = vld [vmem:[#allocation4 + $0x28] sm:$0xff] }
 0x126   :  { %591 = vst.msk [vmem:[#allocation2 + $0x40] sm:$0xff] %vm139_vm0, %v585_v25  ;;  %v982_v26 = vld [vmem:[#allocation3 + $0x48] sm:$0xff] }
 0x127   :  { %2714 = vmatpush.xpose.msk.msrb.mxu0 %vm139_vm0, %v982_v26  ;;  %v642_v28 = vpop.f32.mrf.mxu2 }
 0x128   :  { %v643_v30 = vadd.f32 %v4300_v27, %v642_v28 }
 0x12a   :  { %v670_v31 = vpop.f32.mrf.mxu3  ;;  %649 = vst.msk [vmem:[#allocation4 + $0x40] sm:$0xff] %vm139_vm0, %v643_v30 }
 0x12b   :  { %v671_v32 = vadd.f32 %v2800_v23, %v670_v31  ;;  %2715 = vmatpush.xpose.msk.msrb.mxu0 %vm139_vm0, %v981_v29 }
 0x12c   :  { %v587_v34 = vpop.f32.mrf.mxu0 }
 0x12d   :  { %677 = vst.msk [vmem:[#allocation2 + $0x50] sm:$0xff] %vm139_vm0, %v671_v32  ;;  %v588_v36 = vadd.f32 %v2800_v23, %v587_v34  ;;  %v965_v37 = vld [vmem:[#allocation2 + $0x40] sm:$0xff]  ;;  %v996_v34 = vld [vmem:[#allocation4 + $0x38] sm:$0xff] }
 0x12e   :  { %2716 = vmatmul.msk.f32.vlgmr.msrb.gmra.mxu0 %vm139_vm0, %v965_v37 }
 0x12f   :  { %1514 = vmatpush.msra.mxu0 %v990_v33  ;;  %592 = vst.msk [vmem:[#allocation2 + $0x48] sm:$0xff] %vm139_vm0, %v588_v36 }
 0x131   :  { %1515 = vmatpush.msra.mxu0 %v989_v38  ;;  %v997_v50 = vld [vmem:[#allocation4 + $0x40] sm:$0xff] }
 0x132   :  { %v673_v3 = vpop.f32.mrf.mxu3 }
 0x133   :  { %v674_v39 = vadd.f32 %v2800_v23, %v673_v3  ;;  %v995_v3 = vld [vmem:[#allocation4 + $0x30] sm:$0xff] }
 0x134   :  { %v696_v40 = vpop.f32.mrf.mxu0  ;;  %v967_v1 = vld [vmem:[#allocation2 + $0x50] sm:$0xff] }
 0x135   :  { %678 = vst.msk [vmem:[#allocation2 + $0x58] sm:$0xff] %vm139_vm0, %v674_v39  ;;  %v697_v41 = vadd.f32 %v2799_v11, %v696_v40 }
 0x136   :  { %v645_v42 = vpop.f32.mrf.mxu2  ;;  %v966_v56 = vld [vmem:[#allocation2 + $0x48] sm:$0xff] }
 0x137   :  { %703 = vst.msk [vmem:[#allocation3 + $0x50] sm:$0xff] %vm139_vm0, %v697_v41  ;;  %v646_v43 = vadd.f32 %v4300_v27, %v645_v42  ;;  %2717 = vmatmul.msk.f32.gmra.mxu0 %vm139_vm0, %v966_v56 }
 0x139   :  { %650 = vst.msk [vmem:[#allocation4 + $0x48] sm:$0xff] %vm139_vm0, %v646_v43 }
 0x13b   :  { %v839_v45 = vpop.f32.mrf.mxu3 }
 0x13c   :  { %v840_v0 = vadd.f32 %v4317_v44, %v839_v45  ;;  %v699_v13 = vpop.f32.mrf.mxu0  ;;  %v968_v8 = vld [vmem:[#allocation2 + $0x58] sm:$0xff] }
 0x13d   :  { %v700_v47 = vadd.f32 %v2799_v11, %v699_v13 }
 0x13e   :  { %846 = vst.msk [vmem:[#allocation3 + $0x60] sm:$0xff] %vm139_vm0, %v840_v0  ;;  %v983_v58 = vld [vmem:[#allocation3 + $0x50] sm:$0xff] }
 0x13f   :  { %704 = vst.msk [vmem:[#allocation3 + $0x58] sm:$0xff] %vm139_vm0, %v700_v47  ;;  %v810_v48 = vpop.f32.mrf.mxu2 }
 0x140   :  { %v998_v49 = vld [vmem:[#allocation4 + $0x48] sm:$0xff]  ;;  %v811_v51 = vadd.f32 %v4323_v46, %v810_v48 }
 0x141   :  { %1630 = vmatpush.msrb.mxu0 %v998_v49 }
 0x142   :  { %817 = vst.msk [vmem:[#allocation2 + $0x60] sm:$0xff] %vm139_vm0, %v811_v51  ;;  %v722_v53 = vpop.f32.mrf.mxu1 }
 0x143   :  { %v842_v52 = vpop.f32.mrf.mxu3  ;;  %1631 = vmatpush.msrb.mxu0 %v997_v50  ;;  %v723_v10 = vadd.f32 %v4300_v27, %v722_v53 }
 0x144   :  { %v843_v54 = vadd.f32 %v4317_v44, %v842_v52 }
 0x145   :  { %729 = vst.msk [vmem:[#allocation4 + $0x50] sm:$0xff] %vm139_vm0, %v723_v10  ;;  %v985_v4 = vld [vmem:[#allocation3 + $0x60] sm:$0xff] }
 0x146   :  { %847 = vst.msk [vmem:[#allocation3 + $0x68] sm:$0xff] %vm139_vm0, %v843_v54  ;;  %v984_v55 = vld [vmem:[#allocation3 + $0x58] sm:$0xff] }
 0x147   :  { %2718 = vmatpush.xpose.msk.msrb.mxu1 %vm139_vm0, %v984_v55  ;;  %v813_v57 = vpop.f32.mrf.mxu2 }
 0x148   :  { %v814_v59 = vadd.f32 %v4323_v46, %v813_v57 }
 0x149   :  { %v969_v6 = vld [vmem:[#allocation2 + $0x60] sm:$0xff] }
 0x14a   :  { %818 = vst.msk [vmem:[#allocation2 + $0x68] sm:$0xff] %vm139_vm0, %v814_v59  ;;  %v725_v61 = vpop.f32.mrf.mxu1 }
 0x14b   :  { %2719 = vmatpush.xpose.msk.msrb.mxu1 %vm139_vm0, %v983_v58  ;;  %v726_v62 = vadd.f32 %v4300_v27, %v725_v61 }
 0x14c   :  { %v999_v11 = vld [vmem:[#allocation4 + $0x50] sm:$0xff] }
 0x14d   :  { %v986_v63 = vld [vmem:[#allocation3 + $0x68] sm:$0xff]  ;;  %730 = vst.msk [vmem:[#allocation4 + $0x58] sm:$0xff] %vm139_vm0, %v726_v62 }
 0x14e   :  { %2722 = vmatpush.xpose.msk.msrb.mxu2 %vm139_vm0, %v986_v63  ;;  %2720 = vmatmul.msk.f32.vlgmr.msrb.gmra.mxu1 %vm139_vm0, %v967_v1 }
 0x14f   :  { %1543 = vmatpush.msra.mxu1 %v992_v60 }
 0x151   :  { %1544 = vmatpush.msra.mxu1 %v991_v2  ;;  %v970_v16 = vld [vmem:[#allocation2 + $0x68] sm:$0xff] }
 0x152   :  { %2723 = vmatpush.xpose.msk.msrb.mxu2 %vm139_vm0, %v985_v4 }
 0x154   :  { %v1000_v9 = vld [vmem:[#allocation4 + $0x58] sm:$0xff] }
 0x155   :  { %2724 = vmatmul.msk.f32.vlgmr.msrb.gmra.mxu2 %vm139_vm0, %v969_v6  ;;  %1659 = vmatpush.msrb.mxu1 %v1000_v9 }
 0x156   :  { %1572 = vmatpush.msra.mxu2 %v994_v5  ;;  %2721 = vmatmul.msk.f32.gmra.mxu1 %vm139_vm0, %v968_v8 }
 0x157   :  { %1660 = vmatpush.msrb.mxu1 %v999_v11 }
 0x158   :  { %1573 = vmatpush.msra.mxu2 %v993_v7 }
 0x159   :  { %v868_v14 = vpop.f32.mrf.mxu0 }
 0x15a   :  { %v869_v15 = vadd.f32 %v2804_v12, %v868_v14 }
 0x15b   :  { %v922_v17 = vpop.f32.mrf.mxu2 }
 0x15c   :  { %875 = vst.msk [vmem:[#allocation4 + $0x60] sm:$0xff] %vm139_vm0, %v869_v15  ;;  %v923_v18 = vadd.f32 %v4317_v44, %v922_v17 }
 0x15d   :  { %2725 = vmatmul.msk.f32.gmra.mxu2 %vm139_vm0, %v970_v16 }
 0x15e   :  { %929 = vst.msk [vmem:[#allocation3 + $0x70] sm:$0xff] %vm139_vm0, %v923_v18 }
 0x161   :  { %v871_v19 = vpop.f32.mrf.mxu0 }
 0x162   :  { %v896_v20 = vpop.f32.mrf.mxu1  ;;  %v872_v21 = vadd.f32 %v2804_v12, %v871_v19 }
 0x163   :  { %v897_v22 = vadd.f32 %v4323_v46, %v896_v20  ;;  %v925_v23 = vpop.f32.mrf.mxu2  ;;  %v1001_v57 = vld [vmem:[#allocation4 + $0x60] sm:$0xff] }
 0x164   :  { %876 = vst.msk [vmem:[#allocation4 + $0x68] sm:$0xff] %vm139_vm0, %v872_v21  ;;  %v926_v24 = vadd.f32 %v4317_v44, %v925_v23 }
 0x165   :  { %903 = vst.msk [vmem:[#allocation2 + $0x70] sm:$0xff] %vm139_vm0, %v897_v22  ;;  %v948_v25 = vpop.f32.mrf.mxu3  ;;  %v987_v31 = vld [vmem:[#allocation3 + $0x70] sm:$0xff] }
 0x166   :  { %930 = vst.msk [vmem:[#allocation3 + $0x78] sm:$0xff] %vm139_vm0, %v926_v24  ;;  %v949_v27 = vadd.f32 %v2804_v12, %v948_v25 }
 0x168   :  { %955 = vst.msk [vmem:[#allocation4 + $0x70] sm:$0xff] %vm139_vm0, %v949_v27 }
 0x16a   :  { %v899_v26 = vpop.f32.mrf.mxu1 }
 0x16b   :  { %v900_v28 = vadd.f32 %v4323_v46, %v899_v26  ;;  %v1002_v55 = vld [vmem:[#allocation4 + $0x68] sm:$0xff] }
 0x16c   :  { %v971_v35 = vld [vmem:[#allocation2 + $0x70] sm:$0xff]  ;;  %1688 = vmatpush.msrb.mxu2 %v1002_v55 }
 0x16d   :  { %904 = vst.msk [vmem:[#allocation2 + $0x78] sm:$0xff] %vm139_vm0, %v900_v28  ;;  %v988_v29 = vld [vmem:[#allocation3 + $0x78] sm:$0xff] }
 0x16e   :  { %2726 = vmatpush.xpose.msk.msrb.mxu3 %vm139_vm0, %v988_v29  ;;  %v951_v30 = vpop.f32.mrf.mxu3  ;;  %1689 = vmatpush.msrb.mxu2 %v1001_v57 }
 0x16f   :  { %v952_v33 = vadd.f32 %v2804_v12, %v951_v30  ;;  %v1003_v60 = vld [vmem:[#allocation4 + $0x70] sm:$0xff] }
 0x171   :  { %v1104_v32 = vpop.f32.mrf.mxu2  ;;  %956 = vst.msk [vmem:[#allocation4 + $0x78] sm:$0xff] %vm139_vm0, %v952_v33 }
 0x172   :  { %2727 = vmatpush.xpose.msk.msrb.mxu3 %vm139_vm0, %v987_v31  ;;  %v4362_v36 = vmul.f32 0.17677669, %v1104_v32  ;;  %v1069_v45 = vpop.f32.mrf.mxu1 }
 0x173   :  { %v1034_v37 = vpop.f32.mrf.mxu0  ;;  %v4379_v46 = vmul.f32 0.17677669, %v1069_v45 }
 0x174   :  { %v1314_v38 = vsel %vm1301_vm1, %v4362_v36, -inf  ;;  %v4368_v39 = vmul.f32 0.17677669, %v1034_v37  ;;  %v972_v40 = vld [vmem:[#allocation2 + $0x78] sm:$0xff] }
 0x175   :  { %2728 = vmatmul.msk.f32.vlgmr.msrb.gmra.mxu3 %vm139_vm0, %v971_v35  ;;  %1315 = vmax.xlane.f32.xlu0 %v1314_v38  ;;  %v1308_v48 = vsel %vm1301_vm1, %v4379_v46, -inf }
 0x176   :  { %1601 = vmatpush.msra.mxu3 %v996_v34  ;;  %v1302_v42 = vsel %vm1301_vm1, %v4368_v39, -inf }
 0x178   :  { %1602 = vmatpush.msra.mxu3 %v995_v3  ;;  %v1004_v58 = vld [vmem:[#allocation4 + $0x78] sm:$0xff] }
 0x17a   :  { %v1107_v41 = vpop.f32.mrf.mxu2  ;;  %v1072_v10 = vpop.f32.mrf.mxu1  ;;  %1717 = vmatpush.msrb.mxu3 %v1004_v58 }
 0x17b   :  { %v4372_v43 = vmul.f32 0.17677669, %v1107_v41  ;;  %v1037_v44 = vpop.f32.mrf.mxu0  ;;  %v4393_v56 = vmul.f32 0.17677669, %v1072_v10 }
 0x17c   :  { %v4377_v13 = vmul.f32 0.17677669, %v1037_v44  ;;  %1718 = vmatpush.msrb.mxu3 %v1003_v60 }
 0x17d   :  { %2729 = vmatmul.msk.f32.gmra.mxu3 %vm139_vm0, %v972_v40  ;;  %v1317_v0 = vsel %vm1301_vm1, %v4372_v43, -inf  ;;  %1303 = vmax.xlane.f32.xlu0 %v1302_v42  ;;  %v1311_v59 = vsel %vm1301_vm1, %v4393_v56, -inf }
 0x17e   :  { %1318 = vmax.xlane.f32.xlu1 %v1317_v0  ;;  %v1305_v47 = vsel %vm1301_vm1, %v4377_v13, -inf }
 0x185   :  { %1309 = vmax.xlane.f32.xlu0 %v1308_v48 }
 0x186   :  { %1306 = vmax.xlane.f32.xlu1 %v1305_v47 }
 0x193   :  { %v1139_v49 = vpop.f32.mrf.mxu3 }
 0x194   :  { %v4385_v50 = vmul.f32 0.17677669, %v1139_v49 }
 0x196   :  { %v1320_v51 = vsel %vm1301_vm1, %v4385_v50, -inf }
 0x197   :  { %1321 = vmax.xlane.f32.xlu2 %v1320_v51 }
 0x19b   :  { %v1142_v5 = vpop.f32.mrf.mxu3 }
 0x19c   :  { %v4405_v6 = vmul.f32 0.17677669, %v1142_v5 }
 0x19e   :  { %v1323_v9 = vsel %vm1301_vm1, %v4405_v6, -inf }
 0x1ab   :  { %v1174_v52 = vpop.f32.mrf.mxu0 }
 0x1ac   :  { %v4389_v53 = vmul.f32 0.17677669, %v1174_v52 }
 0x1ae   :  { %v1326_v54 = vsel %vm1301_vm1, %v4389_v53, -inf }
 0x1af   :  { %1327 = vmax.xlane.f32.xlu1 %v1326_v54 }
 0x1b4   :  { %v1177_v12 = vpop.f32.mrf.mxu0 }
 0x1b5   :  { %v4413_v14 = vmul.f32 0.17677669, %v1177_v12 }
 0x1b7   :  { %1312 = vmax.xlane.f32.xlu1 %v1311_v59  ;;  %v1329_v17 = vsel %vm1301_vm1, %v4413_v14, -inf }
 0x1cb   :  { %v1209_v61 = vpop.f32.mrf.mxu1 }
 0x1cc   :  { %v4397_v62 = vmul.f32 0.17677669, %v1209_v61 }
 0x1ce   :  { %v1332_v63 = vsel %vm1301_vm1, %v4397_v62, -inf }
 0x1cf   :  { %1333 = vmax.xlane.f32.xlu1 %v1332_v63 }
 0x1d3   :  { %v1212_v31 = vpop.f32.mrf.mxu1 }
 0x1d8   :  { %v1244_v1 = vpop.f32.mrf.mxu2 }
 0x1d9   :  { %v4401_v2 = vmul.f32 0.17677669, %v1244_v1 }
 0x1db   :  { %v1338_v4 = vsel %vm1301_vm1, %v4401_v2, -inf }
 0x1dc   :  { %1339 = vmax.xlane.f32.xlu2 %v1338_v4 }
 0x1e0   :  { %v1247_v7 = vpop.f32.mrf.mxu2 }
 0x1e1   :  { %v4407_v8 = vmul.f32 0.17677669, %v1247_v7 }
 0x1e3   :  { %v1341_v11 = vsel %vm1301_vm1, %v4407_v8, -inf }
 0x1e4   :  { %1324 = vmax.xlane.f32.xlu2 %v1323_v9  ;;  %1342 = vmax.xlane.f32.xlu0 %v1341_v11 }
 0x1e8   :  { %v1316_v15 = vpop.xlane.xlu0 %1315 }
 0x1e9   :  { %v1354_v16 = vsub.f32 %v4362_v36, %v1316_v15  ;;  %v4430_v36 = vmul.f32 0.17677669, %v1212_v31 }
 0x1eb   :  { %v1374_v18 = vmul.f32 1.442695, %v1354_v16 }
 0x1ec   :  { %1330 = vmax.xlane.f32.xlu2 %v1329_v17 }
 0x1ed   :  { %2814 = vpow2.f32 %v1374_v18 }
 0x1f0   :  { %v1304_v19 = vpop.xlane.xlu0 %1303 }
 0x1f1   :  { %v1319_v20 = vpop.xlane.xlu1 %1318  ;;  %v1350_v25 = vsub.f32 %v4368_v39, %v1304_v19  ;;  %v1335_v39 = vsel %vm1301_vm1, %v4430_v36, -inf }
 0x1f2   :  { %v1355_v28 = vsub.f32 %v4372_v43, %v1319_v20 }
 0x1f3   :  { %v4418_v21 = vpop.eup %2814  ;;  %v1366_v34 = vmul.f32 1.442695, %v1350_v25 }
 0x1f4   :  { %v1410_v22 = vsel %vm1301_vm1, %v4418_v21, 0.0  ;;  %v1376_v35 = vmul.f32 1.442695, %v1355_v28 }
 0x1f5   :  { %1411 = vadd.xlane.f32.xlu1 %v1410_v22 }
 0x1f8   :  { %v1279_v23 = vpop.f32.mrf.mxu3  ;;  %v1310_v26 = vpop.xlane.xlu0 %1309 }
 0x1f9   :  { %v4422_v24 = vmul.f32 0.17677669, %v1279_v23  ;;  %v1307_v27 = vpop.xlane.xlu1 %1306  ;;  %v1352_v32 = vsub.f32 %v4379_v46, %v1310_v26 }
 0x1fa   :  { %v1351_v29 = vsub.f32 %v4377_v13, %v1307_v27 }
 0x1fb   :  { %v1344_v30 = vsel %vm1301_vm1, %v4422_v24, -inf  ;;  %v1370_v38 = vmul.f32 1.442695, %v1352_v32 }
 0x1fc   :  { %1345 = vmax.xlane.f32.xlu0 %v1344_v30  ;;  %v1368_v33 = vmul.f32 1.442695, %v1351_v29 }
 0x1fe   :  { %2816 = vpow2.f32 %v1368_v33 }
 0x1ff   :  { %2818 = vpow2.f32 %v1366_v34 }
 0x200   :  { %v1282_v37 = vpop.f32.mrf.mxu3  ;;  %2820 = vpow2.f32 %v1376_v35 }
 0x201   :  { %v4432_v3 = vmul.f32 0.17677669, %v1282_v37  ;;  %2822 = vpow2.f32 %v1370_v38 }
 0x203   :  { %v1347_v40 = vsel %vm1301_vm1, %v4432_v3, -inf }
 0x204   :  { %v4438_v41 = vpop.eup %2816  ;;  %1336 = vmax.xlane.f32.xlu0 %v1335_v39  ;;  %1348 = vmax.xlane.f32.xlu2 %v1347_v40 }
 0x205   :  { %v1401_v42 = vsel %vm1301_vm1, %v4438_v41, 0.0  ;;  %v4442_v43 = vpop.eup %2818 }
 0x206   :  { %1402 = vadd.xlane.f32.xlu1 %v1401_v42  ;;  %v4444_v44 = vpop.eup %2820  ;;  %v1398_v46 = vsel %vm1301_vm1, %v4442_v43, 0.0 }
 0x207   :  { %v4446_v45 = vpop.eup %2822  ;;  %v1413_v13 = vsel %vm1301_vm1, %v4444_v44, 0.0 }
 0x208   :  { %v1404_v49 = vsel %vm1301_vm1, %v4446_v45, 0.0 }
 0x20a   :  { %v1322_v0 = vpop.xlane.xlu2 %1321 }
 0x20b   :  { %v1356_v47 = vsub.f32 %v4385_v50, %v1322_v0 }
 0x20c   :  { %1414 = vadd.xlane.f32.xlu0 %v1413_v13  ;;  %1399 = vadd.xlane.f32.xlu2 %v1398_v46 }
 0x20d   :  { %v1378_v48 = vmul.f32 1.442695, %v1356_v47 }
 0x20e   :  { %1405 = vadd.xlane.f32.xlu1 %v1404_v49 }
 0x20f   :  { %2824 = vpow2.f32 %v1378_v48 }
 0x215   :  { %v4455_v51 = vpop.eup %2824 }
 0x216   :  { %v1416_v52 = vsel %vm1301_vm1, %v4455_v51, 0.0 }
 0x217   :  { %1417 = vadd.xlane.f32.xlu2 %v1416_v52 }
 0x222   :  { %v1328_v54 = vpop.xlane.xlu1 %1327 }
 0x223   :  { %v1358_v10 = vsub.f32 %v4389_v53, %v1328_v54 }
 0x225   :  { %v1382_v55 = vmul.f32 1.442695, %v1358_v10 }
 0x227   :  { %2826 = vpow2.f32 %v1382_v55 }
 0x22a   :  { %v1313_v50 = vpop.xlane.xlu1 %1312 }
 0x22b   :  { %v1353_v57 = vsub.f32 %v4393_v56, %v1313_v50 }
 0x22d   :  { %v4461_v58 = vpop.eup %2826  ;;  %v1372_v59 = vmul.f32 1.442695, %v1353_v57 }
 0x22e   :  { %v1422_v60 = vsel %vm1301_vm1, %v4461_v58, 0.0 }
 0x22f   :  { %2828 = vpow2.f32 %v1372_v59  ;;  %1423 = vadd.xlane.f32.xlu2 %v1422_v60 }
 0x235   :  { %v4465_v61 = vpop.eup %2828 }
 0x236   :  { %v1407_v63 = vsel %vm1301_vm1, %v4465_v61, 0.0 }
 0x237   :  { %1408 = vadd.xlane.f32.xlu2 %v1407_v63 }
 0x242   :  { %v1334_v53 = vpop.xlane.xlu1 %1333 }
 0x243   :  { %v1360_v1 = vsub.f32 %v4397_v62, %v1334_v53 }
 0x245   :  { %v1386_v4 = vmul.f32 1.442695, %v1360_v1 }
 0x247   :  { %2830 = vpow2.f32 %v1386_v4 }
 0x24d   :  { %v4470_v56 = vpop.eup %2830 }
 0x24e   :  { %v1428_v5 = vsel %vm1301_vm1, %v4470_v56, 0.0 }
 0x24f   :  { %v1340_v7 = vpop.xlane.xlu2 %1339  ;;  %1429 = vadd.xlane.f32.xlu2 %v1428_v5 }
 0x250   :  { %v1362_v9 = vsub.f32 %v4401_v2, %v1340_v7 }
 0x252   :  { %v1390_v11 = vmul.f32 1.442695, %v1362_v9 }
 0x254   :  { %2832 = vpow2.f32 %v1390_v11 }
 0x257   :  { %v1325_v12 = vpop.xlane.xlu2 %1324  ;;  %v1343_v15 = vpop.xlane.xlu0 %1342 }
 0x258   :  { %v1357_v16 = vsub.f32 %v4405_v6, %v1325_v12  ;;  %v1363_v17 = vsub.f32 %v4407_v8, %v1343_v15 }
 0x25a   :  { %v4477_v62 = vpop.eup %2832  ;;  %v1380_v18 = vmul.f32 1.442695, %v1357_v16  ;;  %v1392_v19 = vmul.f32 1.442695, %v1363_v17 }
 0x25b   :  { %v1434_v20 = vsel %vm1301_vm1, %v4477_v62, 0.0 }
 0x25c   :  { %2834 = vpow2.f32 %v1380_v18  ;;  %1435 = vadd.xlane.f32.xlu0 %v1434_v20 }
 0x25d   :  { %2836 = vpow2.f32 %v1392_v19  ;;  %v2750_v19 = vld [vmem:[%s4997_s7 + $0x30] sm:$0xff] }
 0x25f   :  { %v1331_v22 = vpop.xlane.xlu2 %1330 }
 0x260   :  { %v1359_v2 = vsub.f32 %v4413_v14, %v1331_v22  ;;  %v2749_v22 = vld [vmem:[%s4997_s7 + $0x28] sm:$0xff] }
 0x262   :  { %v4482_v23 = vpop.eup %2834  ;;  %v1384_v25 = vmul.f32 1.442695, %v1359_v2 }
 0x263   :  { %v4484_v26 = vpop.eup %2836  ;;  %v1419_v6 = vsel %vm1301_vm1, %v4482_v23, 0.0 }
 0x264   :  { %2838 = vpow2.f32 %v1384_v25  ;;  %1420 = vadd.xlane.f32.xlu0 %v1419_v6  ;;  %v1437_v8 = vsel %vm1301_vm1, %v4484_v26, 0.0  ;;  %v2748_v25 = vld [vmem:[%s4997_s7 + $0x20] sm:$0xff]  ;;  %v1753_v6 = vld [vmem:[%s4997_s7 + $0x8] sm:$0xff] }
 0x265   :  { %1438 = vadd.xlane.f32.xlu1 %v1437_v8  ;;  %v1752_v8 = vld [vmem:[%s4997_s7] sm:$0xff] }
 0x268   :  { %v1412_v27 = vpop.xlane.xlu1 %1411 }
 0x269   :  { %2840 = vrcp.f32 %v1412_v27 }
 0x26a   :  { %v4490_v28 = vpop.eup %2838 }
 0x26b   :  { %v1425_v14 = vsel %vm1301_vm1, %v4490_v28, 0.0 }
 0x26c   :  { %1426 = vadd.xlane.f32.xlu0 %v1425_v14 }
 0x26f   :  { %v2841_v29 = vpop.eup %2840  ;;  %v1346_v30 = vpop.xlane.xlu0 %1345 }
 0x270   :  { %v1364_v31 = vsub.f32 %v4422_v24, %v1346_v30  ;;  %v1466_v32 = vmul.f32 %v2841_v29, %v4418_v21 }
 0x272   :  { %v1394_v33 = vmul.f32 1.442695, %v1364_v31  ;;  %1482 = vst.msk [vmem:[#allocation9 + $0x20] sm:$0xff] %vm1301_vm1, %v1466_v32  ;;  %2734 = vmatmul.msk.f32.vlgmr.msra.gmra.mxu2 %vm1301_vm1, %v1466_v32 }
 0x274   :  { %2842 = vpow2.f32 %v1394_v33 }
 0x277   :  { %v1337_v34 = vpop.xlane.xlu0 %1336  ;;  %v1349_v35 = vpop.xlane.xlu2 %1348 }
 0x278   :  { %v1361_v37 = vsub.f32 %v4430_v36, %v1337_v34  ;;  %v1365_v38 = vsub.f32 %v4432_v3, %v1349_v35 }
 0x279   :  { %v1403_v39 = vpop.xlane.xlu1 %1402 }
 0x27a   :  { %v4500_v40 = vpop.eup %2842  ;;  %v1388_v42 = vmul.f32 1.442695, %v1361_v37  ;;  %v1396_v0 = vmul.f32 1.442695, %v1365_v38  ;;  %2844 = vrcp.f32 %v1403_v39 }
 0x27b   :  { %v1440_v21 = vsel %vm1301_vm1, %v4500_v40, 0.0 }
 0x27c   :  { %2846 = vpow2.f32 %v1388_v42  ;;  %1441 = vadd.xlane.f32.xlu1 %v1440_v21  ;;  %v2756_v42 = vld [vmem:[%s4997_s7 + $0x50] sm:$0xff]  ;;  %v2755_v21 = vld [vmem:[%s4997_s7 + $0x48] sm:$0xff] }
 0x27d   :  { %2848 = vpow2.f32 %v1396_v0 }
 0x27f   :  { %v1415_v24 = vpop.xlane.xlu0 %1414  ;;  %v1400_v13 = vpop.xlane.xlu2 %1399 }
 0x280   :  { %v2845_v46 = vpop.eup %2844  ;;  %2850 = vrcp.f32 %v1415_v24 }
 0x281   :  { %2852 = vrcp.f32 %v1400_v13  ;;  %v1406_v36 = vpop.xlane.xlu1 %1405  ;;  %v1463_v3 = vmul.f32 %v2845_v46, %v4438_v41  ;;  %v2754_v46 = vld [vmem:[%s4997_s7 + $0x40] sm:$0xff] }
 0x282   :  { %v4505_v47 = vpop.eup %2846  ;;  %2854 = vrcp.f32 %v1406_v36 }
 0x283   :  { %v4507_v48 = vpop.eup %2848  ;;  %v1431_v49 = vsel %vm1301_vm1, %v4505_v47, 0.0  ;;  %1479 = vst.msk [vmem:[#allocation9 + $0x8] sm:$0xff] %vm1301_vm1, %v1463_v3 }
 0x284   :  { %1432 = vadd.xlane.f32.xlu1 %v1431_v49  ;;  %v1443_v52 = vsel %vm1301_vm1, %v4507_v48, 0.0 }
 0x285   :  { %1444 = vadd.xlane.f32.xlu0 %v1443_v52 }
 0x286   :  { %v2851_v54 = vpop.eup %2850 }
 0x287   :  { %v2853_v10 = vpop.eup %2852  ;;  %v1467_v55 = vmul.f32 %v2851_v54, %v4444_v44 }
 0x288   :  { %v2855_v41 = vpop.eup %2854  ;;  %v1462_v50 = vmul.f32 %v2853_v10, %v4442_v43 }
 0x289   :  { %1483 = vst.msk [vmem:[#allocation9 + $0x28] sm:$0xff] %vm1301_vm1, %v1467_v55  ;;  %2735 = vmatmul.msk.f32.gmra.mxu2 %vm1301_vm1, %v1467_v55  ;;  %v1464_v57 = vmul.f32 %v2855_v41, %v4446_v45  ;;  %v2763_v41 = vld [vmem:[%s4997_s7 + $0x78] sm:$0xff] }
 0x28a   :  { %1478 = vst.msk [vmem:[#allocation9] sm:$0xff] %vm1301_vm1, %v1462_v50  ;;  %2730 = vmatmul.msk.f32.vlgmr.msra.gmra.mxu0 %vm1301_vm1, %v1462_v50  ;;  %v1418_v59 = vpop.xlane.xlu2 %1417  ;;  %v2762_v50 = vld [vmem:[%s4997_s7 + $0x70] sm:$0xff] }
 0x28b   :  { %1480 = vst.msk [vmem:[#allocation9 + $0x10] sm:$0xff] %vm1301_vm1, %v1464_v57  ;;  %2856 = vrcp.f32 %v1418_v59  ;;  %2732 = vmatmul.msk.f32.vlgmr.msra.gmra.mxu1 %vm1301_vm1, %v1464_v57  ;;  %v2761_v57 = vld [vmem:[%s4997_s7 + $0x68] sm:$0xff]  ;;  %v2760_v59 = vld [vmem:[%s4997_s7 + $0x60] sm:$0xff] }
 0x291   :  { %v2857_v44 = vpop.eup %2856 }
 0x292   :  { %2731 = vmatmul.msk.f32.gmra.mxu0 %vm1301_vm1, %v1463_v3  ;;  %v1468_v43 = vmul.f32 %v2857_v44, %v4455_v51 }
 0x294   :  { %1484 = vst.msk [vmem:[#allocation9 + $0x30] sm:$0xff] %vm1301_vm1, %v1468_v43  ;;  %2736 = vmatmul.msk.f32.vlgmr.msra.gmra.mxu3 %vm1301_vm1, %v1468_v43 }
 0x295   :  { %1891 = vmatpush.msra.mxu3 %v2763_v41 }
 0x297   :  { %1892 = vmatpush.msra.mxu3 %v2762_v50 }
 0x299   :  { %1893 = vmatpush.msra.mxu3 %v2761_v57 }
 0x29b   :  { %1894 = vmatpush.msra.mxu3 %v2760_v59 }
 0x2a2   :  { %v1424_v45 = vpop.xlane.xlu2 %1423 }
 0x2a3   :  { %2858 = vrcp.f32 %v1424_v45 }
 0x2a9   :  { %v2859_v60 = vpop.eup %2858 }
 0x2aa   :  { %v1470_v63 = vmul.f32 %v2859_v60, %v4461_v58  ;;  %v1409_v53 = vpop.xlane.xlu2 %1408 }
 0x2ab   :  { %2860 = vrcp.f32 %v1409_v53 }
 0x2ac   :  { %1486 = vst.msk [vmem:[#allocation9 + $0x40] sm:$0xff] %vm1301_vm1, %v1470_v63  ;;  %2738 = vmatmul.msk.f32.vlgmr.msrb.gmra.mxu0 %vm1301_vm1, %v1470_v63 }
 0x2b1   :  { %v2861_v1 = vpop.eup %2860 }
 0x2b2   :  { %v1465_v4 = vmul.f32 %v2861_v1, %v4465_v61 }
 0x2b4   :  { %1481 = vst.msk [vmem:[#allocation9 + $0x18] sm:$0xff] %vm1301_vm1, %v1465_v4  ;;  %2733 = vmatmul.msk.f32.gmra.mxu1 %vm1301_vm1, %v1465_v4 }
 0x2c2   :  { %v1430_v51 = vpop.xlane.xlu2 %1429 }
 0x2c3   :  { %2862 = vrcp.f32 %v1430_v51 }
 0x2c9   :  { %v2863_v5 = vpop.eup %2862 }
 0x2ca   :  { %v1472_v7 = vmul.f32 %v2863_v5, %v4470_v56 }
 0x2cc   :  { %1488 = vst.msk [vmem:[#allocation9 + $0x50] sm:$0xff] %vm1301_vm1, %v1472_v7  ;;  %2740 = vmatmul.msk.f32.vlgmr.msrb.gmra.mxu1 %vm1301_vm1, %v1472_v7 }
 0x2cf   :  { %v1436_v58 = vpop.xlane.xlu0 %1435 }
 0x2d0   :  { %2864 = vrcp.f32 %v1436_v58 }
 0x2d6   :  { %v2865_v9 = vpop.eup %2864 }
 0x2d7   :  { %v1474_v11 = vmul.f32 %v2865_v9, %v4477_v62  ;;  %v1421_v12 = vpop.xlane.xlu0 %1420  ;;  %v2751_v62 = vld [vmem:[%s4997_s7 + $0x38] sm:$0xff] }
 0x2d8   :  { %2866 = vrcp.f32 %v1421_v12  ;;  %v1439_v61 = vpop.xlane.xlu1 %1438  ;;  %1813 = vmatpush.msra.mxu1 %v2751_v62 }
 0x2d9   :  { %1490 = vst.msk [vmem:[#allocation9 + $0x60] sm:$0xff] %vm1301_vm1, %v1474_v11  ;;  %2868 = vrcp.f32 %v1439_v61  ;;  %2742 = vmatmul.msk.f32.vlgmr.msrb.gmra.mxu2 %vm1301_vm1, %v1474_v11 }
 0x2da   :  { %1814 = vmatpush.msra.mxu1 %v2750_v19 }
 0x2dc   :  { %1815 = vmatpush.msra.mxu1 %v2749_v22 }
 0x2de   :  { %v2867_v15 = vpop.eup %2866  ;;  %1816 = vmatpush.msra.mxu1 %v2748_v25 }
 0x2df   :  { %v2869_v16 = vpop.eup %2868  ;;  %v1427_v56 = vpop.xlane.xlu0 %1426  ;;  %v1469_v17 = vmul.f32 %v2867_v15, %v4482_v23  ;;  %v1755_v23 = vld [vmem:[%s4997_s7 + $0x18] sm:$0xff]  ;;  %v2805_v15 = vld [vmem:[%s4998_s8] ss:$0 sm:$0xff] }
 0x2e0   :  { %2870 = vrcp.f32 %v1427_v56  ;;  %v1475_v18 = vmul.f32 %v2869_v16, %v4484_v26  ;;  %v1754_v26 = vld [vmem:[%s4997_s7 + $0x10] sm:$0xff]  ;;  %1774 = vmatpush.msra.mxu0 %v1755_v23  ;;  %2040 = vmatpush.msrb.mxu1 %v2751_v62  ;;  %v1743_v16 = vld [vmem:[%s5016_s19] sm:$0xff] }
 0x2e1   :  { %1485 = vst.msk [vmem:[#allocation9 + $0x38] sm:$0xff] %vm1301_vm1, %v1469_v17  ;;  %2737 = vmatmul.msk.f32.gmra.mxu3 %vm1301_vm1, %v1469_v17  ;;  %v1748_v56 = vadd.f32 %v2805_v15, %v1743_v16 }
 0x2e2   :  { %1491 = vst.msk [vmem:[#allocation9 + $0x68] sm:$0xff] %vm1301_vm1, %v1475_v18  ;;  %2743 = vmatmul.msk.f32.gmra.mxu2 %vm1301_vm1, %v1475_v18  ;;  %1775 = vmatpush.msra.mxu0 %v1754_v26 }
 0x2e3   :  { %2041 = vmatpush.msrb.mxu1 %v2750_v19 }
 0x2e4   :  { %1776 = vmatpush.msra.mxu0 %v1753_v6 }
 0x2e5   :  { %2042 = vmatpush.msrb.mxu1 %v2749_v22  ;;  %v1744_v22 = vld [vmem:[%s5016_s19 + $0x8] sm:$0xff] }
 0x2e6   :  { %v2871_v20 = vpop.eup %2870  ;;  %1777 = vmatpush.msra.mxu0 %v1752_v8 }
 0x2e7   :  { %v1471_v2 = vmul.f32 %v2871_v20, %v4490_v28  ;;  %2043 = vmatpush.msrb.mxu1 %v2748_v25  ;;  %v1749_v25 = vadd.f32 %v2805_v15, %v1744_v22  ;;  %v2208_v15 = vld [vmem:[%s5001_s11 + $0x88] sm:$0xff]  ;;  %v2202_v22 = vld [vmem:[%s5001_s11 + $0x58] sm:$0xff] }
 0x2e8   :  { %2002 = vmatpush.msrb.mxu0 %v1755_v23 }
 0x2e9   :  { %1487 = vst.msk [vmem:[#allocation9 + $0x48] sm:$0xff] %vm1301_vm1, %v1471_v2  ;;  %2739 = vmatmul.msk.f32.gmra.mxu0 %vm1301_vm1, %v1471_v2 }
 0x2ea   :  { %2003 = vmatpush.msrb.mxu0 %v1754_v26 }
 0x2ec   :  { %2004 = vmatpush.msrb.mxu0 %v1753_v6 }
 0x2ee   :  { %2005 = vmatpush.msrb.mxu0 %v1752_v8 }
 0x2ef   :  { %v1442_v27 = vpop.xlane.xlu1 %1441 }
 0x2f0   :  { %2872 = vrcp.f32 %v1442_v27 }
 0x2f5   :  { %v1575_v28 = vpop.f32.mrf.mxu2 }
 0x2f6   :  { %v2873_v14 = vpop.eup %2872  ;;  %1730 = vst.msk [vmem:[#allocation5 + $0x20] sm:$0xff] %vm139_vm0, %v1575_v28 }
 0x2f7   :  { %v1476_v29 = vmul.f32 %v2873_v14, %v4500_v40  ;;  %v1433_v30 = vpop.xlane.xlu1 %1432  ;;  %v2757_v40 = vld [vmem:[%s4997_s7 + $0x58] sm:$0xff]  ;;  %s2952_s7 = smov 8  }
 0x2f8   :  { %2874 = vrcp.f32 %v1433_v30  ;;  %v1445_v31 = vpop.xlane.xlu0 %1444  ;;  %1852 = vmatpush.msra.mxu2 %v2757_v40 }
 0x2f9   :  { %1492 = vst.msk [vmem:[#allocation9 + $0x70] sm:$0xff] %vm1301_vm1, %v1476_v29  ;;  %2876 = vrcp.f32 %v1445_v31  ;;  %2744 = vmatmul.msk.f32.vlgmr.msrb.gmra.mxu3 %vm1301_vm1, %v1476_v29 }
 0x2fa   :  { %1853 = vmatpush.msra.mxu2 %v2756_v42  ;;  %2116 = vmatpush.msrb.mxu3 %v2763_v41 }
 0x2fc   :  { %1854 = vmatpush.msra.mxu2 %v2755_v21  ;;  %2117 = vmatpush.msrb.mxu3 %v2762_v50 }
 0x2fd   :  { %v1788_v37 = vld [vmem:[#allocation5 + $0x20] sm:$0xff] }
 0x2fe   :  { %v2875_v32 = vpop.eup %2874  ;;  %1855 = vmatpush.msra.mxu2 %v2754_v46  ;;  %2118 = vmatpush.msrb.mxu3 %v2761_v57  ;;  %v2221_v57 = vld [vmem:[%s5001_s11 + $0xf0] sm:$0xff] }
 0x2ff   :  { %v2877_v33 = vpop.eup %2876  ;;  %v1473_v34 = vmul.f32 %v2875_v32, %v4505_v47 }
 0x300   :  { %v1477_v35 = vmul.f32 %v2877_v33, %v4507_v48  ;;  %2078 = vmatpush.msrb.mxu2 %v2757_v40  ;;  %2119 = vmatpush.msrb.mxu3 %v2760_v59  ;;  %v2222_v59 = vld [vmem:[%s5001_s11 + $0xf8] sm:$0xff] }
 0x301   :  { %1489 = vst.msk [vmem:[#allocation9 + $0x58] sm:$0xff] %vm1301_vm1, %v1473_v34  ;;  %2741 = vmatmul.msk.f32.gmra.mxu1 %vm1301_vm1, %v1473_v34  ;;  %v2806_v34 = vld [vmem:[%s4998_s8] ss:$0 sm:$0xff] }
 0x302   :  { %1493 = vst.msk [vmem:[#allocation9 + $0x78] sm:$0xff] %vm1301_vm1, %v1477_v35  ;;  %2745 = vmatmul.msk.f32.gmra.mxu3 %vm1301_vm1, %v1477_v35  ;;  %2079 = vmatpush.msrb.mxu2 %v2756_v42  ;;  %v2766_v35 = vld [vmem:[%s5016_s19 + $0x10] sm:$0xff] }
 0x304   :  { %2080 = vmatpush.msrb.mxu2 %v2755_v21  ;;  %v2767_v21 = vld [vmem:[%s5016_s19 + $0x18] sm:$0xff] }
 0x306   :  { %2081 = vmatpush.msrb.mxu2 %v2754_v46 }
 0x307   :  { %v1517_v38 = vpop.f32.mrf.mxu0 }
 0x308   :  { %1726 = vst.msk [vmem:[#allocation5] sm:$0xff] %vm139_vm0, %v1517_v38  ;;  %v1546_v39 = vpop.f32.mrf.mxu1 }
 0x309   :  { %2752 = vmatmul.msk.f32.vlgmr.msra.gmra.mxu1 %vm139_vm0, %v1788_v37  ;;  %1728 = vst.msk [vmem:[#allocation5 + $0x10] sm:$0xff] %vm139_vm0, %v1546_v39  ;;  %v1975_v37 = vadd.f32 %v2806_v34, %v2766_v35  ;;  %v2192_v35 = vld [vmem:[%s5001_s11 + $0x8] sm:$0xff] }
 0x30a   :  { %2258 = vmatpush.msra.mxu1 %v2222_v59 }
 0x30c   :  { %v1578_v0 = vpop.f32.mrf.mxu2 }
 0x30d   :  { %1731 = vst.msk [vmem:[#allocation5 + $0x28] sm:$0xff] %vm139_vm0, %v1578_v0 }
 0x30f   :  { %v1520_v24 = vpop.f32.mrf.mxu0  ;;  %v1750_v13 = vld [vmem:[#allocation5] sm:$0xff] }
 0x310   :  { %1727 = vst.msk [vmem:[#allocation5 + $0x8] sm:$0xff] %vm139_vm0, %v1520_v24  ;;  %2746 = vmatmul.msk.f32.vlgmr.msra.gmra.mxu0 %vm139_vm0, %v1750_v13  ;;  %v1978_v48 = vld [vmem:[#allocation5 + $0x10] sm:$0xff]  ;;  %v1976_v13 = vadd.f32 %v2806_v34, %v2767_v21  ;;  %v2191_v34 = vld [vmem:[%s5001_s11] sm:$0xff] }
 0x311   :  { %2229 = vmatpush.msra.mxu0 %v2221_v57  ;;  %v2807_v57 = vld [vmem:[%s4999_s9] ss:$0 sm:$0xff] }
 0x314   :  { %v1789_v36 = vld [vmem:[#allocation5 + $0x28] sm:$0xff] }
 0x315   :  { %2753 = vmatmul.msk.f32.gmra.mxu1 %vm139_vm0, %v1789_v36 }
 0x317   :  { %v1751_v3 = vld [vmem:[#allocation5 + $0x8] sm:$0xff]  ;;  %v1604_v47 = vpop.f32.mrf.mxu3 }
 0x318   :  { %2747 = vmatmul.msk.f32.gmra.mxu0 %vm139_vm0, %v1751_v3  ;;  %1732 = vst.msk [vmem:[#allocation5 + $0x30] sm:$0xff] %vm139_vm0, %v1604_v47 }
 0x31f   :  { %v2016_v49 = vld [vmem:[#allocation5 + $0x30] sm:$0xff] }
 0x320   :  { %2768 = vmatmul.msk.f32.vlgmr.msrb.gmra.mxu0 %vm139_vm0, %v1978_v48  ;;  %2774 = vmatmul.msk.f32.vlgmr.msrb.gmra.mxu1 %vm139_vm0, %v2016_v49 }
 0x329   :  { %v1633_v52 = vpop.f32.mrf.mxu0 }
 0x32a   :  { %1734 = vst.msk [vmem:[#allocation5 + $0x40] sm:$0xff] %vm139_vm0, %v1633_v52 }
 0x331   :  { %v1549_v54 = vpop.f32.mrf.mxu1  ;;  %v1827_v10 = vld [vmem:[#allocation5 + $0x40] sm:$0xff] }
 0x332   :  { %1729 = vst.msk [vmem:[#allocation5 + $0x18] sm:$0xff] %vm139_vm0, %v1549_v54  ;;  %2758 = vmatmul.msk.f32.vlgmr.msra.gmra.mxu2 %vm139_vm0, %v1827_v10 }
 0x339   :  { %v1979_v55 = vld [vmem:[#allocation5 + $0x18] sm:$0xff] }
 0x33a   :  { %2769 = vmatmul.msk.f32.gmra.mxu0 %vm139_vm0, %v1979_v55 }
 0x349   :  { %v1662_v44 = vpop.f32.mrf.mxu1 }
 0x34a   :  { %1736 = vst.msk [vmem:[#allocation5 + $0x50] sm:$0xff] %vm139_vm0, %v1662_v44  ;;  %v2949_v44 = vmov 128.0  }
 0x34b   :  { %2878 = vrcp.f32 %v2949_v44 }
 0x351   :  { %v2054_v5 = vld [vmem:[#allocation5 + $0x50] sm:$0xff] }
 0x35c   :  { %v1691_v43 = vpop.f32.mrf.mxu2 }
 0x35d   :  { %1738 = vst.msk [vmem:[#allocation5 + $0x60] sm:$0xff] %vm139_vm0, %v1691_v43  ;;  %v2219_v43 = vld [vmem:[%s5001_s11 + $0xe0] sm:$0xff] }
 0x35e   :  { %2230 = vmatpush.msra.mxu0 %v2219_v43 }
 0x364   :  { %v1607_v45 = vpop.f32.mrf.mxu3  ;;  %v1866_v60 = vld [vmem:[#allocation5 + $0x60] sm:$0xff] }
 0x365   :  { %1733 = vst.msk [vmem:[#allocation5 + $0x38] sm:$0xff] %vm139_vm0, %v1607_v45  ;;  %v1694_v63 = vpop.f32.mrf.mxu2  ;;  %2764 = vmatmul.msk.f32.vlgmr.msra.gmra.mxu3 %vm139_vm0, %v1866_v60  ;;  %v2220_v45 = vld [vmem:[%s5001_s11 + $0xe8] sm:$0xff]  ;;  %v2217_v60 = vld [vmem:[%s5001_s11 + $0xd0] sm:$0xff] }
 0x366   :  { %1739 = vst.msk [vmem:[#allocation5 + $0x68] sm:$0xff] %vm139_vm0, %v1694_v63  ;;  %v1636_v53 = vpop.f32.mrf.mxu0  ;;  %2259 = vmatpush.msra.mxu1 %v2220_v45  ;;  %v2218_v63 = vld [vmem:[%s5001_s11 + $0xd8] sm:$0xff]  ;;  %2231 = vmatpush.msra.mxu0 %v2217_v60  ;;  %v2808_v45 = vld [vmem:[%s5000_s10] ss:$0 sm:$0xff] }
 0x367   :  { %1735 = vst.msk [vmem:[#allocation5 + $0x48] sm:$0xff] %vm139_vm0, %v1636_v53  ;;  %v2215_v53 = vld [vmem:[%s5001_s11 + $0xc0] sm:$0xff] }
 0x368   :  { %2260 = vmatpush.msra.mxu1 %v2218_v63  ;;  %2232 = vmatpush.msra.mxu0 %v2215_v53 }
 0x36c   :  { %v2017_v1 = vld [vmem:[#allocation5 + $0x38] sm:$0xff] }
 0x36d   :  { %v1867_v4 = vld [vmem:[#allocation5 + $0x68] sm:$0xff]  ;;  %2775 = vmatmul.msk.f32.gmra.mxu1 %vm139_vm0, %v2017_v1 }
 0x36e   :  { %2765 = vmatmul.msk.f32.gmra.mxu3 %vm139_vm0, %v1867_v4  ;;  %v1828_v51 = vld [vmem:[#allocation5 + $0x48] sm:$0xff]  ;;  %v2879_v4 = vpop.eup %2878 }
 0x36f   :  { %2759 = vmatmul.msk.f32.gmra.mxu2 %vm139_vm0, %v1828_v51  ;;  %v2216_v1 = vld [vmem:[%s5001_s11 + $0xc8] sm:$0xff]  ;;  %v2213_v51 = vld [vmem:[%s5001_s11 + $0xb0] sm:$0xff]  ;;  %vm1915_vm2 = vweird.f32 %v2879_v4 }
 0x370   :  { %2261 = vmatpush.msra.mxu1 %v2216_v1  ;;  %2233 = vmatpush.msra.mxu0 %v2213_v51 }
 0x377   :  { %2780 = vmatmul.msk.f32.vlgmr.msrb.gmra.mxu2 %vm139_vm0, %v2054_v5  ;;  %v2214_v5 = vld [vmem:[%s5001_s11 + $0xb8] sm:$0xff] }
 0x378   :  { %2262 = vmatpush.msra.mxu1 %v2214_v5 }
 0x37c   :  { %v1720_v7 = vpop.f32.mrf.mxu3 }
 0x37d   :  { %1740 = vst.msk [vmem:[#allocation5 + $0x70] sm:$0xff] %vm139_vm0, %v1720_v7  ;;  %v2211_v7 = vld [vmem:[%s5001_s11 + $0xa0] sm:$0xff] }
 0x37e   :  { %v1665_v58 = vpop.f32.mrf.mxu1  ;;  %2234 = vmatpush.msra.mxu0 %v2211_v7 }
 0x37f   :  { %1737 = vst.msk [vmem:[#allocation5 + $0x58] sm:$0xff] %vm139_vm0, %v1665_v58  ;;  %v2212_v58 = vld [vmem:[%s5001_s11 + $0xa8] sm:$0xff] }
 0x380   :  { %2263 = vmatpush.msra.mxu1 %v2212_v58 }
 0x384   :  { %v2092_v9 = vld [vmem:[#allocation5 + $0x70] sm:$0xff] }
 0x385   :  { %v1723_v11 = vpop.f32.mrf.mxu3  ;;  %2786 = vmatmul.msk.f32.vlgmr.msrb.gmra.mxu3 %vm139_vm0, %v2092_v9  ;;  %v1911_v9 = vmul.f32 128.0, %v2879_v4 }
 0x386   :  { %1741 = vst.msk [vmem:[#allocation5 + $0x78] sm:$0xff] %vm139_vm0, %v1723_v11  ;;  %v2055_v12 = vld [vmem:[#allocation5 + $0x58] sm:$0xff]  ;;  %v1818_v62 = vpop.f32.mrf.mxu1  ;;  %v2209_v11 = vld [vmem:[%s5001_s11 + $0x90] sm:$0xff] }
 0x387   :  { %2781 = vmatmul.msk.f32.gmra.mxu2 %vm139_vm0, %v2055_v12  ;;  %v2210_v12 = vld [vmem:[%s5001_s11 + $0x98] sm:$0xff]  ;;  %2235 = vmatpush.msra.mxu0 %v2209_v11  ;;  %v1912_v16 = vsub.f32 1.0, %v1911_v9 }
 0x388   :  { %2264 = vmatpush.msra.mxu1 %v2210_v12 }
 0x38a   :  { %2265 = vmatpush.msra.mxu1 %v2208_v15 }
 0x38d   :  { %v2093_v61 = vld [vmem:[#allocation5 + $0x78] sm:$0xff]  ;;  %v1779_v17 = vpop.f32.mrf.mxu0 }
 0x38e   :  { %2787 = vmatmul.msk.f32.gmra.mxu3 %vm139_vm0, %v2093_v61  ;;  %v1785_v18 = vadd.f32 %v1779_v17, %v1748_v56  ;;  %v2207_v61 = vld [vmem:[%s5001_s11 + $0x80] sm:$0xff]  ;;  %v2205_v56 = vld [vmem:[%s5001_s11 + $0x70] sm:$0xff]  ;;  %v2206_v17 = vld [vmem:[%s5001_s11 + $0x78] sm:$0xff] }
 0x38f   :  { %2236 = vmatpush.msra.mxu0 %v2207_v61  ;;  %2266 = vmatpush.msra.mxu1 %v2206_v17 }
 0x390   :  { %v1824_v20 = vadd.f32 %v1818_v62, %v1785_v18  ;;  %v2203_v18 = vld [vmem:[%s5001_s11 + $0x60] sm:$0xff]  ;;  %v2204_v62 = vld [vmem:[%s5001_s11 + $0x68] sm:$0xff] }
 0x391   :  { %2237 = vmatpush.msra.mxu0 %v2205_v56  ;;  %2267 = vmatpush.msra.mxu1 %v2204_v62 }
 0x392   :  { %v1821_v28 = vpop.f32.mrf.mxu1 }
 0x393   :  { %2238 = vmatpush.msra.mxu0 %v2203_v18  ;;  %2268 = vmatpush.msra.mxu1 %v2202_v22 }
 0x395   :  { %v1782_v6 = vpop.f32.mrf.mxu0 }
 0x396   :  { %v1786_v27 = vadd.f32 %v1782_v6, %v1749_v25  ;;  %v2197_v6 = vld [vmem:[%s5001_s11 + $0x30] sm:$0xff] }
 0x398   :  { %v1825_v14 = vadd.f32 %v1821_v28, %v1786_v27  ;;  %v2195_v27 = vld [vmem:[%s5001_s11 + $0x20] sm:$0xff]  ;;  %v2196_v28 = vld [vmem:[%s5001_s11 + $0x28] sm:$0xff] }
 0x39d   :  { %v2007_v38 = vpop.f32.mrf.mxu0  ;;  %v2045_v39 = vpop.f32.mrf.mxu1 }
 0x39e   :  { %v2013_v40 = vadd.f32 %v2007_v38, %v1975_v37 }
 0x3a0   :  { %v2051_v0 = vadd.f32 %v2045_v39, %v2013_v40 }
 0x3b5   :  { %v1857_v19 = vpop.f32.mrf.mxu2 }
 0x3b6   :  { %v1863_v2 = vadd.f32 %v1857_v19, %v1824_v20  ;;  %v1913_v19 = vmul.f32 %v2879_v4, %v1912_v16  ;;  %v2201_v20 = vld [vmem:[%s5001_s11 + $0x50] sm:$0xff] }
 0x3b7   :  { %v2010_v36 = vpop.f32.mrf.mxu0  ;;  %2239 = vmatpush.msra.mxu0 %v2201_v20  ;;  %v2326_v20 = vld [vmem:[%s5003_s13 + $0xf8] sm:$0xff] }
 0x3b8   :  { %v2014_v49 = vadd.f32 %v2010_v36, %v1976_v13  ;;  %v1914_v25 = vadd.f32 %v2879_v4, %v1913_v19  ;;  %v2310_v19 = vld [vmem:[%s5003_s13 + $0x78] sm:$0xff]  ;;  %2360 = vmatpush.msra.mxu3 %v2326_v20 }
 0x3b9   :  { %2331 = vmatpush.msra.mxu2 %v2310_v19  ;;  %v2223_v19 = vld [vmem:[%s5002_s12] sm:$0x3] }
 0x3ba   :  { %v2225_v20 = vperm.slane %v2223_v19, 0 }
 0x3e8   :  { %v1896_v23 = vpop.f32.mrf.mxu3 }
 0x3e9   :  { %v4646_v26 = vadd.f32 %v1896_v23, %v1863_v2  ;;  %v2199_v2 = vld [vmem:[%s5001_s11 + $0x40] sm:$0xff]  ;;  %v2200_v23 = vld [vmem:[%s5001_s11 + $0x48] sm:$0xff] }
 0x3ea   :  { %v2048_v47 = vpop.f32.mrf.mxu1  ;;  %2240 = vmatpush.msra.mxu0 %v2199_v2  ;;  %2269 = vmatpush.msra.mxu1 %v2200_v23  ;;  %v2309_v2 = vld [vmem:[%s5003_s13 + $0x70] sm:$0xff] }
 0x3eb   :  { %1906 = vadd.xlane.f32.xlu2 %v4646_v26  ;;  %v1919_v8 = vmul.f32 %v4646_v26, %v4646_v26  ;;  %v2052_v54 = vadd.f32 %v2048_v47, %v2014_v49  ;;  %v2325_v23 = vld [vmem:[%s5003_s13 + $0xf0] sm:$0xff]  ;;  %2332 = vmatpush.msra.mxu2 %v2309_v2 }
 0x3ec   :  { %2241 = vmatpush.msra.mxu0 %v2197_v6  ;;  %2361 = vmatpush.msra.mxu3 %v2325_v23 }
 0x3ed   :  { %1921 = vadd.xlane.f32.xlu0 %v1919_v8  ;;  %v2198_v8 = vld [vmem:[%s5001_s11 + $0x38] sm:$0xff] }
 0x3ee   :  { %2270 = vmatpush.msra.mxu1 %v2198_v8  ;;  %2242 = vmatpush.msra.mxu0 %v2195_v27  ;;  %v2308_v8 = vld [vmem:[%s5003_s13 + $0x68] sm:$0xff] }
 0x3ef   :  { %v2324_v27 = vld [vmem:[%s5003_s13 + $0xe8] sm:$0xff]  ;;  %2333 = vmatpush.msra.mxu2 %v2308_v8 }
 0x3f0   :  { %2271 = vmatpush.msra.mxu1 %v2196_v28  ;;  %2362 = vmatpush.msra.mxu3 %v2324_v27 }
 0x3f1   :  { %v1899_v31 = vpop.f32.mrf.mxu3 }
 0x3f2   :  { %v1860_v29 = vpop.f32.mrf.mxu2 }
 0x3f3   :  { %v1864_v30 = vadd.f32 %v1860_v29, %v1825_v14  ;;  %v4759_v14 = vsel %vm1915_vm2, %v2879_v4, %v1914_v25  ;;  %v2193_v29 = vld [vmem:[%s5001_s11 + $0x10] sm:$0xff] }
 0x3f4   :  { %2243 = vmatpush.msra.mxu0 %v2193_v29 }
 0x3f5   :  { %v4651_v32 = vadd.f32 %v1899_v31, %v1864_v30  ;;  %v2194_v30 = vld [vmem:[%s5001_s11 + $0x18] sm:$0xff] }
 0x3f6   :  { %2272 = vmatpush.msra.mxu1 %v2194_v30  ;;  %2244 = vmatpush.msra.mxu0 %v2191_v34  ;;  %v2307_v30 = vld [vmem:[%s5003_s13 + $0x60] sm:$0xff] }
 0x3f7   :  { %1908 = vadd.xlane.f32.xlu1 %v4651_v32  ;;  %v1920_v33 = vmul.f32 %v4651_v32, %v4651_v32  ;;  %2334 = vmatpush.msra.mxu2 %v2307_v30 }
 0x3f8   :  { %2273 = vmatpush.msra.mxu1 %v2192_v35  ;;  %v2306_v35 = vld [vmem:[%s5003_s13 + $0x58] sm:$0xff] }
 0x3f9   :  { %1923 = vadd.xlane.f32.xlu2 %v1920_v33  ;;  %2335 = vmatpush.msra.mxu2 %v2306_v35 }
 0x3fa   :  { %v2083_v42 = vpop.f32.mrf.mxu2 }
 0x3fb   :  { %v2089_v24 = vadd.f32 %v2083_v42, %v2051_v0 }
 0x408   :  { %v2121_v46 = vpop.f32.mrf.mxu3 }
 0x409   :  { %v4665_v3 = vadd.f32 %v2121_v46, %v2089_v24 }
 0x40a   :  { %v2086_v52 = vpop.f32.mrf.mxu2 }
 0x40b   :  { %2131 = vadd.xlane.f32.xlu0 %v4665_v3  ;;  %v2137_v48 = vmul.f32 %v4665_v3, %v4665_v3  ;;  %v2090_v10 = vadd.f32 %v2086_v52, %v2052_v54 }
 0x40d   :  { %2139 = vadd.xlane.f32.xlu1 %v2137_v48 }
 0x411   :  { %v2124_v55 = vpop.f32.mrf.mxu3 }
 0x412   :  { %v4670_v41 = vadd.f32 %v2124_v55, %v2090_v10 }
 0x414   :  { %2133 = vadd.xlane.f32.xlu2 %v4670_v41  ;;  %v2138_v50 = vmul.f32 %v4670_v41, %v4670_v41 }
 0x416   :  { %2141 = vadd.xlane.f32.xlu0 %v2138_v50 }
 0x45e   :  { %v1907_v31 = vpop.xlane.xlu2 %1906 }
 0x45f   :  { %v1917_v33 = vmul.f32 %v4759_v14, %v1907_v31  ;;  %v2323_v31 = vld [vmem:[%s5003_s13 + $0xe0] sm:$0xff] }
 0x460   :  { %v1922_v37 = vpop.xlane.xlu0 %1921  ;;  %2363 = vmatpush.msra.mxu3 %v2323_v31 }
 0x461   :  { %v1927_v38 = vmul.f32 %v1917_v33, %v1917_v33  ;;  %v1925_v39 = vmul.f32 %v1922_v37, %v4759_v14  ;;  %v1931_v50 = vsub.f32 %v4646_v26, %v1917_v33  ;;  %v2322_v37 = vld [vmem:[%s5003_s13 + $0xd8] sm:$0xff] }
 0x462   :  { %2364 = vmatpush.msra.mxu3 %v2322_v37 }
 0x463   :  { %v1929_v40 = vsub.f32 %v1925_v39, %v1927_v38  ;;  %v2305_v39 = vld [vmem:[%s5003_s13 + $0x50] sm:$0xff] }
 0x464   :  { %2336 = vmatpush.msra.mxu2 %v2305_v39 }
 0x465   :  { %v1933_v42 = vadd.f32 1e-05, %v1929_v40  ;;  %v2321_v40 = vld [vmem:[%s5003_s13 + $0xd0] sm:$0xff] }
 0x466   :  { %2365 = vmatpush.msra.mxu3 %v2321_v40 }
 0x467   :  { %2880 = vrsqrt.f32 %v1933_v42  ;;  %vm1941_vm4 = vweird.f32 %v1933_v42 }
 0x46a   :  { %v1909_v0 = vpop.xlane.xlu1 %1908 }
 0x46b   :  { %v1918_v21 = vmul.f32 %v4759_v14, %v1909_v0  ;;  %v2304_v0 = vld [vmem:[%s5003_s13 + $0x48] sm:$0xff] }
 0x46c   :  { %v1924_v24 = vpop.xlane.xlu2 %1923  ;;  %2337 = vmatpush.msra.mxu2 %v2304_v0 }
 0x46d   :  { %v2881_v13 = vpop.eup %2880  ;;  %v1928_v46 = vmul.f32 %v1918_v21, %v1918_v21  ;;  %v1926_v36 = vmul.f32 %v1924_v24, %v4759_v14  ;;  %v1932_v12 = vsub.f32 %v4651_v32, %v1918_v21  ;;  %v2320_v21 = vld [vmem:[%s5003_s13 + $0xc8] sm:$0xff] }
 0x46e   :  { %v1936_v47 = vmul.f32 %v2881_v13, %v1933_v42  ;;  %vm1942_vm3 = vweird.f32 %v2881_v13  ;;  %2366 = vmatpush.msra.mxu3 %v2320_v21 }
 0x46f   :  { %v1930_v48 = vsub.f32 %v1926_v36, %v1928_v46  ;;  %vm1943_vm5 = vmor %vm1941_vm4, %vm1942_vm3  ;;  %v2319_v46 = vld [vmem:[%s5003_s13 + $0xc0] sm:$0xff] }
 0x470   :  { %v1937_v49 = vmul.f32 %v2881_v13, %v1936_v47  ;;  %2367 = vmatpush.msra.mxu3 %v2319_v46 }
 0x471   :  { %v1934_v52 = vadd.f32 1e-05, %v1930_v48  ;;  %v2809_v48 = vld [vmem:[%s4999_s9] ss:$0 sm:$0xff] }
 0x472   :  { %v1938_v54 = vmul.f32 0.5, %v1937_v49 }
 0x473   :  { %2882 = vrsqrt.f32 %v1934_v52  ;;  %vm1951_vm7 = vweird.f32 %v1934_v52 }
 0x474   :  { %v1939_v10 = vsub.f32 1.5, %v1938_v54  ;;  %v2302_v54 = vld [vmem:[%s5003_s13 + $0x38] sm:$0xff] }
 0x476   :  { %v1940_v55 = vmul.f32 %v2881_v13, %v1939_v10  ;;  %v2318_v10 = vld [vmem:[%s5003_s13 + $0xb8] sm:$0xff] }
 0x477   :  { %2368 = vmatpush.msra.mxu3 %v2318_v10 }
 0x478   :  { %v1944_v59 = vsel %vm1943_vm5, %v2881_v13, %v1940_v55  ;;  %v2303_v13 = vld [vmem:[%s5003_s13 + $0x40] sm:$0xff] }
 0x479   :  { %v2883_v44 = vpop.eup %2882  ;;  %v1955_v43 = vmul.f32 %v1944_v59, %v1931_v50  ;;  %2338 = vmatpush.msra.mxu2 %v2303_v13  ;;  %v2301_v59 = vld [vmem:[%s5003_s13 + $0x30] sm:$0xff] }
 0x47a   :  { %v1946_v60 = vmul.f32 %v2883_v44, %v1934_v52  ;;  %vm1952_vm6 = vweird.f32 %v2883_v44 }
 0x47b   :  { %v1960_v63 = vmul.f32 %v2807_v57, %v1955_v43  ;;  %vm1953_vm8 = vmor %vm1951_vm7, %vm1952_vm6  ;;  %2339 = vmatpush.msra.mxu2 %v2302_v54 }
 0x47c   :  { %v1947_v53 = vmul.f32 %v2883_v44, %v1946_v60  ;;  %v2300_v60 = vld [vmem:[%s5003_s13 + $0x28] sm:$0xff] }
 0x47d   :  { %v4784_v1 = vadd.f32 %v2808_v45, %v1960_v63  ;;  %v2316_v63 = vld [vmem:[%s5003_s13 + $0xa8] sm:$0xff]  ;;  %2340 = vmatpush.msra.mxu2 %v2301_v59 }
 0x47e   :  { %v1948_v4 = vmul.f32 0.5, %v1947_v53  ;;  %v2132_v51 = vpop.xlane.xlu0 %2131 }
 0x47f   :  { %v4787_v26 = vmul.f32 %v2132_v51, %v4759_v14  ;;  %2245 = vmatmul.f32.vlgmr.msra.gmra.mxu0 %v4784_v1  ;;  %2274 = vmatmul.f32.vlgmr.msra.gmra.mxu1 %v4784_v1  ;;  %v2299_v51 = vld [vmem:[%s5003_s13 + $0x20] sm:$0xff] }
 0x480   :  { %v1949_v5 = vsub.f32 1.5, %v1948_v4  ;;  %v2140_v7 = vpop.xlane.xlu1 %2139  ;;  %2341 = vmatpush.msra.mxu2 %v2300_v60 }
 0x481   :  { %v2145_v58 = vmul.f32 %v4787_v26, %v4787_v26  ;;  %v2143_v9 = vmul.f32 %v2140_v7, %v4759_v14  ;;  %v2149_v49 = vsub.f32 %v4665_v3, %v4787_v26  ;;  %v2810_v3 = vld [vmem:[%s5000_s10] ss:$0 sm:$0xff]  ;;  %v2298_v7 = vld [vmem:[%s5003_s13 + $0x18] sm:$0xff] }
 0x482   :  { %v1950_v11 = vmul.f32 %v2883_v44, %v1949_v5  ;;  %v2315_v26 = vld [vmem:[%s5003_s13 + $0xa0] sm:$0xff]  ;;  %2342 = vmatpush.msra.mxu2 %v2299_v51 }
 0x483   :  { %v2147_v61 = vsub.f32 %v2143_v9, %v2145_v58  ;;  %v2314_v58 = vld [vmem:[%s5003_s13 + $0x98] sm:$0xff] }
 0x484   :  { %v1954_v15 = vsel %vm1953_vm8, %v2883_v44, %v1950_v11  ;;  %v2317_v44 = vld [vmem:[%s5003_s13 + $0xb0] sm:$0xff]  ;;  %2343 = vmatpush.msra.mxu2 %v2298_v7 }
 0x485   :  { %v2151_v16 = vadd.f32 1e-05, %v2147_v61  ;;  %v1956_v56 = vmul.f32 %v1954_v15, %v1932_v12  ;;  %2369 = vmatpush.msra.mxu3 %v2317_v44 }
 0x487   :  { %2884 = vrsqrt.f32 %v2151_v16  ;;  %v2134_v17 = vpop.xlane.xlu2 %2133  ;;  %v1961_v18 = vmul.f32 %v2807_v57, %v1956_v56  ;;  %vm2159_vm10 = vweird.f32 %v2151_v16  ;;  %2370 = vmatpush.msra.mxu3 %v2316_v63  ;;  %v2296_v56 = vld [vmem:[%s5003_s13 + $0x8] sm:$0xff] }
 0x488   :  { %v4796_v62 = vmul.f32 %v2134_v17, %v4759_v14  ;;  %v2312_v17 = vld [vmem:[%s5003_s13 + $0x88] sm:$0xff] }
 0x489   :  { %v2142_v32 = vpop.xlane.xlu0 %2141  ;;  %v4804_v22 = vadd.f32 %v2808_v45, %v1961_v18  ;;  %2371 = vmatpush.msra.mxu3 %v2315_v26  ;;  %v2295_v18 = vld [vmem:[%s5003_s13] sm:$0xff] }
 0x48a   :  { %v2146_v25 = vmul.f32 %v4796_v62, %v4796_v62  ;;  %v2144_v6 = vmul.f32 %v2142_v32, %v4759_v14  ;;  %v2150_v9 = vsub.f32 %v4670_v41, %v4796_v62  ;;  %v2313_v41 = vld [vmem:[%s5003_s13 + $0x90] sm:$0xff]  ;;  %v2311_v62 = vld [vmem:[%s5003_s13 + $0x80] sm:$0xff]  ;;  %v2226_v32 = vperm.slane %v2223_v19, 1 }
 0x48b   :  { %2248 = vmatmul.f32.gmra.mxu0 %v4804_v22  ;;  %2277 = vmatmul.f32.gmra.mxu1 %v4804_v22 }
 0x48c   :  { %v2148_v28 = vsub.f32 %v2144_v6, %v2146_v25  ;;  %2372 = vmatpush.msra.mxu3 %v2314_v58 }
 0x48d   :  { %v2885_v29 = vpop.eup %2884 }
 0x48e   :  { %v2154_v33 = vmul.f32 %v2885_v29, %v2151_v16  ;;  %v4829_v34 = vadd.f32 1e-05, %v2148_v28  ;;  %vm2160_vm9 = vweird.f32 %v2885_v29  ;;  %v2297_v16 = vld [vmem:[%s5003_s13 + $0x10] sm:$0xff]  ;;  %2373 = vmatpush.msra.mxu3 %v2313_v41 }
 0x48f   :  { %vm2161_vm11 = vmor %vm2159_vm10, %vm2160_vm9  ;;  %2344 = vmatpush.msra.mxu2 %v2297_v16 }
 0x490   :  { %v2155_v38 = vmul.f32 %v2885_v29, %v2154_v33  ;;  %2886 = vrsqrt.f32 %v4829_v34  ;;  %vm2169_vm13 = vweird.f32 %v4829_v34  ;;  %2374 = vmatpush.msra.mxu3 %v2312_v17 }
 0x491   :  { %2345 = vmatpush.msra.mxu2 %v2296_v56 }
 0x492   :  { %v2156_v42 = vmul.f32 0.5, %v2155_v38  ;;  %2375 = vmatpush.msra.mxu3 %v2311_v62 }
 0x493   :  { %2346 = vmatpush.msra.mxu2 %v2295_v18 }
 0x494   :  { %v2157_v24 = vsub.f32 1.5, %v2156_v42 }
 0x496   :  { %v2887_v36 = vpop.eup %2886  ;;  %v2158_v47 = vmul.f32 %v2885_v29, %v2157_v24 }
 0x497   :  { %v2164_v52 = vmul.f32 %v2887_v36, %v4829_v34  ;;  %vm2170_vm12 = vweird.f32 %v2887_v36 }
 0x498   :  { %v2162_v55 = vsel %vm2161_vm11, %v2885_v29, %v2158_v47  ;;  %vm2171_vm14 = vmor %vm2169_vm13, %vm2170_vm12  ;;  %v2811_v47 = vld [vmem:[%s5004_s14] ss:$0 sm:$0xff]  ;;  %s2950_s14 = smov [#allocation9]  }
 0x499   :  { %v2165_v50 = vmul.f32 %v2887_v36, %v2164_v52  ;;  %v2173_v57 = vmul.f32 %v2162_v55, %v2149_v49  ;;  %s2518_s21 = sshll.u32 %s2950_s14, 4  ;;  %s2519_s21 = int_to_ptr.vmem [resolvable:$true] %s2518_s21 }
 0x49a   :  { %2526 = dma.vmem_to_hbm [thread:$0]  %s2519_s21, 2048, %s2521_s2, [#allocation10], %s2951_s23, %s2951_s23, %s2952_s7  }
 0x49b   :  { %v2166_v43 = vmul.f32 0.5, %v2165_v50  ;;  %v2178_v45 = vmul.f32 %v2809_v48, %v2173_v57 }
 0x49d   :  { %v2167_v53 = vsub.f32 1.5, %v2166_v43  ;;  %v4883_v4 = vadd.f32 %v2810_v3, %v2178_v45 }
 0x49f   :  { %v2168_v5 = vmul.f32 %v2887_v36, %v2167_v53  ;;  %2251 = vmatmul.f32.gmra.mxu0 %v4883_v4  ;;  %2280 = vmatmul.f32.gmra.mxu1 %v4883_v4 }
 0x4a1   :  { %v2172_v11 = vsel %vm2171_vm14, %v2887_v36, %v2168_v5 }
 0x4a2   :  { %v2174_v12 = vmul.f32 %v2172_v11, %v2150_v9 }
 0x4a4   :  { %v2179_v61 = vmul.f32 %v2809_v48, %v2174_v12 }
 0x4a6   :  { %v4902_v15 = vadd.f32 %v2810_v3, %v2179_v61 }
 0x4a8   :  { %2254 = vmatmul.f32.gmra.mxu0 %v4902_v15  ;;  %2283 = vmatmul.f32.gmra.mxu1 %v4902_v15 }
 0x4fc   :  { %v2246_v2 = vpop.f32.mrf.mxu0  ;;  %v2275_v23 = vpop.f32.mrf.mxu1 }
 0x4fd   :  { %v2247_v25 = vadd.f32 %v2246_v2, %v2225_v20  ;;  %v2276_v6 = vadd.f32 %v2275_v23, %v2226_v32  ;;  %v4960_v2 = vld [vmem:[%s5005_s15] ss:$0 sm:$0xff]  ;;  %s2953_s15 = smov [#allocation7]  }
 0x4ff   :  { %v2287_v8 = vmax.f32 %v2247_v25, 0.0  ;;  %v2288_v27 = vmax.f32 %v2276_v6, 0.0  ;;  %v4965_v25 = vld [vmem:[%s5006_s16] ss:$0 sm:$0xff]  ;;  %s2505_s16 = sshll.u32 %s2953_s15, 4  ;;  %s2506_s16 = int_to_ptr.vmem [resolvable:$true] %s2505_s16 }
 0x501   :  { %2347 = vmatmul.f32.vlgmr.msra.gmra.mxu2 %v2287_v8  ;;  %2376 = vmatmul.f32.vlgmr.msra.gmra.mxu3 %v2288_v27 }
 0x508   :  { %v2249_v28 = vpop.f32.mrf.mxu0  ;;  %v2278_v29 = vpop.f32.mrf.mxu1 }
 0x509   :  { %v2250_v30 = vadd.f32 %v2249_v28, %v2225_v20  ;;  %v2279_v31 = vadd.f32 %v2278_v29, %v2226_v32 }
 0x50b   :  { %v2289_v33 = vmax.f32 %v2250_v30, 0.0  ;;  %v2290_v34 = vmax.f32 %v2279_v31, 0.0 }
 0x50d   :  { %2350 = vmatmul.f32.gmra.mxu2 %v2289_v33  ;;  %2379 = vmatmul.f32.gmra.mxu3 %v2290_v34 }
 0x51c   :  { %v2252_v35 = vpop.f32.mrf.mxu0  ;;  %v2281_v37 = vpop.f32.mrf.mxu1 }
 0x51d   :  { %v2253_v38 = vadd.f32 %v2252_v35, %v2225_v20  ;;  %v2282_v39 = vadd.f32 %v2281_v37, %v2226_v32 }
 0x51f   :  { %v2291_v40 = vmax.f32 %v2253_v38, 0.0  ;;  %v2292_v42 = vmax.f32 %v2282_v39, 0.0 }
 0x521   :  { %2353 = vmatmul.f32.gmra.mxu2 %v2291_v40  ;;  %2382 = vmatmul.f32.gmra.mxu3 %v2292_v42 }
 0x525   :  { %v2255_v0 = vpop.f32.mrf.mxu0  ;;  %v2284_v21 = vpop.f32.mrf.mxu1 }
 0x526   :  { %v2256_v24 = vadd.f32 %v2255_v0, %v2225_v20  ;;  %v2285_v13 = vadd.f32 %v2284_v21, %v2226_v32 }
 0x528   :  { %v2293_v46 = vmax.f32 %v2256_v24, 0.0  ;;  %v2294_v36 = vmax.f32 %v2285_v13, 0.0 }
 0x52a   :  { %2356 = vmatmul.f32.gmra.mxu2 %v2293_v46  ;;  %2385 = vmatmul.f32.gmra.mxu3 %v2294_v36 }
 0x584   :  { %v2348_v48 = vpop.f32.mrf.mxu2  ;;  %v2377_v52 = vpop.f32.mrf.mxu3 }
 0x585   :  { %v2349_v49 = vadd.f32 %v2811_v47, %v2348_v48 }
 0x587   :  { %v2378_v54 = vadd.f32 %v2377_v52, %v2349_v49 }
 0x589   :  { %v2389_v10 = vadd.f32 %v2378_v54, %v4784_v1 }
 0x58b   :  { %2395 = vadd.xlane.f32.xlu1 %v2389_v10  ;;  %v2407_v55 = vmul.f32 %v2389_v10, %v2389_v10 }
 0x58d   :  { %2411 = vadd.xlane.f32.xlu2 %v2407_v55 }
 0x590   :  { %v2351_v50 = vpop.f32.mrf.mxu2  ;;  %v2380_v3 = vpop.f32.mrf.mxu3 }
 0x591   :  { %v2352_v57 = vadd.f32 %v2811_v47, %v2351_v50 }
 0x593   :  { %v2381_v59 = vadd.f32 %v2380_v3, %v2352_v57 }
 0x595   :  { %v4932_v44 = vadd.f32 %v2381_v59, %v4804_v22 }
 0x597   :  { %2397 = vadd.xlane.f32.xlu2 %v4932_v44  ;;  %v2408_v7 = vmul.f32 %v4932_v44, %v4932_v44 }
 0x5a4   :  { %v2354_v43 = vpop.f32.mrf.mxu2  ;;  %v2383_v60 = vpop.f32.mrf.mxu3 }
 0x5a5   :  { %v2355_v45 = vadd.f32 %v2811_v47, %v2354_v43 }
 0x5a7   :  { %v2384_v63 = vadd.f32 %v2383_v60, %v2355_v45 }
 0x5a9   :  { %v4936_v53 = vadd.f32 %v2384_v63, %v4883_v4 }
 0x5ab   :  { %2399 = vadd.xlane.f32.xlu0 %v4936_v53  ;;  %v2409_v4 = vmul.f32 %v4936_v53, %v4936_v53 }
 0x5ad   :  { %v2357_v1 = vpop.f32.mrf.mxu2  ;;  %v2386_v26 = vpop.f32.mrf.mxu3 }
 0x5ae   :  { %v2358_v51 = vadd.f32 %v2811_v47, %v2357_v1 }
 0x5b0   :  { %v2387_v5 = vadd.f32 %v2386_v26, %v2358_v51 }
 0x5b2   :  { %v4942_v22 = vadd.f32 %v2387_v5, %v4902_v15 }
 0x5b3   :  { %2413 = vadd.xlane.f32.xlu0 %v2408_v7 }
 0x5b4   :  { %2401 = vadd.xlane.f32.xlu1 %v4942_v22  ;;  %v2410_v58 = vmul.f32 %v4942_v22, %v4942_v22 }
 0x5b6   :  { %2417 = vadd.xlane.f32.xlu2 %v2410_v58 }
 0x5bc   :  { %2415 = vadd.xlane.f32.xlu1 %v2409_v4 }
 0x5fe   :  { %v2396_v9 = vpop.xlane.xlu1 %2395 }
 0x5ff   :  { %v2403_v11 = vmul.f32 %v2396_v9, %v4759_v14 }
 0x600   :  { %v2412_v12 = vpop.xlane.xlu2 %2411 }
 0x601   :  { %v2423_v61 = vmul.f32 %v2403_v11, %v2403_v11  ;;  %v2419_v15 = vmul.f32 %v2412_v12, %v4759_v14  ;;  %v2431_v32 = vsub.f32 %v2389_v10, %v2403_v11 }
 0x603   :  { %v2427_v16 = vsub.f32 %v2419_v15, %v2423_v61 }
 0x605   :  { %v2435_v41 = vadd.f32 1e-05, %v2427_v16 }
 0x607   :  { %2888 = vrsqrt.f32 %v2435_v41  ;;  %vm2445_vm0 = vweird.f32 %v2435_v41 }
 0x60a   :  { %v2398_v29 = vpop.xlane.xlu2 %2397 }
 0x60b   :  { %v2404_v30 = vmul.f32 %v2398_v29, %v4759_v14 }
 0x60d   :  { %v2889_v56 = vpop.eup %2888  ;;  %v2424_v33 = vmul.f32 %v2404_v30, %v2404_v30  ;;  %v2432_v63 = vsub.f32 %v4932_v44, %v2404_v30 }
 0x60e   :  { %v2440_v17 = vmul.f32 %v2889_v56, %v2435_v41  ;;  %vm2446_vm15 = vweird.f32 %v2889_v56 }
 0x60f   :  { %vm2447_vm1 = vmor %vm2445_vm0, %vm2446_vm15 }
 0x610   :  { %v2441_v18 = vmul.f32 %v2889_v56, %v2440_v17 }
 0x612   :  { %v2442_v62 = vmul.f32 0.5, %v2441_v18 }
 0x614   :  { %v2443_v19 = vsub.f32 1.5, %v2442_v62 }
 0x616   :  { %v2444_v20 = vmul.f32 %v2889_v56, %v2443_v19 }
 0x618   :  { %v2448_v23 = vsel %vm2447_vm1, %v2889_v56, %v2444_v20 }
 0x619   :  { %v2479_v6 = vmul.f32 %v2448_v23, %v2431_v32 }
 0x61b   :  { %v2486_v8 = vmul.f32 %v4960_v2, %v2479_v6 }
 0x61d   :  { %v2493_v27 = vadd.f32 %v4965_v25, %v2486_v8 }
 0x61e   :  { %v2400_v28 = vpop.xlane.xlu0 %2399 }
 0x61f   :  { %2497 = vst [vmem:[#allocation7] sm:$0xff] %v2493_v27  ;;  %v2405_v21 = vmul.f32 %v2400_v28, %v4759_v14 }
 0x621   :  { %v2425_v36 = vmul.f32 %v2405_v21, %v2405_v21  ;;  %v2433_v41 = vsub.f32 %v4936_v53, %v2405_v21 }
 0x626   :  { %v2414_v31 = vpop.xlane.xlu0 %2413 }
 0x627   :  { %v2402_v34 = vpop.xlane.xlu1 %2401  ;;  %v2420_v35 = vmul.f32 %v2414_v31, %v4759_v14 }
 0x628   :  { %v2406_v37 = vmul.f32 %v2402_v34, %v4759_v14 }
 0x629   :  { %v2428_v38 = vsub.f32 %v2420_v35, %v2424_v33  ;;  %v2418_v39 = vpop.xlane.xlu2 %2417 }
 0x62a   :  { %v2426_v40 = vmul.f32 %v2406_v37, %v2406_v37  ;;  %v2422_v42 = vmul.f32 %v2418_v39, %v4759_v14  ;;  %v2434_v58 = vsub.f32 %v4942_v22, %v2406_v37 }
 0x62b   :  { %v2436_v0 = vadd.f32 1e-05, %v2428_v38 }
 0x62c   :  { %v2430_v24 = vsub.f32 %v2422_v42, %v2426_v40 }
 0x62d   :  { %2890 = vrsqrt.f32 %v2436_v0  ;;  %vm2455_vm3 = vweird.f32 %v2436_v0 }
 0x62e   :  { %v2438_v13 = vadd.f32 1e-05, %v2430_v24 }
 0x62f   :  { %v2416_v46 = vpop.xlane.xlu1 %2415 }
 0x630   :  { %2892 = vrsqrt.f32 %v2438_v13  ;;  %v2421_v47 = vmul.f32 %v2416_v46, %v4759_v14  ;;  %vm2475_vm6 = vweird.f32 %v2438_v13 }
 0x632   :  { %v2429_v48 = vsub.f32 %v2421_v47, %v2425_v36 }
 0x633   :  { %v2891_v49 = vpop.eup %2890 }
 0x634   :  { %v2450_v52 = vmul.f32 %v2891_v49, %v2436_v0  ;;  %v2437_v54 = vadd.f32 1e-05, %v2429_v48  ;;  %vm2456_vm2 = vweird.f32 %v2891_v49 }
 0x635   :  { %vm2457_vm4 = vmor %vm2455_vm3, %vm2456_vm2 }
 0x636   :  { %v2893_v10 = vpop.eup %2892  ;;  %v2451_v55 = vmul.f32 %v2891_v49, %v2450_v52  ;;  %2894 = vrsqrt.f32 %v2437_v54  ;;  %vm2465_vm9 = vweird.f32 %v2437_v54 }
 0x637   :  { %v2470_v50 = vmul.f32 %v2893_v10, %v2438_v13  ;;  %vm2476_vm5 = vweird.f32 %v2893_v10 }
 0x638   :  { %v2452_v57 = vmul.f32 0.5, %v2451_v55  ;;  %vm2477_vm7 = vmor %vm2475_vm6, %vm2476_vm5 }
 0x639   :  { %v2471_v3 = vmul.f32 %v2893_v10, %v2470_v50 }
 0x63a   :  { %v2453_v59 = vsub.f32 1.5, %v2452_v57 }
 0x63b   :  { %v2472_v43 = vmul.f32 0.5, %v2471_v3 }
 0x63c   :  { %v2895_v45 = vpop.eup %2894  ;;  %v2454_v60 = vmul.f32 %v2891_v49, %v2453_v59 }
 0x63d   :  { %v2473_v14 = vsub.f32 1.5, %v2472_v43  ;;  %v2460_v1 = vmul.f32 %v2895_v45, %v2437_v54  ;;  %vm2466_vm8 = vweird.f32 %v2895_v45 }
 0x63e   :  { %v2458_v51 = vsel %vm2457_vm4, %v2891_v49, %v2454_v60  ;;  %vm2467_vm10 = vmor %vm2465_vm9, %vm2466_vm8 }
 0x63f   :  { %v2480_v26 = vmul.f32 %v2458_v51, %v2432_v63  ;;  %v2474_v5 = vmul.f32 %v2893_v10, %v2473_v14  ;;  %v2461_v7 = vmul.f32 %v2895_v45, %v2460_v1 }
 0x641   :  { %v2487_v4 = vmul.f32 %v4960_v2, %v2480_v26  ;;  %v2478_v9 = vsel %vm2477_vm7, %v2893_v10, %v2474_v5  ;;  %v2462_v11 = vmul.f32 0.5, %v2461_v7 }
 0x642   :  { %v2482_v12 = vmul.f32 %v2478_v9, %v2434_v58 }
 0x643   :  { %v2494_v61 = vadd.f32 %v4965_v25, %v2487_v4  ;;  %v2463_v44 = vsub.f32 1.5, %v2462_v11 }
 0x644   :  { %v2489_v15 = vmul.f32 %v4960_v2, %v2482_v12 }
 0x645   :  { %2498 = vst [vmem:[#allocation7 + $0x8] sm:$0xff] %v2494_v61  ;;  %v2464_v16 = vmul.f32 %v2895_v45, %v2463_v44 }
 0x646   :  { %v2496_v56 = vadd.f32 %v4965_v25, %v2489_v15 }
 0x647   :  { %v2468_v22 = vsel %vm2467_vm10, %v2895_v45, %v2464_v16 }
 0x648   :  { %2500 = vst [vmem:[#allocation7 + $0x18] sm:$0xff] %v2496_v56  ;;  %v2481_v17 = vmul.f32 %v2468_v22, %v2433_v41 }
 0x64a   :  { %v2488_v18 = vmul.f32 %v4960_v2, %v2481_v17 }
 0x64c   :  { %v2495_v62 = vadd.f32 %v4965_v25, %v2488_v18 }
 0x64e   :  { %2499 = vst [vmem:[#allocation7 + $0x10] sm:$0xff] %v2495_v62 }
 0x64f   :  { %2513 = dma.vmem_to_hbm [thread:$0]  %s2506_s16, 512, %s2508_s25, [#allocation8], %s2951_s23, %s2951_s23, %s2952_s7  }
 0x650   :  { %2945 = dma.done.wait [#allocation8], 512  }
 0x651   :  { %2946 = vsyncadd [#allocation8], 4294966784 }
 0x652   :  { %2947 = dma.done.wait [#allocation10], 2048  }
 0x653   :  { %2948 = vsyncadd [#allocation10], 4294965248 }
 0x654   :  { %2535 = vsyncpa [#allocation8], 1 }
 0x655   :  { %2536 = vsyncpa [#allocation10], 1 }

</bundles_post_ra>
